<compile_context>
chip_gen: v6e
topology: v6e:2x2x1
jax: 0.10.0
libtpu: 0.0.40
codegen_flags: <defaults>
</compile_context>

<pallas_src>
import functools

import jax
import jax.numpy as jnp
from jax.experimental import pallas as pl
from jax.experimental.pallas import tpu as pltpu


def _vmem_limit_bytes():
    """Generation-aware scoped-VMEM budget (~3/4 of physical capacity)."""
    try:
        cap = pltpu.get_tpu_info().vmem_capacity_bytes
        return int(cap * 3 // 4)          # 48 MiB on v7x, 96 MiB on v5e/v6e
    except Exception:
        return 32 * 1024 * 1024           # conservative fallback


_VMEM_LIMIT = _vmem_limit_bytes()


def _round_up(x, m):
    return (x + m - 1) // m * m


def _tile_m(m):
    for t in (512, 256, 128):
        if m >= t and m % t == 0:
            return t
    if m >= 128:
        return 128
    return _round_up(m, 8)


def _tile_k(k):
    for t in (512, 256, 128):
        if k >= t and k % t == 0:
            return t
    return k  # small K (layer 1, K=48): single full-K block is allowed


def _tile_n(c):
    # Full padded Cout (up to 512) so the N grid axis collapses to 1 and the
    # big A (patch) matrix is read from HBM exactly once.
    return min(_round_up(c, 128), 512)


# ----------------------------- Pallas kernels ------------------------------

def _gemm_act_kernel(a_ref, w_ref, o_ref, acc_ref, *, activation):
    """One (TM, TN) output tile: accumulate over the K grid axis, fused act."""
    @pl.when(pl.program_id(2) == 0)
    def _():
        acc_ref[...] = jnp.zeros_like(acc_ref)

    acc_ref[...] += jnp.dot(a_ref[...], w_ref[...],
                            preferred_element_type=jnp.float32)

    @pl.when(pl.program_id(2) == pl.num_programs(2) - 1)
    def _():
        acc = acc_ref[...]
        if activation == "lrelu":
            acc = jnp.where(acc > 0, acc, 0.2 * acc)      # LeakyReLU(0.2)
        elif activation == "sigmoid":
            acc = jax.nn.sigmoid(acc)
        o_ref[...] = acc.astype(o_ref.dtype)


def _gemm_stats_kernel(a_ref, w_ref, o_ref, sum_ref, ssq_ref, acc_ref):
    """Conv GEMM (no activation) + fused per-tile BN partial statistics."""
    @pl.when(pl.program_id(2) == 0)
    def _():
        acc_ref[...] = jnp.zeros_like(acc_ref)

    acc_ref[...] += jnp.dot(a_ref[...], w_ref[...],
                            preferred_element_type=jnp.float32)

    @pl.when(pl.program_id(2) == pl.num_programs(2) - 1)
    def _():
        acc = acc_ref[...]
        o_ref[...] = acc.astype(o_ref.dtype)
        # Per-(M-tile, N-tile) column sums from the f32 accumulator, replicated
        # over 8 sublanes so the stats block is (8, 128)-aligned.  The host-side
        # reduction divides the total by 8.
        csum = jnp.sum(acc, axis=0, keepdims=True)
        cssq = jnp.sum(acc * acc, axis=0, keepdims=True)
        sum_ref[...] = jnp.broadcast_to(csum, sum_ref.shape)
        ssq_ref[...] = jnp.broadcast_to(cssq, ssq_ref.shape)


def _bn_apply_lrelu_kernel(x_ref, sum_ref, ssq_ref, g_ref, b_ref, o_ref, *,
                           inv_m, eps):
    """BatchNorm (biased batch var, f32 math) + LeakyReLU(0.2), per M tile."""
    mean = sum_ref[...] * inv_m
    var = jnp.maximum(ssq_ref[...] * inv_m - mean * mean, 0.0)
    scale = g_ref[...] * jax.lax.rsqrt(var + eps)
    shift = b_ref[...] - mean * scale
    y = x_ref[...].astype(jnp.float32) * scale + shift
    o_ref[...] = jnp.where(y > 0, y, 0.2 * y).astype(o_ref.dtype)


# ------------------------------ kernel wrappers -----------------------------

def conv_gemm_padded(patches_bf16, w_mat, activation, *, with_stats=False,
                     out_dtype=jnp.bfloat16):
    """patches [M,K] bf16 @ w [K,C] -> padded [Mp, Cp] (lane-dense).

    If with_stats, also returns per-channel sum / sum-of-squares ((1, Cp) f32)
    computed from the f32 accumulator (conv output, pre-activation).
    """
    M, K = patches_bf16.shape
    K2, C = w_mat.shape
    assert K == K2
    TM, TK, TN = _tile_m(M), _tile_k(K), _tile_n(C)
    Mp, Kp, Cp = _round_up(M, TM), _round_up(K, TK), _round_up(C, TN)

    a = patches_bf16
    if (Mp, Kp) != (M, K):           # no-op for every layer except the tiny
        a = jnp.pad(a, ((0, Mp - M), (0, Kp - K)))   # final conv (M = N rows)
    w = w_mat.astype(jnp.bfloat16)
    if (Kp, Cp) != (K, C):
        w = jnp.pad(w, ((0, Kp - K), (0, Cp - C)))

    grid = (Mp // TM, Cp // TN, Kp // TK)
    n_mtiles = Mp // TM
    flops = 2 * Mp * Kp * Cp
    out_bytes = Mp * Cp * jnp.dtype(out_dtype).itemsize
    a_bytes = Mp * Kp * 2 + Kp * Cp * 2

    in_specs = [pl.BlockSpec((TM, TK), lambda i, j, k: (i, k)),
                pl.BlockSpec((TK, TN), lambda i, j, k: (k, j))]
    cparams = pltpu.CompilerParams(
        dimension_semantics=("parallel", "parallel", "arbitrary"),
        vmem_limit_bytes=_VMEM_LIMIT)

    if not with_stats:
        out = pl.pallas_call(
            functools.partial(_gemm_act_kernel, activation=activation),
            out_shape=jax.ShapeDtypeStruct((Mp, Cp), out_dtype),
            grid_spec=pltpu.PrefetchScalarGridSpec(
                num_scalar_prefetch=0,
                grid=grid,
                in_specs=in_specs,
                out_specs=pl.BlockSpec((TM, TN), lambda i, j, k: (i, j)),
                scratch_shapes=[pltpu.VMEM((TM, TN), jnp.float32)]),
            compiler_params=cparams,
            cost_estimate=pl.CostEstimate(
                flops=flops,
                transcendentals=Mp * Cp if activation == "sigmoid" else 0,
                bytes_accessed=a_bytes + out_bytes),
        )(a, w)
        return out, None, None

    out, psum, pssq = pl.pallas_call(
        _gemm_stats_kernel,
        out_shape=(jax.ShapeDtypeStruct((Mp, Cp), out_dtype),
                   jax.ShapeDtypeStruct((8 * n_mtiles, Cp), jnp.float32),
                   jax.ShapeDtypeStruct((8 * n_mtiles, Cp), jnp.float32)),
        grid_spec=pltpu.PrefetchScalarGridSpec(
            num_scalar_prefetch=0,
            grid=grid,
            in_specs=in_specs,
            out_specs=(pl.BlockSpec((TM, TN), lambda i, j, k: (i, j)),
                       pl.BlockSpec((8, TN), lambda i, j, k: (i, j)),
                       pl.BlockSpec((8, TN), lambda i, j, k: (i, j))),
            scratch_shapes=[pltpu.VMEM((TM, TN), jnp.float32)]),
        compiler_params=cparams,
        cost_estimate=pl.CostEstimate(
            flops=flops + 3 * Mp * Cp,
            transcendentals=0,
            bytes_accessed=a_bytes + out_bytes + 2 * 8 * n_mtiles * Cp * 4),
    )(a, w)

    # Each 8-row group holds identical per-tile column sums -> divide by 8.
    sums = jnp.sum(psum, axis=0, keepdims=True) * 0.125
    ssqs = jnp.sum(pssq, axis=0, keepdims=True) * 0.125
    return out, sums, ssqs


def bn_apply_lrelu(y_pad, sums, ssqs, m_real, c_real, gamma, beta, eps=1e-5):
    """Apply BatchNorm (training batch stats) + LeakyReLU tile-by-tile.

    Padded rows/channels of y_pad are exactly zero (zero-padded patches, no
    activation before BN), so stats divide by the true element count m_real
    and padded channels stay zero after normalization with gamma=0.
    """
    Mp, Cp = y_pad.shape
    TM = _tile_m(Mp)
    grid = (Mp // TM,)

    g = jnp.pad(gamma.reshape(1, -1).astype(jnp.float32),
                ((0, 0), (0, Cp - c_real)))
    b = jnp.pad(beta.reshape(1, -1).astype(jnp.float32),
                ((0, 0), (0, Cp - c_real)))

    return pl.pallas_call(
        functools.partial(_bn_apply_lrelu_kernel,
                          inv_m=1.0 / float(m_real), eps=eps),
        out_shape=jax.ShapeDtypeStruct((Mp, Cp), jnp.bfloat16),
        grid_spec=pltpu.PrefetchScalarGridSpec(
            num_scalar_prefetch=0,
            grid=grid,
            in_specs=[pl.BlockSpec((TM, Cp), lambda i: (i, 0)),
                      pl.BlockSpec((1, Cp), lambda i: (0, 0)),
                      pl.BlockSpec((1, Cp), lambda i: (0, 0)),
                      pl.BlockSpec((1, Cp), lambda i: (0, 0)),
                      pl.BlockSpec((1, Cp), lambda i: (0, 0))],
            out_specs=pl.BlockSpec((TM, Cp), lambda i: (i, 0)),
        ),
        compiler_params=pltpu.CompilerParams(
            dimension_semantics=("parallel",),
            vmem_limit_bytes=_VMEM_LIMIT),
        cost_estimate=pl.CostEstimate(
            flops=6 * Mp * Cp, transcendentals=Cp,
            bytes_accessed=2 * Mp * Cp * 2 + 4 * Cp * 4),
    )(y_pad, sums, ssqs, g, b)


# ------------------------------- glue (JAX) ---------------------------------

def im2col(x, k, stride, pad):
    """x: [N,H,W,C] -> ([N*Ho*Wo, k*k*C], (N, Ho, Wo)).

    Patch feature ordering is (kh, kw, Cin) matching a weight reshaped from
    [kh, kw, Cin, Cout].
    """
    if pad > 0:
        x = jnp.pad(x, ((0, 0), (pad, pad), (pad, pad), (0, 0)))
    N, Hp, Wp, C = x.shape
    Ho = (Hp - k) // stride + 1
    Wo = (Wp - k) // stride + 1
    pieces = []
    for i in range(k):
        for j in range(k):
            pieces.append(
                x[:, i:i + stride * (Ho - 1) + 1:stride,
                     j:j + stride * (Wo - 1) + 1:stride, :])
    p = jnp.stack(pieces, axis=3)                  # [N, Ho, Wo, k*k, C]
    return p.reshape(N * Ho * Wo, k * k * C), (N, Ho, Wo)


def torch_weight_to_mat(w_oihw):
    """[Cout, Cin, kh, kw] -> [kh*kw*Cin, Cout] matching im2col ordering."""
    w = jnp.transpose(w_oihw, (2, 3, 1, 0))        # [kh, kw, Cin, Cout]
    kh, kw, ci, co = w.shape
    return w.reshape(kh * kw * ci, co)


def conv_layer(x_nhwc, w_mat, stride, pad, activation, bn=None):
    cout = w_mat.shape[1]
    p, (N, Ho, Wo) = im2col(x_nhwc.astype(jnp.bfloat16), 4, stride, pad)
    m = N * Ho * Wo
    if bn is None:
        y_pad, _, _ = conv_gemm_padded(p, w_mat, activation)
    else:
        y_pad, sums, ssqs = conv_gemm_padded(p, w_mat, "none", with_stats=True)
        y_pad = bn_apply_lrelu(y_pad, sums, ssqs, m, cout, bn[0], bn[1])
    return y_pad[:m, :cout].reshape(N, Ho, Wo, cout)


def init_params(key, nc, ndf):
    ks = jax.random.split(key, 5)

    def conv_w(k, cout, cin):
        return 0.02 * jax.random.normal(k, (cout, cin, 4, 4), jnp.float32)

    return {
        "w1": torch_weight_to_mat(conv_w(ks[0], ndf, nc)),
        "w2": torch_weight_to_mat(conv_w(ks[1], ndf * 2, ndf)),
        "w3": torch_weight_to_mat(conv_w(ks[2], ndf * 4, ndf * 2)),
        "w4": torch_weight_to_mat(conv_w(ks[3], ndf * 8, ndf * 4)),
        "w5": torch_weight_to_mat(conv_w(ks[4], 1, ndf * 8)),
        # BatchNorm2d default init: weight=1, bias=0
        "g2": jnp.ones((ndf * 2,), jnp.float32), "b2": jnp.zeros((ndf * 2,), jnp.float32),
        "g3": jnp.ones((ndf * 4,), jnp.float32), "b3": jnp.zeros((ndf * 4,), jnp.float32),
        "g4": jnp.ones((ndf * 8,), jnp.float32), "b4": jnp.zeros((ndf * 8,), jnp.float32),
    }


def discriminator_forward(x_nchw, params):
    x = jnp.transpose(x_nchw, (0, 2, 3, 1)).astype(jnp.bfloat16)  # NCHW -> NHWC

    # Conv(nc, ndf, 4, 2, 1) + LeakyReLU(0.2)
    x = conv_layer(x, params["w1"], 2, 1, "lrelu")
    # Conv(ndf, 2ndf, 4, 2, 1) + BN + LeakyReLU
    x = conv_layer(x, params["w2"], 2, 1, "none", bn=(params["g2"], params["b2"]))
    # Conv(2ndf, 4ndf, 4, 2, 1) + BN + LeakyReLU
    x = conv_layer(x, params["w3"], 2, 1, "none", bn=(params["g3"], params["b3"]))
    # Conv(4ndf, 8ndf, 4, 2, 1) + BN + LeakyReLU
    x = conv_layer(x, params["w4"], 2, 1, "none", bn=(params["g4"], params["b4"]))

    # Conv(8ndf, 1, 4, 1, 0) + Sigmoid, then .view(-1)
    p, (N, Ho, Wo) = im2col(x, 4, 1, 0)                            # Ho = Wo = 1
    y_pad, _, _ = conv_gemm_padded(p, params["w5"], "sigmoid",
                                   out_dtype=jnp.float32)          # [Mp, 128]
    return y_pad[:N * Ho * Wo, 0].reshape(-1)                      # [N]


if __name__ == "__main__":
    # Small config: nc=3, ndf=8, batch=2. Spatial must be 64 so the final
    # 4x4/stride-1/pad-0 conv reduces to 1x1 (DCGAN discriminator topology).
    key = jax.random.PRNGKey(0)
    kx, kp = jax.random.split(key)
    nc, ndf, batch, hw = 3, 8, 2, 64

    x = jax.random.normal(kx, (batch, nc, hw, hw), jnp.float32)   # NCHW input
    params = init_params(kp, nc, ndf)

    out = jax.jit(discriminator_forward)(x, params)
    out = jax.block_until_ready(out)
    assert out.shape == (batch,)
    assert bool(jnp.all(jnp.isfinite(out)))
    assert bool(jnp.all((out >= 0.0) & (out <= 1.0)))
    print("KERNEL_OK")
</pallas_src>

<mosaic_0001>
module attributes {stable_mosaic.version = 11 : i64} {
  func.func @_gemm_act_kernel(%arg0: i32, %arg1: i32, %arg2: i32, %arg3: memref<512x48xbf16, #tpu.memory_space<vmem>>, %arg4: memref<48x128xbf16, #tpu.memory_space<vmem>>, %arg5: memref<512x128xbf16, #tpu.memory_space<vmem>>, %arg6: memref<512x128xf32, #tpu.memory_space<vmem>>) attributes {dimension_semantics = [#tpu.dimension_semantics<parallel>, #tpu.dimension_semantics<parallel>, #tpu.dimension_semantics<arbitrary>], iteration_bounds = array<i64: 4, 1, 1>, scalar_prefetch = 0 : i64, scratch_operands = 1 : i64, tpu.core_type = #tpu.core_type<tc>, window_params = [{transform_indices = @transform_0, window_bounds = array<i64: 512, 48>}, {transform_indices = @transform_1, window_bounds = array<i64: 48, 128>}, {transform_indices = @transform_2, window_bounds = array<i64: 512, 128>}]} {
    %c0_i32 = arith.constant 0 : i32
    %0 = arith.cmpi eq, %arg2, %c0_i32 : i32
    %1 = arith.extui %0 : i1 to i32
    %c0_i32_0 = arith.constant 0 : i32
    %2 = arith.cmpi ne, %1, %c0_i32_0 : i32
    scf.if %2 {
      %cst_10 = arith.constant 0.000000e+00 : f32
      %12 = vector.broadcast %cst_10 : f32 to vector<512x128xf32>
      %c0_11 = arith.constant 0 : index
      %c0_12 = arith.constant 0 : index
      %13 = vector.load %arg6[%c0_11, %c0_12] : memref<512x128xf32, #tpu.memory_space<vmem>>, vector<512x128xf32>
      tpu.vector_store %arg6[%c0_11, %c0_12], %12 {strides = array<i32>} : memref<512x128xf32, #tpu.memory_space<vmem>>, vector<512x128xf32>,
    } else {
    }
    %c0 = arith.constant 0 : index
    %c0_1 = arith.constant 0 : index
    %3 = vector.load %arg6[%c0, %c0_1] : memref<512x128xf32, #tpu.memory_space<vmem>>, vector<512x128xf32>
    %c0_2 = arith.constant 0 : index
    %c0_3 = arith.constant 0 : index
    %4 = vector.load %arg3[%c0_2, %c0_3] : memref<512x48xbf16, #tpu.memory_space<vmem>>, vector<512x48xbf16>
    %c0_4 = arith.constant 0 : index
    %c0_5 = arith.constant 0 : index
    %5 = vector.load %arg4[%c0_4, %c0_5] : memref<48x128xbf16, #tpu.memory_space<vmem>>, vector<48x128xbf16>
    %cst = arith.constant dense<0.000000e+00> : vector<512x128xf32>
    %6 = tpu.matmul %4, %5, %cst {dimension_numbers = #tpu.dot_dimension_numbers<[1], [0], [0], [1], [0, 0, 1, 1], [], []>} : vector<512x48xbf16>, vector<48x128xbf16>, vector<512x128xf32> -> vector<512x128xf32>
    %7 = arith.addf %3, %6 : vector<512x128xf32>
    %c0_6 = arith.constant 0 : index
    %c0_7 = arith.constant 0 : index
    %8 = vector.load %arg6[%c0_6, %c0_7] : memref<512x128xf32, #tpu.memory_space<vmem>>, vector<512x128xf32>
    tpu.vector_store %arg6[%c0_6, %c0_7], %7 {strides = array<i32>} : memref<512x128xf32, #tpu.memory_space<vmem>>, vector<512x128xf32>,
    %c0_i32_8 = arith.constant 0 : i32
    %9 = arith.cmpi eq, %arg2, %c0_i32_8 : i32
    %10 = arith.extui %9 : i1 to i32
    %c0_i32_9 = arith.constant 0 : i32
    %11 = arith.cmpi ne, %10, %c0_i32_9 : i32
    scf.if %11 {
      %c0_10 = arith.constant 0 : index
      %c0_11 = arith.constant 0 : index
      %12 = vector.load %arg6[%c0_10, %c0_11] : memref<512x128xf32, #tpu.memory_space<vmem>>, vector<512x128xf32>
      %cst_12 = arith.constant 0.000000e+00 : f32
      %13 = vector.broadcast %cst_12 : f32 to vector<512x128xf32>
      %14 = arith.cmpf ogt, %12, %13 : vector<512x128xf32>
      %cst_13 = arith.constant 2.000000e-01 : f32
      %15 = vector.broadcast %cst_13 : f32 to vector<512x128xf32>
      %16 = arith.mulf %15, %12 : vector<512x128xf32>
      %17 = arith.select %14, %12, %16 : vector<512x128xi1>, vector<512x128xf32>
      %18 = arith.truncf %17 : vector<512x128xf32> to vector<512x128xbf16>
      %c0_14 = arith.constant 0 : index
      %c0_15 = arith.constant 0 : index
      %19 = vector.load %arg5[%c0_14, %c0_15] : memref<512x128xbf16, #tpu.memory_space<vmem>>, vector<512x128xbf16>
      tpu.vector_store %arg5[%c0_14, %c0_15], %18 {strides = array<i32>} : memref<512x128xbf16, #tpu.memory_space<vmem>>, vector<512x128xbf16>,
    } else {
    }
    return
  }
  func.func @transform_0(%arg0: i32, %arg1: i32, %arg2: i32) -> (i32, i32) {
    %c0_i32 = arith.constant 0 : i32
    return %arg0, %arg2 : i32, i32
  }
  func.func @transform_1(%arg0: i32, %arg1: i32, %arg2: i32) -> (i32, i32) {
    %c0_i32 = arith.constant 0 : i32
    return %arg2, %arg1 : i32, i32
  }
  func.func @transform_2(%arg0: i32, %arg1: i32, %arg2: i32) -> (i32, i32) {
    %c0_i32 = arith.constant 0 : i32
    return %arg0, %arg1 : i32, i32
  }
}

module attributes {stable_mosaic.version = 11 : i64} {
  func.func @_gemm_stats_kernel(%arg0: i32, %arg1: i32, %arg2: i32, %arg3: memref<512x128xbf16, #tpu.memory_space<vmem>>, %arg4: memref<128x128xbf16, #tpu.memory_space<vmem>>, %arg5: memref<512x128xbf16, #tpu.memory_space<vmem>>, %arg6: memref<8x128xf32, #tpu.memory_space<vmem>>, %arg7: memref<8x128xf32, #tpu.memory_space<vmem>>, %arg8: memref<512x128xf32, #tpu.memory_space<vmem>>) attributes {dimension_semantics = [#tpu.dimension_semantics<parallel>, #tpu.dimension_semantics<parallel>, #tpu.dimension_semantics<arbitrary>], iteration_bounds = array<i64: 1, 1, 1>, scalar_prefetch = 0 : i64, scratch_operands = 1 : i64, tpu.core_type = #tpu.core_type<tc>, window_params = [{transform_indices = @transform_0, window_bounds = array<i64: 512, 128>}, {transform_indices = @transform_1, window_bounds = array<i64: 128, 128>}, {transform_indices = @transform_2, window_bounds = array<i64: 512, 128>}, {transform_indices = @transform_3, window_bounds = array<i64: 8, 128>}, {transform_indices = @transform_4, window_bounds = array<i64: 8, 128>}]} {
    %c0_i32 = arith.constant 0 : i32
    %0 = arith.cmpi eq, %arg2, %c0_i32 : i32
    %1 = arith.extui %0 : i1 to i32
    %c0_i32_0 = arith.constant 0 : i32
    %2 = arith.cmpi ne, %1, %c0_i32_0 : i32
    scf.if %2 {
      %cst_10 = arith.constant 0.000000e+00 : f32
      %12 = vector.broadcast %cst_10 : f32 to vector<512x128xf32>
      %c0_11 = arith.constant 0 : index
      %c0_12 = arith.constant 0 : index
      %13 = vector.load %arg8[%c0_11, %c0_12] : memref<512x128xf32, #tpu.memory_space<vmem>>, vector<512x128xf32>
      tpu.vector_store %arg8[%c0_11, %c0_12], %12 {strides = array<i32>} : memref<512x128xf32, #tpu.memory_space<vmem>>, vector<512x128xf32>,
    } else {
    }
    %c0 = arith.constant 0 : index
    %c0_1 = arith.constant 0 : index
    %3 = vector.load %arg8[%c0, %c0_1] : memref<512x128xf32, #tpu.memory_space<vmem>>, vector<512x128xf32>
    %c0_2 = arith.constant 0 : index
    %c0_3 = arith.constant 0 : index
    %4 = vector.load %arg3[%c0_2, %c0_3] : memref<512x128xbf16, #tpu.memory_space<vmem>>, vector<512x128xbf16>
    %c0_4 = arith.constant 0 : index
    %c0_5 = arith.constant 0 : index
    %5 = vector.load %arg4[%c0_4, %c0_5] : memref<128x128xbf16, #tpu.memory_space<vmem>>, vector<128x128xbf16>
    %cst = arith.constant dense<0.000000e+00> : vector<512x128xf32>
    %6 = tpu.matmul %4, %5, %cst {dimension_numbers = #tpu.dot_dimension_numbers<[1], [0], [0], [1], [0, 0, 1, 1], [], []>} : vector<512x128xbf16>, vector<128x128xbf16>, vector<512x128xf32> -> vector<512x128xf32>
    %7 = arith.addf %3, %6 : vector<512x128xf32>
    %c0_6 = arith.constant 0 : index
    %c0_7 = arith.constant 0 : index
    %8 = vector.load %arg8[%c0_6, %c0_7] : memref<512x128xf32, #tpu.memory_space<vmem>>, vector<512x128xf32>
    tpu.vector_store %arg8[%c0_6, %c0_7], %7 {strides = array<i32>} : memref<512x128xf32, #tpu.memory_space<vmem>>, vector<512x128xf32>,
    %c0_i32_8 = arith.constant 0 : i32
    %9 = arith.cmpi eq, %arg2, %c0_i32_8 : i32
    %10 = arith.extui %9 : i1 to i32
    %c0_i32_9 = arith.constant 0 : i32
    %11 = arith.cmpi ne, %10, %c0_i32_9 : i32
    scf.if %11 {
      %c0_10 = arith.constant 0 : index
      %c0_11 = arith.constant 0 : index
      %12 = vector.load %arg8[%c0_10, %c0_11] : memref<512x128xf32, #tpu.memory_space<vmem>>, vector<512x128xf32>
      %13 = arith.truncf %12 : vector<512x128xf32> to vector<512x128xbf16>
      %c0_12 = arith.constant 0 : index
      %c0_13 = arith.constant 0 : index
      %14 = vector.load %arg5[%c0_12, %c0_13] : memref<512x128xbf16, #tpu.memory_space<vmem>>, vector<512x128xbf16>
      tpu.vector_store %arg5[%c0_12, %c0_13], %13 {strides = array<i32>} : memref<512x128xbf16, #tpu.memory_space<vmem>>, vector<512x128xbf16>,
      %cst_14 = arith.constant dense<0.000000e+00> : vector<128xf32>
      %15 = vector.multi_reduction <add>, %12, %cst_14 [0] : vector<512x128xf32> to vector<128xf32>
      %16 = vector.shape_cast %15 : vector<128xf32> to vector<1x128xf32>
      %17 = arith.mulf %12, %12 : vector<512x128xf32>
      %cst_15 = arith.constant dense<0.000000e+00> : vector<128xf32>
      %18 = vector.multi_reduction <add>, %17, %cst_15 [0] : vector<512x128xf32> to vector<128xf32>
      %19 = vector.shape_cast %18 : vector<128xf32> to vector<1x128xf32>
      %20 = vector.shape_cast %16 : vector<1x128xf32> to vector<1x128xf32>
      %21 = vector.broadcast %20 : vector<1x128xf32> to vector<8x128xf32>
      %c0_16 = arith.constant 0 : index
      %c0_17 = arith.constant 0 : index
      %22 = vector.load %arg6[%c0_16, %c0_17] : memref<8x128xf32, #tpu.memory_space<vmem>>, vector<8x128xf32>
      tpu.vector_store %arg6[%c0_16, %c0_17], %21 {strides = array<i32>} : memref<8x128xf32, #tpu.memory_space<vmem>>, vector<8x128xf32>,
      %23 = vector.shape_cast %19 : vector<1x128xf32> to vector<1x128xf32>
      %24 = vector.broadcast %23 : vector<1x128xf32> to vector<8x128xf32>
      %c0_18 = arith.constant 0 : index
      %c0_19 = arith.constant 0 : index
      %25 = vector.load %arg7[%c0_18, %c0_19] : memref<8x128xf32, #tpu.memory_space<vmem>>, vector<8x128xf32>
      tpu.vector_store %arg7[%c0_18, %c0_19], %24 {strides = array<i32>} : memref<8x128xf32, #tpu.memory_space<vmem>>, vector<8x128xf32>,
    } else {
    }
    return
  }
  func.func @transform_0(%arg0: i32, %arg1: i32, %arg2: i32) -> (i32, i32) {
    %c0_i32 = arith.constant 0 : i32
    return %arg0, %arg2 : i32, i32
  }
  func.func @transform_1(%arg0: i32, %arg1: i32, %arg2: i32) -> (i32, i32) {
    %c0_i32 = arith.constant 0 : i32
    return %arg2, %arg1 : i32, i32
  }
  func.func @transform_2(%arg0: i32, %arg1: i32, %arg2: i32) -> (i32, i32) {
    %c0_i32 = arith.constant 0 : i32
    return %arg0, %arg1 : i32, i32
  }
  func.func @transform_3(%arg0: i32, %arg1: i32, %arg2: i32) -> (i32, i32) {
    %c0_i32 = arith.constant 0 : i32
    return %arg0, %arg1 : i32, i32
  }
  func.func @transform_4(%arg0: i32, %arg1: i32, %arg2: i32) -> (i32, i32) {
    %c0_i32 = arith.constant 0 : i32
    return %arg0, %arg1 : i32, i32
  }
}

module attributes {stable_mosaic.version = 11 : i64} {
  func.func @_bn_apply_lrelu_kernel(%arg0: i32, %arg1: memref<512x128xbf16, #tpu.memory_space<vmem>>, %arg2: memref<1x128xf32, #tpu.memory_space<vmem>>, %arg3: memref<1x128xf32, #tpu.memory_space<vmem>>, %arg4: memref<1x128xf32, #tpu.memory_space<vmem>>, %arg5: memref<1x128xf32, #tpu.memory_space<vmem>>, %arg6: memref<512x128xbf16, #tpu.memory_space<vmem>>) attributes {dimension_semantics = [#tpu.dimension_semantics<parallel>], iteration_bounds = array<i64: 1>, scalar_prefetch = 0 : i64, scratch_operands = 0 : i64, tpu.core_type = #tpu.core_type<tc>, window_params = [{transform_indices = @transform_0, window_bounds = array<i64: 512, 128>}, {pipeline_mode = #tpu.pipeline_mode<synchronous>, transform_indices = @transform_1, window_bounds = array<i64: 1, 128>}, {pipeline_mode = #tpu.pipeline_mode<synchronous>, transform_indices = @transform_2, window_bounds = array<i64: 1, 128>}, {pipeline_mode = #tpu.pipeline_mode<synchronous>, transform_indices = @transform_3, window_bounds = array<i64: 1, 128>}, {pipeline_mode = #tpu.pipeline_mode<synchronous>, transform_indices = @transform_4, window_bounds = array<i64: 1, 128>}, {transform_indices = @transform_5, window_bounds = array<i64: 512, 128>}]} {
    %c0 = arith.constant 0 : index
    %c0_0 = arith.constant 0 : index
    %0 = vector.load %arg2[%c0, %c0_0] : memref<1x128xf32, #tpu.memory_space<vmem>>, vector<1x128xf32>
    %cst = arith.constant 0.001953125 : f32
    %1 = vector.broadcast %cst : f32 to vector<1x128xf32>
    %2 = arith.mulf %0, %1 : vector<1x128xf32>
    %c0_1 = arith.constant 0 : index
    %c0_2 = arith.constant 0 : index
    %3 = vector.load %arg3[%c0_1, %c0_2] : memref<1x128xf32, #tpu.memory_space<vmem>>, vector<1x128xf32>
    %cst_3 = arith.constant 0.001953125 : f32
    %4 = vector.broadcast %cst_3 : f32 to vector<1x128xf32>
    %5 = arith.mulf %3, %4 : vector<1x128xf32>
    %6 = arith.mulf %2, %2 : vector<1x128xf32>
    %7 = arith.subf %5, %6 : vector<1x128xf32>
    %cst_4 = arith.constant 0.000000e+00 : f32
    %8 = vector.broadcast %cst_4 : f32 to vector<1x128xf32>
    %9 = arith.maximumf %7, %8 : vector<1x128xf32>
    %c0_5 = arith.constant 0 : index
    %c0_6 = arith.constant 0 : index
    %10 = vector.load %arg4[%c0_5, %c0_6] : memref<1x128xf32, #tpu.memory_space<vmem>>, vector<1x128xf32>
    %cst_7 = arith.constant 9.99999974E-6 : f32
    %11 = vector.broadcast %cst_7 : f32 to vector<1x128xf32>
    %12 = arith.addf %9, %11 : vector<1x128xf32>
    %13 = math.rsqrt %12 : vector<1x128xf32>
    %14 = arith.mulf %10, %13 : vector<1x128xf32>
    %c0_8 = arith.constant 0 : index
    %c0_9 = arith.constant 0 : index
    %15 = vector.load %arg5[%c0_8, %c0_9] : memref<1x128xf32, #tpu.memory_space<vmem>>, vector<1x128xf32>
    %16 = arith.mulf %2, %14 : vector<1x128xf32>
    %17 = arith.subf %15, %16 : vector<1x128xf32>
    %c0_10 = arith.constant 0 : index
    %c0_11 = arith.constant 0 : index
    %18 = vector.load %arg1[%c0_10, %c0_11] : memref<512x128xbf16, #tpu.memory_space<vmem>>, vector<512x128xbf16>
    %19 = arith.extf %18 : vector<512x128xbf16> to vector<512x128xf32>
    %20 = vector.broadcast %14 : vector<1x128xf32> to vector<512x128xf32>
    %21 = arith.mulf %19, %20 : vector<512x128xf32>
    %22 = vector.broadcast %17 : vector<1x128xf32> to vector<512x128xf32>
    %23 = arith.addf %21, %22 : vector<512x128xf32>
    %cst_12 = arith.constant 0.000000e+00 : f32
    %24 = vector.broadcast %cst_12 : f32 to vector<512x128xf32>
    %25 = arith.cmpf ogt, %23, %24 : vector<512x128xf32>
    %cst_13 = arith.constant 2.000000e-01 : f32
    %26 = vector.broadcast %cst_13 : f32 to vector<512x128xf32>
    %27 = arith.mulf %26, %23 : vector<512x128xf32>
    %28 = arith.select %25, %23, %27 : vector<512x128xi1>, vector<512x128xf32>
    %29 = arith.truncf %28 : vector<512x128xf32> to vector<512x128xbf16>
    %c0_14 = arith.constant 0 : index
    %c0_15 = arith.constant 0 : index
    %30 = vector.load %arg6[%c0_14, %c0_15] : memref<512x128xbf16, #tpu.memory_space<vmem>>, vector<512x128xbf16>
    tpu.vector_store %arg6[%c0_14, %c0_15], %29 {strides = array<i32>} : memref<512x128xbf16, #tpu.memory_space<vmem>>, vector<512x128xbf16>,
    return
  }
  func.func @transform_0(%arg0: i32) -> (i32, i32) {
    %c0_i32 = arith.constant 0 : i32
    %c0_i32_0 = arith.constant 0 : i32
    return %arg0, %c0_i32 : i32, i32
  }
  func.func @transform_1(%arg0: i32) -> (i32, i32) {
    %c0_i32 = arith.constant 0 : i32
    %c0_i32_0 = arith.constant 0 : i32
    %c0_i32_1 = arith.constant 0 : i32
    return %c0_i32, %c0_i32_0 : i32, i32
  }
  func.func @transform_2(%arg0: i32) -> (i32, i32) {
    %c0_i32 = arith.constant 0 : i32
    %c0_i32_0 = arith.constant 0 : i32
    %c0_i32_1 = arith.constant 0 : i32
    return %c0_i32, %c0_i32_0 : i32, i32
  }
  func.func @transform_3(%arg0: i32) -> (i32, i32) {
    %c0_i32 = arith.constant 0 : i32
    %c0_i32_0 = arith.constant 0 : i32
    %c0_i32_1 = arith.constant 0 : i32
    return %c0_i32, %c0_i32_0 : i32, i32
  }
  func.func @transform_4(%arg0: i32) -> (i32, i32) {
    %c0_i32 = arith.constant 0 : i32
    %c0_i32_0 = arith.constant 0 : i32
    %c0_i32_1 = arith.constant 0 : i32
    return %c0_i32, %c0_i32_0 : i32, i32
  }
  func.func @transform_5(%arg0: i32) -> (i32, i32) {
    %c0_i32 = arith.constant 0 : i32
    %c0_i32_0 = arith.constant 0 : i32
    return %arg0, %c0_i32 : i32, i32
  }
}

module attributes {stable_mosaic.version = 11 : i64} {
  func.func @_gemm_stats_kernel(%arg0: i32, %arg1: i32, %arg2: i32, %arg3: memref<128x256xbf16, #tpu.memory_space<vmem>>, %arg4: memref<256x128xbf16, #tpu.memory_space<vmem>>, %arg5: memref<128x128xbf16, #tpu.memory_space<vmem>>, %arg6: memref<8x128xf32, #tpu.memory_space<vmem>>, %arg7: memref<8x128xf32, #tpu.memory_space<vmem>>, %arg8: memref<128x128xf32, #tpu.memory_space<vmem>>) attributes {dimension_semantics = [#tpu.dimension_semantics<parallel>, #tpu.dimension_semantics<parallel>, #tpu.dimension_semantics<arbitrary>], iteration_bounds = array<i64: 1, 1, 1>, scalar_prefetch = 0 : i64, scratch_operands = 1 : i64, tpu.core_type = #tpu.core_type<tc>, window_params = [{transform_indices = @transform_0, window_bounds = array<i64: 128, 256>}, {transform_indices = @transform_1, window_bounds = array<i64: 256, 128>}, {transform_indices = @transform_2, window_bounds = array<i64: 128, 128>}, {transform_indices = @transform_3, window_bounds = array<i64: 8, 128>}, {transform_indices = @transform_4, window_bounds = array<i64: 8, 128>}]} {
    %c0_i32 = arith.constant 0 : i32
    %0 = arith.cmpi eq, %arg2, %c0_i32 : i32
    %1 = arith.extui %0 : i1 to i32
    %c0_i32_0 = arith.constant 0 : i32
    %2 = arith.cmpi ne, %1, %c0_i32_0 : i32
    scf.if %2 {
      %cst_10 = arith.constant 0.000000e+00 : f32
      %12 = vector.broadcast %cst_10 : f32 to vector<128x128xf32>
      %c0_11 = arith.constant 0 : index
      %c0_12 = arith.constant 0 : index
      %13 = vector.load %arg8[%c0_11, %c0_12] : memref<128x128xf32, #tpu.memory_space<vmem>>, vector<128x128xf32>
      tpu.vector_store %arg8[%c0_11, %c0_12], %12 {strides = array<i32>} : memref<128x128xf32, #tpu.memory_space<vmem>>, vector<128x128xf32>,
    } else {
    }
    %c0 = arith.constant 0 : index
    %c0_1 = arith.constant 0 : index
    %3 = vector.load %arg8[%c0, %c0_1] : memref<128x128xf32, #tpu.memory_space<vmem>>, vector<128x128xf32>
    %c0_2 = arith.constant 0 : index
    %c0_3 = arith.constant 0 : index
    %4 = vector.load %arg3[%c0_2, %c0_3] : memref<128x256xbf16, #tpu.memory_space<vmem>>, vector<128x256xbf16>
    %c0_4 = arith.constant 0 : index
    %c0_5 = arith.constant 0 : index
    %5 = vector.load %arg4[%c0_4, %c0_5] : memref<256x128xbf16, #tpu.memory_space<vmem>>, vector<256x128xbf16>
    %cst = arith.constant dense<0.000000e+00> : vector<128x128xf32>
    %6 = tpu.matmul %4, %5, %cst {dimension_numbers = #tpu.dot_dimension_numbers<[1], [0], [0], [1], [0, 0, 1, 1], [], []>} : vector<128x256xbf16>, vector<256x128xbf16>, vector<128x128xf32> -> vector<128x128xf32>
    %7 = arith.addf %3, %6 : vector<128x128xf32>
    %c0_6 = arith.constant 0 : index
    %c0_7 = arith.constant 0 : index
    %8 = vector.load %arg8[%c0_6, %c0_7] : memref<128x128xf32, #tpu.memory_space<vmem>>, vector<128x128xf32>
    tpu.vector_store %arg8[%c0_6, %c0_7], %7 {strides = array<i32>} : memref<128x128xf32, #tpu.memory_space<vmem>>, vector<128x128xf32>,
    %c0_i32_8 = arith.constant 0 : i32
    %9 = arith.cmpi eq, %arg2, %c0_i32_8 : i32
    %10 = arith.extui %9 : i1 to i32
    %c0_i32_9 = arith.constant 0 : i32
    %11 = arith.cmpi ne, %10, %c0_i32_9 : i32
    scf.if %11 {
      %c0_10 = arith.constant 0 : index
      %c0_11 = arith.constant 0 : index
      %12 = vector.load %arg8[%c0_10, %c0_11] : memref<128x128xf32, #tpu.memory_space<vmem>>, vector<128x128xf32>
      %13 = arith.truncf %12 : vector<128x128xf32> to vector<128x128xbf16>
      %c0_12 = arith.constant 0 : index
      %c0_13 = arith.constant 0 : index
      %14 = vector.load %arg5[%c0_12, %c0_13] : memref<128x128xbf16, #tpu.memory_space<vmem>>, vector<128x128xbf16>
      tpu.vector_store %arg5[%c0_12, %c0_13], %13 {strides = array<i32>} : memref<128x128xbf16, #tpu.memory_space<vmem>>, vector<128x128xbf16>,
      %cst_14 = arith.constant dense<0.000000e+00> : vector<128xf32>
      %15 = vector.multi_reduction <add>, %12, %cst_14 [0] : vector<128x128xf32> to vector<128xf32>
      %16 = vector.shape_cast %15 : vector<128xf32> to vector<1x128xf32>
      %17 = arith.mulf %12, %12 : vector<128x128xf32>
      %cst_15 = arith.constant dense<0.000000e+00> : vector<128xf32>
      %18 = vector.multi_reduction <add>, %17, %cst_15 [0] : vector<128x128xf32> to vector<128xf32>
      %19 = vector.shape_cast %18 : vector<128xf32> to vector<1x128xf32>
      %20 = vector.shape_cast %16 : vector<1x128xf32> to vector<1x128xf32>
      %21 = vector.broadcast %20 : vector<1x128xf32> to vector<8x128xf32>
      %c0_16 = arith.constant 0 : index
      %c0_17 = arith.constant 0 : index
      %22 = vector.load %arg6[%c0_16, %c0_17] : memref<8x128xf32, #tpu.memory_space<vmem>>, vector<8x128xf32>
      tpu.vector_store %arg6[%c0_16, %c0_17], %21 {strides = array<i32>} : memref<8x128xf32, #tpu.memory_space<vmem>>, vector<8x128xf32>,
      %23 = vector.shape_cast %19 : vector<1x128xf32> to vector<1x128xf32>
      %24 = vector.broadcast %23 : vector<1x128xf32> to vector<8x128xf32>
      %c0_18 = arith.constant 0 : index
      %c0_19 = arith.constant 0 : index
      %25 = vector.load %arg7[%c0_18, %c0_19] : memref<8x128xf32, #tpu.memory_space<vmem>>, vector<8x128xf32>
      tpu.vector_store %arg7[%c0_18, %c0_19], %24 {strides = array<i32>} : memref<8x128xf32, #tpu.memory_space<vmem>>, vector<8x128xf32>,
    } else {
    }
    return
  }
  func.func @transform_0(%arg0: i32, %arg1: i32, %arg2: i32) -> (i32, i32) {
    %c0_i32 = arith.constant 0 : i32
    return %arg0, %arg2 : i32, i32
  }
  func.func @transform_1(%arg0: i32, %arg1: i32, %arg2: i32) -> (i32, i32) {
    %c0_i32 = arith.constant 0 : i32
    return %arg2, %arg1 : i32, i32
  }
  func.func @transform_2(%arg0: i32, %arg1: i32, %arg2: i32) -> (i32, i32) {
    %c0_i32 = arith.constant 0 : i32
    return %arg0, %arg1 : i32, i32
  }
  func.func @transform_3(%arg0: i32, %arg1: i32, %arg2: i32) -> (i32, i32) {
    %c0_i32 = arith.constant 0 : i32
    return %arg0, %arg1 : i32, i32
  }
  func.func @transform_4(%arg0: i32, %arg1: i32, %arg2: i32) -> (i32, i32) {
    %c0_i32 = arith.constant 0 : i32
    return %arg0, %arg1 : i32, i32
  }
}

module attributes {stable_mosaic.version = 11 : i64} {
  func.func @_bn_apply_lrelu_kernel(%arg0: i32, %arg1: memref<128x128xbf16, #tpu.memory_space<vmem>>, %arg2: memref<1x128xf32, #tpu.memory_space<vmem>>, %arg3: memref<1x128xf32, #tpu.memory_space<vmem>>, %arg4: memref<1x128xf32, #tpu.memory_space<vmem>>, %arg5: memref<1x128xf32, #tpu.memory_space<vmem>>, %arg6: memref<128x128xbf16, #tpu.memory_space<vmem>>) attributes {dimension_semantics = [#tpu.dimension_semantics<parallel>], iteration_bounds = array<i64: 1>, scalar_prefetch = 0 : i64, scratch_operands = 0 : i64, tpu.core_type = #tpu.core_type<tc>, window_params = [{transform_indices = @transform_0, window_bounds = array<i64: 128, 128>}, {pipeline_mode = #tpu.pipeline_mode<synchronous>, transform_indices = @transform_1, window_bounds = array<i64: 1, 128>}, {pipeline_mode = #tpu.pipeline_mode<synchronous>, transform_indices = @transform_2, window_bounds = array<i64: 1, 128>}, {pipeline_mode = #tpu.pipeline_mode<synchronous>, transform_indices = @transform_3, window_bounds = array<i64: 1, 128>}, {pipeline_mode = #tpu.pipeline_mode<synchronous>, transform_indices = @transform_4, window_bounds = array<i64: 1, 128>}, {transform_indices = @transform_5, window_bounds = array<i64: 128, 128>}]} {
    %c0 = arith.constant 0 : index
    %c0_0 = arith.constant 0 : index
    %0 = vector.load %arg2[%c0, %c0_0] : memref<1x128xf32, #tpu.memory_space<vmem>>, vector<1x128xf32>
    %cst = arith.constant 7.812500e-03 : f32
    %1 = vector.broadcast %cst : f32 to vector<1x128xf32>
    %2 = arith.mulf %0, %1 : vector<1x128xf32>
    %c0_1 = arith.constant 0 : index
    %c0_2 = arith.constant 0 : index
    %3 = vector.load %arg3[%c0_1, %c0_2] : memref<1x128xf32, #tpu.memory_space<vmem>>, vector<1x128xf32>
    %cst_3 = arith.constant 7.812500e-03 : f32
    %4 = vector.broadcast %cst_3 : f32 to vector<1x128xf32>
    %5 = arith.mulf %3, %4 : vector<1x128xf32>
    %6 = arith.mulf %2, %2 : vector<1x128xf32>
    %7 = arith.subf %5, %6 : vector<1x128xf32>
    %cst_4 = arith.constant 0.000000e+00 : f32
    %8 = vector.broadcast %cst_4 : f32 to vector<1x128xf32>
    %9 = arith.maximumf %7, %8 : vector<1x128xf32>
    %c0_5 = arith.constant 0 : index
    %c0_6 = arith.constant 0 : index
    %10 = vector.load %arg4[%c0_5, %c0_6] : memref<1x128xf32, #tpu.memory_space<vmem>>, vector<1x128xf32>
    %cst_7 = arith.constant 9.99999974E-6 : f32
    %11 = vector.broadcast %cst_7 : f32 to vector<1x128xf32>
    %12 = arith.addf %9, %11 : vector<1x128xf32>
    %13 = math.rsqrt %12 : vector<1x128xf32>
    %14 = arith.mulf %10, %13 : vector<1x128xf32>
    %c0_8 = arith.constant 0 : index
    %c0_9 = arith.constant 0 : index
    %15 = vector.load %arg5[%c0_8, %c0_9] : memref<1x128xf32, #tpu.memory_space<vmem>>, vector<1x128xf32>
    %16 = arith.mulf %2, %14 : vector<1x128xf32>
    %17 = arith.subf %15, %16 : vector<1x128xf32>
    %c0_10 = arith.constant 0 : index
    %c0_11 = arith.constant 0 : index
    %18 = vector.load %arg1[%c0_10, %c0_11] : memref<128x128xbf16, #tpu.memory_space<vmem>>, vector<128x128xbf16>
    %19 = arith.extf %18 : vector<128x128xbf16> to vector<128x128xf32>
    %20 = vector.broadcast %14 : vector<1x128xf32> to vector<128x128xf32>
    %21 = arith.mulf %19, %20 : vector<128x128xf32>
    %22 = vector.broadcast %17 : vector<1x128xf32> to vector<128x128xf32>
    %23 = arith.addf %21, %22 : vector<128x128xf32>
    %cst_12 = arith.constant 0.000000e+00 : f32
    %24 = vector.broadcast %cst_12 : f32 to vector<128x128xf32>
    %25 = arith.cmpf ogt, %23, %24 : vector<128x128xf32>
    %cst_13 = arith.constant 2.000000e-01 : f32
    %26 = vector.broadcast %cst_13 : f32 to vector<128x128xf32>
    %27 = arith.mulf %26, %23 : vector<128x128xf32>
    %28 = arith.select %25, %23, %27 : vector<128x128xi1>, vector<128x128xf32>
    %29 = arith.truncf %28 : vector<128x128xf32> to vector<128x128xbf16>
    %c0_14 = arith.constant 0 : index
    %c0_15 = arith.constant 0 : index
    %30 = vector.load %arg6[%c0_14, %c0_15] : memref<128x128xbf16, #tpu.memory_space<vmem>>, vector<128x128xbf16>
    tpu.vector_store %arg6[%c0_14, %c0_15], %29 {strides = array<i32>} : memref<128x128xbf16, #tpu.memory_space<vmem>>, vector<128x128xbf16>,
    return
  }
  func.func @transform_0(%arg0: i32) -> (i32, i32) {
    %c0_i32 = arith.constant 0 : i32
    %c0_i32_0 = arith.constant 0 : i32
    return %arg0, %c0_i32 : i32, i32
  }
  func.func @transform_1(%arg0: i32) -> (i32, i32) {
    %c0_i32 = arith.constant 0 : i32
    %c0_i32_0 = arith.constant 0 : i32
    %c0_i32_1 = arith.constant 0 : i32
    return %c0_i32, %c0_i32_0 : i32, i32
  }
  func.func @transform_2(%arg0: i32) -> (i32, i32) {
    %c0_i32 = arith.constant 0 : i32
    %c0_i32_0 = arith.constant 0 : i32
    %c0_i32_1 = arith.constant 0 : i32
    return %c0_i32, %c0_i32_0 : i32, i32
  }
  func.func @transform_3(%arg0: i32) -> (i32, i32) {
    %c0_i32 = arith.constant 0 : i32
    %c0_i32_0 = arith.constant 0 : i32
    %c0_i32_1 = arith.constant 0 : i32
    return %c0_i32, %c0_i32_0 : i32, i32
  }
  func.func @transform_4(%arg0: i32) -> (i32, i32) {
    %c0_i32 = arith.constant 0 : i32
    %c0_i32_0 = arith.constant 0 : i32
    %c0_i32_1 = arith.constant 0 : i32
    return %c0_i32, %c0_i32_0 : i32, i32
  }
  func.func @transform_5(%arg0: i32) -> (i32, i32) {
    %c0_i32 = arith.constant 0 : i32
    %c0_i32_0 = arith.constant 0 : i32
    return %arg0, %c0_i32 : i32, i32
  }
}

module attributes {stable_mosaic.version = 11 : i64} {
  func.func @_gemm_stats_kernel(%arg0: i32, %arg1: i32, %arg2: i32, %arg3: memref<32x512xbf16, #tpu.memory_space<vmem>>, %arg4: memref<512x128xbf16, #tpu.memory_space<vmem>>, %arg5: memref<32x128xbf16, #tpu.memory_space<vmem>>, %arg6: memref<8x128xf32, #tpu.memory_space<vmem>>, %arg7: memref<8x128xf32, #tpu.memory_space<vmem>>, %arg8: memref<32x128xf32, #tpu.memory_space<vmem>>) attributes {dimension_semantics = [#tpu.dimension_semantics<parallel>, #tpu.dimension_semantics<parallel>, #tpu.dimension_semantics<arbitrary>], iteration_bounds = array<i64: 1, 1, 1>, scalar_prefetch = 0 : i64, scratch_operands = 1 : i64, tpu.core_type = #tpu.core_type<tc>, window_params = [{transform_indices = @transform_0, window_bounds = array<i64: 32, 512>}, {transform_indices = @transform_1, window_bounds = array<i64: 512, 128>}, {transform_indices = @transform_2, window_bounds = array<i64: 32, 128>}, {transform_indices = @transform_3, window_bounds = array<i64: 8, 128>}, {transform_indices = @transform_4, window_bounds = array<i64: 8, 128>}]} {
    %c0_i32 = arith.constant 0 : i32
    %0 = arith.cmpi eq, %arg2, %c0_i32 : i32
    %1 = arith.extui %0 : i1 to i32
    %c0_i32_0 = arith.constant 0 : i32
    %2 = arith.cmpi ne, %1, %c0_i32_0 : i32
    scf.if %2 {
      %cst_10 = arith.constant 0.000000e+00 : f32
      %12 = vector.broadcast %cst_10 : f32 to vector<32x128xf32>
      %c0_11 = arith.constant 0 : index
      %c0_12 = arith.constant 0 : index
      %13 = vector.load %arg8[%c0_11, %c0_12] : memref<32x128xf32, #tpu.memory_space<vmem>>, vector<32x128xf32>
      tpu.vector_store %arg8[%c0_11, %c0_12], %12 {strides = array<i32>} : memref<32x128xf32, #tpu.memory_space<vmem>>, vector<32x128xf32>,
    } else {
    }
    %c0 = arith.constant 0 : index
    %c0_1 = arith.constant 0 : index
    %3 = vector.load %arg8[%c0, %c0_1] : memref<32x128xf32, #tpu.memory_space<vmem>>, vector<32x128xf32>
    %c0_2 = arith.constant 0 : index
    %c0_3 = arith.constant 0 : index
    %4 = vector.load %arg3[%c0_2, %c0_3] : memref<32x512xbf16, #tpu.memory_space<vmem>>, vector<32x512xbf16>
    %c0_4 = arith.constant 0 : index
    %c0_5 = arith.constant 0 : index
    %5 = vector.load %arg4[%c0_4, %c0_5] : memref<512x128xbf16, #tpu.memory_space<vmem>>, vector<512x128xbf16>
    %cst = arith.constant dense<0.000000e+00> : vector<32x128xf32>
    %6 = tpu.matmul %4, %5, %cst {dimension_numbers = #tpu.dot_dimension_numbers<[1], [0], [0], [1], [0, 0, 1, 1], [], []>} : vector<32x512xbf16>, vector<512x128xbf16>, vector<32x128xf32> -> vector<32x128xf32>
    %7 = arith.addf %3, %6 : vector<32x128xf32>
    %c0_6 = arith.constant 0 : index
    %c0_7 = arith.constant 0 : index
    %8 = vector.load %arg8[%c0_6, %c0_7] : memref<32x128xf32, #tpu.memory_space<vmem>>, vector<32x128xf32>
    tpu.vector_store %arg8[%c0_6, %c0_7], %7 {strides = array<i32>} : memref<32x128xf32, #tpu.memory_space<vmem>>, vector<32x128xf32>,
    %c0_i32_8 = arith.constant 0 : i32
    %9 = arith.cmpi eq, %arg2, %c0_i32_8 : i32
    %10 = arith.extui %9 : i1 to i32
    %c0_i32_9 = arith.constant 0 : i32
    %11 = arith.cmpi ne, %10, %c0_i32_9 : i32
    scf.if %11 {
      %c0_10 = arith.constant 0 : index
      %c0_11 = arith.constant 0 : index
      %12 = vector.load %arg8[%c0_10, %c0_11] : memref<32x128xf32, #tpu.memory_space<vmem>>, vector<32x128xf32>
      %13 = arith.truncf %12 : vector<32x128xf32> to vector<32x128xbf16>
      %c0_12 = arith.constant 0 : index
      %c0_13 = arith.constant 0 : index
      %14 = vector.load %arg5[%c0_12, %c0_13] : memref<32x128xbf16, #tpu.memory_space<vmem>>, vector<32x128xbf16>
      tpu.vector_store %arg5[%c0_12, %c0_13], %13 {strides = array<i32>} : memref<32x128xbf16, #tpu.memory_space<vmem>>, vector<32x128xbf16>,
      %cst_14 = arith.constant dense<0.000000e+00> : vector<128xf32>
      %15 = vector.multi_reduction <add>, %12, %cst_14 [0] : vector<32x128xf32> to vector<128xf32>
      %16 = vector.shape_cast %15 : vector<128xf32> to vector<1x128xf32>
      %17 = arith.mulf %12, %12 : vector<32x128xf32>
      %cst_15 = arith.constant dense<0.000000e+00> : vector<128xf32>
      %18 = vector.multi_reduction <add>, %17, %cst_15 [0] : vector<32x128xf32> to vector<128xf32>
      %19 = vector.shape_cast %18 : vector<128xf32> to vector<1x128xf32>
      %20 = vector.shape_cast %16 : vector<1x128xf32> to vector<1x128xf32>
      %21 = vector.broadcast %20 : vector<1x128xf32> to vector<8x128xf32>
      %c0_16 = arith.constant 0 : index
      %c0_17 = arith.constant 0 : index
      %22 = vector.load %arg6[%c0_16, %c0_17] : memref<8x128xf32, #tpu.memory_space<vmem>>, vector<8x128xf32>
      tpu.vector_store %arg6[%c0_16, %c0_17], %21 {strides = array<i32>} : memref<8x128xf32, #tpu.memory_space<vmem>>, vector<8x128xf32>,
      %23 = vector.shape_cast %19 : vector<1x128xf32> to vector<1x128xf32>
      %24 = vector.broadcast %23 : vector<1x128xf32> to vector<8x128xf32>
      %c0_18 = arith.constant 0 : index
      %c0_19 = arith.constant 0 : index
      %25 = vector.load %arg7[%c0_18, %c0_19] : memref<8x128xf32, #tpu.memory_space<vmem>>, vector<8x128xf32>
      tpu.vector_store %arg7[%c0_18, %c0_19], %24 {strides = array<i32>} : memref<8x128xf32, #tpu.memory_space<vmem>>, vector<8x128xf32>,
    } else {
    }
    return
  }
  func.func @transform_0(%arg0: i32, %arg1: i32, %arg2: i32) -> (i32, i32) {
    %c0_i32 = arith.constant 0 : i32
    return %arg0, %arg2 : i32, i32
  }
  func.func @transform_1(%arg0: i32, %arg1: i32, %arg2: i32) -> (i32, i32) {
    %c0_i32 = arith.constant 0 : i32
    return %arg2, %arg1 : i32, i32
  }
  func.func @transform_2(%arg0: i32, %arg1: i32, %arg2: i32) -> (i32, i32) {
    %c0_i32 = arith.constant 0 : i32
    return %arg0, %arg1 : i32, i32
  }
  func.func @transform_3(%arg0: i32, %arg1: i32, %arg2: i32) -> (i32, i32) {
    %c0_i32 = arith.constant 0 : i32
    return %arg0, %arg1 : i32, i32
  }
  func.func @transform_4(%arg0: i32, %arg1: i32, %arg2: i32) -> (i32, i32) {
    %c0_i32 = arith.constant 0 : i32
    return %arg0, %arg1 : i32, i32
  }
}

module attributes {stable_mosaic.version = 11 : i64} {
  func.func @_bn_apply_lrelu_kernel(%arg0: i32, %arg1: memref<32x128xbf16, #tpu.memory_space<vmem>>, %arg2: memref<1x128xf32, #tpu.memory_space<vmem>>, %arg3: memref<1x128xf32, #tpu.memory_space<vmem>>, %arg4: memref<1x128xf32, #tpu.memory_space<vmem>>, %arg5: memref<1x128xf32, #tpu.memory_space<vmem>>, %arg6: memref<32x128xbf16, #tpu.memory_space<vmem>>) attributes {dimension_semantics = [#tpu.dimension_semantics<parallel>], iteration_bounds = array<i64: 1>, scalar_prefetch = 0 : i64, scratch_operands = 0 : i64, tpu.core_type = #tpu.core_type<tc>, window_params = [{transform_indices = @transform_0, window_bounds = array<i64: 32, 128>}, {pipeline_mode = #tpu.pipeline_mode<synchronous>, transform_indices = @transform_1, window_bounds = array<i64: 1, 128>}, {pipeline_mode = #tpu.pipeline_mode<synchronous>, transform_indices = @transform_2, window_bounds = array<i64: 1, 128>}, {pipeline_mode = #tpu.pipeline_mode<synchronous>, transform_indices = @transform_3, window_bounds = array<i64: 1, 128>}, {pipeline_mode = #tpu.pipeline_mode<synchronous>, transform_indices = @transform_4, window_bounds = array<i64: 1, 128>}, {transform_indices = @transform_5, window_bounds = array<i64: 32, 128>}]} {
    %c0 = arith.constant 0 : index
    %c0_0 = arith.constant 0 : index
    %0 = vector.load %arg2[%c0, %c0_0] : memref<1x128xf32, #tpu.memory_space<vmem>>, vector<1x128xf32>
    %cst = arith.constant 3.125000e-02 : f32
    %1 = vector.broadcast %cst : f32 to vector<1x128xf32>
    %2 = arith.mulf %0, %1 : vector<1x128xf32>
    %c0_1 = arith.constant 0 : index
    %c0_2 = arith.constant 0 : index
    %3 = vector.load %arg3[%c0_1, %c0_2] : memref<1x128xf32, #tpu.memory_space<vmem>>, vector<1x128xf32>
    %cst_3 = arith.constant 3.125000e-02 : f32
    %4 = vector.broadcast %cst_3 : f32 to vector<1x128xf32>
    %5 = arith.mulf %3, %4 : vector<1x128xf32>
    %6 = arith.mulf %2, %2 : vector<1x128xf32>
    %7 = arith.subf %5, %6 : vector<1x128xf32>
    %cst_4 = arith.constant 0.000000e+00 : f32
    %8 = vector.broadcast %cst_4 : f32 to vector<1x128xf32>
    %9 = arith.maximumf %7, %8 : vector<1x128xf32>
    %c0_5 = arith.constant 0 : index
    %c0_6 = arith.constant 0 : index
    %10 = vector.load %arg4[%c0_5, %c0_6] : memref<1x128xf32, #tpu.memory_space<vmem>>, vector<1x128xf32>
    %cst_7 = arith.constant 9.99999974E-6 : f32
    %11 = vector.broadcast %cst_7 : f32 to vector<1x128xf32>
    %12 = arith.addf %9, %11 : vector<1x128xf32>
    %13 = math.rsqrt %12 : vector<1x128xf32>
    %14 = arith.mulf %10, %13 : vector<1x128xf32>
    %c0_8 = arith.constant 0 : index
    %c0_9 = arith.constant 0 : index
    %15 = vector.load %arg5[%c0_8, %c0_9] : memref<1x128xf32, #tpu.memory_space<vmem>>, vector<1x128xf32>
    %16 = arith.mulf %2, %14 : vector<1x128xf32>
    %17 = arith.subf %15, %16 : vector<1x128xf32>
    %c0_10 = arith.constant 0 : index
    %c0_11 = arith.constant 0 : index
    %18 = vector.load %arg1[%c0_10, %c0_11] : memref<32x128xbf16, #tpu.memory_space<vmem>>, vector<32x128xbf16>
    %19 = arith.extf %18 : vector<32x128xbf16> to vector<32x128xf32>
    %20 = vector.broadcast %14 : vector<1x128xf32> to vector<32x128xf32>
    %21 = arith.mulf %19, %20 : vector<32x128xf32>
    %22 = vector.broadcast %17 : vector<1x128xf32> to vector<32x128xf32>
    %23 = arith.addf %21, %22 : vector<32x128xf32>
    %cst_12 = arith.constant 0.000000e+00 : f32
    %24 = vector.broadcast %cst_12 : f32 to vector<32x128xf32>
    %25 = arith.cmpf ogt, %23, %24 : vector<32x128xf32>
    %cst_13 = arith.constant 2.000000e-01 : f32
    %26 = vector.broadcast %cst_13 : f32 to vector<32x128xf32>
    %27 = arith.mulf %26, %23 : vector<32x128xf32>
    %28 = arith.select %25, %23, %27 : vector<32x128xi1>, vector<32x128xf32>
    %29 = arith.truncf %28 : vector<32x128xf32> to vector<32x128xbf16>
    %c0_14 = arith.constant 0 : index
    %c0_15 = arith.constant 0 : index
    %30 = vector.load %arg6[%c0_14, %c0_15] : memref<32x128xbf16, #tpu.memory_space<vmem>>, vector<32x128xbf16>
    tpu.vector_store %arg6[%c0_14, %c0_15], %29 {strides = array<i32>} : memref<32x128xbf16, #tpu.memory_space<vmem>>, vector<32x128xbf16>,
    return
  }
  func.func @transform_0(%arg0: i32) -> (i32, i32) {
    %c0_i32 = arith.constant 0 : i32
    %c0_i32_0 = arith.constant 0 : i32
    return %arg0, %c0_i32 : i32, i32
  }
  func.func @transform_1(%arg0: i32) -> (i32, i32) {
    %c0_i32 = arith.constant 0 : i32
    %c0_i32_0 = arith.constant 0 : i32
    %c0_i32_1 = arith.constant 0 : i32
    return %c0_i32, %c0_i32_0 : i32, i32
  }
  func.func @transform_2(%arg0: i32) -> (i32, i32) {
    %c0_i32 = arith.constant 0 : i32
    %c0_i32_0 = arith.constant 0 : i32
    %c0_i32_1 = arith.constant 0 : i32
    return %c0_i32, %c0_i32_0 : i32, i32
  }
  func.func @transform_3(%arg0: i32) -> (i32, i32) {
    %c0_i32 = arith.constant 0 : i32
    %c0_i32_0 = arith.constant 0 : i32
    %c0_i32_1 = arith.constant 0 : i32
    return %c0_i32, %c0_i32_0 : i32, i32
  }
  func.func @transform_4(%arg0: i32) -> (i32, i32) {
    %c0_i32 = arith.constant 0 : i32
    %c0_i32_0 = arith.constant 0 : i32
    %c0_i32_1 = arith.constant 0 : i32
    return %c0_i32, %c0_i32_0 : i32, i32
  }
  func.func @transform_5(%arg0: i32) -> (i32, i32) {
    %c0_i32 = arith.constant 0 : i32
    %c0_i32_0 = arith.constant 0 : i32
    return %arg0, %c0_i32 : i32, i32
  }
}

module attributes {stable_mosaic.version = 11 : i64} {
  func.func @_gemm_act_kernel(%arg0: i32, %arg1: i32, %arg2: i32, %arg3: memref<8x512xbf16, #tpu.memory_space<vmem>>, %arg4: memref<512x128xbf16, #tpu.memory_space<vmem>>, %arg5: memref<8x128xf32, #tpu.memory_space<vmem>>, %arg6: memref<8x128xf32, #tpu.memory_space<vmem>>) attributes {dimension_semantics = [#tpu.dimension_semantics<parallel>, #tpu.dimension_semantics<parallel>, #tpu.dimension_semantics<arbitrary>], iteration_bounds = array<i64: 1, 1, 2>, scalar_prefetch = 0 : i64, scratch_operands = 1 : i64, tpu.core_type = #tpu.core_type<tc>, window_params = [{transform_indices = @transform_0, window_bounds = array<i64: 8, 512>}, {transform_indices = @transform_1, window_bounds = array<i64: 512, 128>}, {transform_indices = @transform_2, window_bounds = array<i64: 8, 128>}]} {
    %c0_i32 = arith.constant 0 : i32
    %0 = arith.cmpi eq, %arg2, %c0_i32 : i32
    %1 = arith.extui %0 : i1 to i32
    %c0_i32_0 = arith.constant 0 : i32
    %2 = arith.cmpi ne, %1, %c0_i32_0 : i32
    scf.if %2 {
      %cst_9 = arith.constant 0.000000e+00 : f32
      %12 = vector.broadcast %cst_9 : f32 to vector<8x128xf32>
      %c0_10 = arith.constant 0 : index
      %c0_11 = arith.constant 0 : index
      %13 = vector.load %arg6[%c0_10, %c0_11] : memref<8x128xf32, #tpu.memory_space<vmem>>, vector<8x128xf32>
      tpu.vector_store %arg6[%c0_10, %c0_11], %12 {strides = array<i32>} : memref<8x128xf32, #tpu.memory_space<vmem>>, vector<8x128xf32>,
    } else {
    }
    %c0 = arith.constant 0 : index
    %c0_1 = arith.constant 0 : index
    %3 = vector.load %arg6[%c0, %c0_1] : memref<8x128xf32, #tpu.memory_space<vmem>>, vector<8x128xf32>
    %c0_2 = arith.constant 0 : index
    %c0_3 = arith.constant 0 : index
    %4 = vector.load %arg3[%c0_2, %c0_3] : memref<8x512xbf16, #tpu.memory_space<vmem>>, vector<8x512xbf16>
    %c0_4 = arith.constant 0 : index
    %c0_5 = arith.constant 0 : index
    %5 = vector.load %arg4[%c0_4, %c0_5] : memref<512x128xbf16, #tpu.memory_space<vmem>>, vector<512x128xbf16>
    %cst = arith.constant dense<0.000000e+00> : vector<8x128xf32>
    %6 = tpu.matmul %4, %5, %cst {dimension_numbers = #tpu.dot_dimension_numbers<[1], [0], [0], [1], [0, 0, 1, 1], [], []>} : vector<8x512xbf16>, vector<512x128xbf16>, vector<8x128xf32> -> vector<8x128xf32>
    %7 = arith.addf %3, %6 : vector<8x128xf32>
    %c0_6 = arith.constant 0 : index
    %c0_7 = arith.constant 0 : index
    %8 = vector.load %arg6[%c0_6, %c0_7] : memref<8x128xf32, #tpu.memory_space<vmem>>, vector<8x128xf32>
    tpu.vector_store %arg6[%c0_6, %c0_7], %7 {strides = array<i32>} : memref<8x128xf32, #tpu.memory_space<vmem>>, vector<8x128xf32>,
    %c1_i32 = arith.constant 1 : i32
    %9 = arith.cmpi eq, %arg2, %c1_i32 : i32
    %10 = arith.extui %9 : i1 to i32
    %c0_i32_8 = arith.constant 0 : i32
    %11 = arith.cmpi ne, %10, %c0_i32_8 : i32
    scf.if %11 {
      %c0_9 = arith.constant 0 : index
      %c0_10 = arith.constant 0 : index
      %12 = vector.load %arg6[%c0_9, %c0_10] : memref<8x128xf32, #tpu.memory_space<vmem>>, vector<8x128xf32>
      %13 = arith.negf %12 : vector<8x128xf32>
      %14 = math.exp %13 : vector<8x128xf32>
      %cst_11 = arith.constant 1.000000e+00 : f32
      %15 = vector.broadcast %cst_11 : f32 to vector<8x128xf32>
      %16 = arith.addf %15, %14 : vector<8x128xf32>
      %17 = arith.divf %15, %16 : vector<8x128xf32>
      %c0_12 = arith.constant 0 : index
      %c0_13 = arith.constant 0 : index
      %18 = vector.load %arg5[%c0_12, %c0_13] : memref<8x128xf32, #tpu.memory_space<vmem>>, vector<8x128xf32>
      tpu.vector_store %arg5[%c0_12, %c0_13], %17 {strides = array<i32>} : memref<8x128xf32, #tpu.memory_space<vmem>>, vector<8x128xf32>,
    } else {
    }
    return
  }
  func.func @transform_0(%arg0: i32, %arg1: i32, %arg2: i32) -> (i32, i32) {
    %c0_i32 = arith.constant 0 : i32
    return %arg0, %arg2 : i32, i32
  }
  func.func @transform_1(%arg0: i32, %arg1: i32, %arg2: i32) -> (i32, i32) {
    %c0_i32 = arith.constant 0 : i32
    return %arg2, %arg1 : i32, i32
  }
  func.func @transform_2(%arg0: i32, %arg1: i32, %arg2: i32) -> (i32, i32) {
    %c0_i32 = arith.constant 0 : i32
    return %arg0, %arg1 : i32, i32
  }
}

</mosaic_0001>

<bundles_post_ra>
// kernel: discriminator_forward.8
= control target key start
LH: loop header
LB: loop body
LE: loop exit
PB: predicated region body
PF: predicated region fallthrough
CT: control target
= control target key end

     0   :  { %s2398_s9 = smov 0   ;;  %s2400_s10 = smov 0   ;;  %s2556_s0 = inlined_call_operand.vmem [shape: bf16[2048,48], index: 0, kind: input, shape index: {}]   ;;  %s2557_s1 = inlined_call_operand.vmem [shape: bf16[48,128], index: 1, kind: input, shape index: {}]   ;;  %s2558_s2 = inlined_call_operand.vmem [shape: bf16[2048,128], index: 2, kind: output, shape index: {}]  }
   0x1   :  { %s2402_s11 = smov 0  }
   0x2 LB: > { %s31_s12 = sadd.s32 1, %s2377_s10  ;;  %p1796_p0 = scmp.ge.s32.totalorder %s2381_s11, 1  ;;  %s2381_s11 = sphi %s2402_s11, %s12_s11   ;;  %s2377_s10 = sphi %s2400_s10, %s2560_s10   ;;  %s2373_s9 = sphi %s2398_s9, %s2559_s9  }
   0x3   : > { %p33_p1 = scmp.ge.s32.totalorder %s31_s12, 4  ;;  %p155_p2 = scmp.lt.s32.totalorder %s2381_s11, 5 }
   0x5   : > { %s2562_s12 = smov (%p33_p1, %s31_s12), 0  ;;  %p156_p3 = pnand %p1796_p0, %p155_p2 }
   0x6   : > { %s1797_s15 = sshll.u32 (!%p156_p3), %s2373_s9, 6 }
   0x7   : > { %159 = sbr.rel (%p156_p3) target bundleno = 287 (0x11f), region = 28  ;;  %p192_p4 = scmp.lt.s32.totalorder (!%p156_p3), %s1797_s15, 255 }
   0xc   : > { %v2324_v0 = vld [vmem:[%s2557_s1 + $0x10] sm:$0xff]   ;;  %v2325_v1 = vld [vmem:[%s2557_s1 + $0x8] sm:$0xff]   ;;  %s2564_s15 = smov (!%p192_p4, %s1797_s15), 255  ;;  %v2326_v2 = vld [vmem:[%s2557_s1] sm:$0xff]   ;;  %vm599_vm0 = vcmask 392192  }
   0xd   : > { %2224 = vmatprep.subr.bf16.mxu0 %v2324_v0  ;;  %2294 = vmatprep.subr.bf16.mxu1 %v2324_v0  ;;  %s1798_s20 = sshll.u32 %s2564_s15, 2 }
   0xe   : > { %2225 = vmatpush3.bf16.msra.mxu0 %v2324_v0  ;;  %2297 = vmatpush3.bf16.msra.mxu1 %v2324_v0  ;;  %s2433_s23 = scalar_lea.vmem %s2556_s0, %s1798_s20  ;;  %s2504_s26 = scalar_lea.vmem %s2558_s2, %s1798_s20 }
   0xf   : > { %2226 = vmatprep.subr.bf16.mxu0 %v2325_v1  ;;  %2295 = vmatprep.subr.bf16.mxu1 %v2325_v1  ;;  %v2327_v3 = vld [vmem:[%s2433_s23] sm:$0xff]   ;;  %v2329_v5 = vld [vmem:[%s2433_s23 + $0x8] sm:$0xff]   ;;  %v2331_v7 = vld [vmem:[%s2433_s23 + $0x10] sm:$0xff]  }
  0x10   : > { %v2328_v4 = vld [vmem:[%s2433_s23 + $0x80] sm:$0xff]   ;;  %2230 = vmatprep.mubr.msk.bf16.mxu0 %vm599_vm0, %v2327_v3  ;;  %v2330_v6 = vld [vmem:[%s2433_s23 + $0x88] sm:$0xff]   ;;  %v2332_v8 = vld [vmem:[%s2433_s23 + $0x90] sm:$0xff]  }
  0x11   : > { %2262 = vmatprep.mubr.msk.bf16.mxu1 %vm599_vm0, %v2328_v4  ;;  %v2333_v9 = vld [vmem:[%s2433_s23 + $0x18] sm:$0xff]   ;;  %v2335_v11 = vld [vmem:[%s2433_s23 + $0x20] sm:$0xff]   ;;  %v2337_v13 = vld [vmem:[%s2433_s23 + $0x28] sm:$0xff]  }
  0x12   : > { %2227 = vmatpush3.bf16.msra.mxu0 %v2325_v1  ;;  %2298 = vmatpush3.bf16.msra.mxu1 %v2325_v1  ;;  %v2334_v10 = vld [vmem:[%s2433_s23 + $0x98] sm:$0xff]   ;;  %v2336_v12 = vld [vmem:[%s2433_s23 + $0xa0] sm:$0xff]   ;;  %v2338_v14 = vld [vmem:[%s2433_s23 + $0xa8] sm:$0xff]  }
  0x13   : > { %2228 = vmatprep.subr.bf16.mxu0 %v2326_v2  ;;  %2296 = vmatprep.subr.bf16.mxu1 %v2326_v2  ;;  %v2339_v15 = vld [vmem:[%s2433_s23 + $0x30] sm:$0xff]   ;;  %v2341_v17 = vld [vmem:[%s2433_s23 + $0x38] sm:$0xff]   ;;  %v2343_v19 = vld [vmem:[%s2433_s23 + $0x40] sm:$0xff]  }
  0x14   : > { %v2340_v16 = vld [vmem:[%s2433_s23 + $0xb0] sm:$0xff]   ;;  %v2342_v18 = vld [vmem:[%s2433_s23 + $0xb8] sm:$0xff]   ;;  %v2344_v20 = vld [vmem:[%s2433_s23 + $0xc0] sm:$0xff]  }
  0x15   : > { %v2345_v21 = vld [vmem:[%s2433_s23 + $0x48] sm:$0xff]   ;;  %v2347_v23 = vld [vmem:[%s2433_s23 + $0x50] sm:$0xff]   ;;  %v2349_v25 = vld [vmem:[%s2433_s23 + $0x58] sm:$0xff]  }
  0x16   : > { %2229 = vmatpush3.bf16.msra.mxu0 %v2326_v2  ;;  %2299 = vmatpush3.bf16.msra.mxu1 %v2326_v2  ;;  %v2346_v22 = vld [vmem:[%s2433_s23 + $0xc8] sm:$0xff]   ;;  %v2348_v24 = vld [vmem:[%s2433_s23 + $0xd0] sm:$0xff]   ;;  %v2350_v26 = vld [vmem:[%s2433_s23 + $0xd8] sm:$0xff]  }
  0x17   : > { %v2351_v27 = vld [vmem:[%s2433_s23 + $0x60] sm:$0xff]   ;;  %v2353_v29 = vld [vmem:[%s2433_s23 + $0x68] sm:$0xff]   ;;  %v2355_v31 = vld [vmem:[%s2433_s23 + $0x70] sm:$0xff]  }
  0x18   : > { %v2352_v28 = vld [vmem:[%s2433_s23 + $0xe0] sm:$0xff]   ;;  %v2354_v30 = vld [vmem:[%s2433_s23 + $0xe8] sm:$0xff]   ;;  %v2356_v32 = vld [vmem:[%s2433_s23 + $0xf0] sm:$0xff]  }
  0x19   : > { %2231 = vmatmul.mubr.msk.bf16.vlgmr.msra.gmra.mxu0 %vm599_vm0, %v2329_v5  ;;  %2263 = vmatmul.mubr.msk.bf16.vlgmr.msra.gmra.mxu1 %vm599_vm0, %v2330_v6  ;;  %v2357_v33 = vld [vmem:[%s2433_s23 + $0x78] sm:$0xff]  }
  0x1a   : > { %2234 = vmatprep.mubr.msk.bf16.mxu0 %vm599_vm0, %v2331_v7  ;;  %2266 = vmatprep.mubr.msk.bf16.mxu1 %vm599_vm0, %v2332_v8  ;;  %v2358_v34 = vld [vmem:[%s2433_s23 + $0xf8] sm:$0xff]  }
  0x21   : > { %2235 = vmatmul.mubr.msk.bf16.gmra.mxu0 %vm599_vm0, %v2333_v9  ;;  %2267 = vmatmul.mubr.msk.bf16.gmra.mxu1 %vm599_vm0, %v2334_v10 }
  0x22   : > { %2238 = vmatprep.mubr.msk.bf16.mxu0 %vm599_vm0, %v2335_v11  ;;  %2270 = vmatprep.mubr.msk.bf16.mxu1 %vm599_vm0, %v2336_v12 }
  0x29   : > { %2239 = vmatmul.mubr.msk.bf16.gmra.mxu0 %vm599_vm0, %v2337_v13  ;;  %2271 = vmatmul.mubr.msk.bf16.gmra.mxu1 %vm599_vm0, %v2338_v14 }
  0x2a   : > { %2242 = vmatprep.mubr.msk.bf16.mxu0 %vm599_vm0, %v2339_v15  ;;  %2274 = vmatprep.mubr.msk.bf16.mxu1 %vm599_vm0, %v2340_v16 }
  0x31   : > { %2243 = vmatmul.mubr.msk.bf16.gmra.mxu0 %vm599_vm0, %v2341_v17  ;;  %2275 = vmatmul.mubr.msk.bf16.gmra.mxu1 %vm599_vm0, %v2342_v18 }
  0x32   : > { %2246 = vmatprep.mubr.msk.bf16.mxu0 %vm599_vm0, %v2343_v19  ;;  %2278 = vmatprep.mubr.msk.bf16.mxu1 %vm599_vm0, %v2344_v20 }
  0x39   : > { %2247 = vmatmul.mubr.msk.bf16.gmra.mxu0 %vm599_vm0, %v2345_v21  ;;  %2279 = vmatmul.mubr.msk.bf16.gmra.mxu1 %vm599_vm0, %v2346_v22 }
  0x3a   : > { %2250 = vmatprep.mubr.msk.bf16.mxu0 %vm599_vm0, %v2347_v23  ;;  %2282 = vmatprep.mubr.msk.bf16.mxu1 %vm599_vm0, %v2348_v24 }
  0x41   : > { %2251 = vmatmul.mubr.msk.bf16.gmra.mxu0 %vm599_vm0, %v2349_v25  ;;  %2283 = vmatmul.mubr.msk.bf16.gmra.mxu1 %vm599_vm0, %v2350_v26 }
  0x42   : > { %2254 = vmatprep.mubr.msk.bf16.mxu0 %vm599_vm0, %v2351_v27  ;;  %2286 = vmatprep.mubr.msk.bf16.mxu1 %vm599_vm0, %v2352_v28 }
  0x49   : > { %2255 = vmatmul.mubr.msk.bf16.gmra.mxu0 %vm599_vm0, %v2353_v29  ;;  %2287 = vmatmul.mubr.msk.bf16.gmra.mxu1 %vm599_vm0, %v2354_v30 }
  0x4a   : > { %2258 = vmatprep.mubr.msk.bf16.mxu0 %vm599_vm0, %v2355_v31  ;;  %2290 = vmatprep.mubr.msk.bf16.mxu1 %vm599_vm0, %v2356_v32 }
  0x51   : > { %2259 = vmatmul.mubr.msk.bf16.gmra.mxu0 %vm599_vm0, %v2357_v33  ;;  %2291 = vmatmul.mubr.msk.bf16.gmra.mxu1 %vm599_vm0, %v2358_v34 }
  0xd9   : > { %v2232_v35 = vpop.f32.mrf.mxu0  ;;  %v2264_v36 = vpop.f32.mrf.mxu1 }
  0xda   : > { %vm1182_vm1 = vcmp.gt.f32.partialorder %v2232_v35, 0.0  ;;  %v1246_v37 = vmul.f32 0.2, %v2232_v35  ;;  %v1278_v38 = vmul.f32 0.2, %v2264_v36  ;;  %vm1214_vm2 = vcmp.gt.f32.partialorder %v2264_v36, 0.0 }
  0xdb   : > { %v730_v39 = vpop.f32.mrf.mxu0  ;;  %v858_v40 = vpop.f32.mrf.mxu1 }
  0xdc   : > { %v1310_v41 = vsel %vm1182_vm1, %v2232_v35, %v1246_v37  ;;  %v1244_v42 = vmul.f32 0.2, %v730_v39  ;;  %vm1180_vm3 = vcmp.gt.f32.partialorder %v730_v39, 0.0  ;;  %v1342_v46 = vsel %vm1214_vm2, %v2264_v36, %v1278_v38 }
  0xdd   : > { %v2233_v43 = vpop.f32.mrf.mxu0  ;;  %v2265_v44 = vpop.f32.mrf.mxu1  ;;  %vm1212_vm6 = vcmp.gt.f32.partialorder %v858_v40, 0.0  ;;  %v1276_v47 = vmul.f32 0.2, %v858_v40 }
  0xde   : > { %vm1183_vm4 = vcmp.gt.f32.partialorder %v2233_v43, 0.0  ;;  %v1247_v45 = vmul.f32 0.2, %v2233_v43  ;;  %vm1215_vm5 = vcmp.gt.f32.partialorder %v2265_v44, 0.0  ;;  %v1279_v48 = vmul.f32 0.2, %v2265_v44 }
  0xdf   : > { %v733_v49 = vpop.f32.mrf.mxu0  ;;  %v861_v50 = vpop.f32.mrf.mxu1  ;;  %v1308_v53 = vsel %vm1180_vm3, %v730_v39, %v1244_v42  ;;  %v1340_v62 = vsel %vm1212_vm6, %v858_v40, %v1276_v47 }
  0xe0   : > { %v1311_v51 = vsel %vm1183_vm4, %v2233_v43, %v1247_v45  ;;  %vm1181_vm7 = vcmp.gt.f32.partialorder %v733_v49, 0.0  ;;  %v1245_v52 = vmul.f32 0.2, %v733_v49  ;;  %vm1213_vm8 = vcmp.gt.f32.partialorder %v861_v50, 0.0 }
  0xe1   : > { %v2006_v54 = vpack.c.bf16 %v1311_v51, %v1310_v41  ;;  %v1343_v55 = vsel %vm1215_vm5, %v2265_v44, %v1279_v48  ;;  %v1277_v56 = vmul.f32 0.2, %v861_v50  ;;  %v2236_v57 = vpop.f32.mrf.mxu0  ;;  %v2268_v58 = vpop.f32.mrf.mxu1 }
  0xe2   : > { %v2086_v59 = vpack.c.bf16 %v1343_v55, %v1342_v46  ;;  %v1309_v60 = vsel %vm1181_vm7, %v733_v49, %v1245_v52  ;;  %vm1186_vm9 = vcmp.gt.f32.partialorder %v2236_v57, 0.0  ;;  %v1250_v61 = vmul.f32 0.2, %v2236_v57 }
  0xe3   : > { %2158 = vst [vmem:[%s2504_s26 + $0x8] sm:$0xff] %v2006_v54   ;;  %v2001_v63 = vpack.c.bf16 %v1309_v60, %v1308_v53  ;;  %v1341_v0 = vsel %vm1213_vm8, %v861_v50, %v1277_v56  ;;  %v1282_v1 = vmul.f32 0.2, %v2268_v58  ;;  %v746_v2 = vpop.f32.mrf.mxu0  ;;  %v874_v3 = vpop.f32.mrf.mxu1  ;;  %vm1218_vm10 = vcmp.gt.f32.partialorder %v2268_v58, 0.0 }
  0xe4   : > { %2174 = vst [vmem:[%s2504_s26 + $0x88] sm:$0xff] %v2086_v59   ;;  %v2081_v4 = vpack.c.bf16 %v1341_v0, %v1340_v62  ;;  %v1314_v5 = vsel %vm1186_vm9, %v2236_v57, %v1250_v61  ;;  %v1248_v6 = vmul.f32 0.2, %v746_v2  ;;  %vm1184_vm11 = vcmp.gt.f32.partialorder %v746_v2, 0.0 }
  0xe5   : > { %2002 = vst [vmem:[%s2504_s26] sm:$0xff] %v2001_v63   ;;  %v2237_v7 = vpop.f32.mrf.mxu0  ;;  %v2269_v8 = vpop.f32.mrf.mxu1  ;;  %v1346_v10 = vsel %vm1218_vm10, %v2268_v58, %v1282_v1  ;;  %vm1216_vm14 = vcmp.gt.f32.partialorder %v874_v3, 0.0  ;;  %v1280_v11 = vmul.f32 0.2, %v874_v3 }
  0xe6   : > { %2173 = vst [vmem:[%s2504_s26 + $0x80] sm:$0xff] %v2081_v4   ;;  %vm1187_vm12 = vcmp.gt.f32.partialorder %v2237_v7, 0.0  ;;  %v1251_v9 = vmul.f32 0.2, %v2237_v7  ;;  %vm1219_vm13 = vcmp.gt.f32.partialorder %v2269_v8, 0.0  ;;  %v1312_v17 = vsel %vm1184_vm11, %v746_v2, %v1248_v6 }
  0xe7   : > { %v1283_v12 = vmul.f32 0.2, %v2269_v8  ;;  %v749_v13 = vpop.f32.mrf.mxu0  ;;  %v877_v14 = vpop.f32.mrf.mxu1  ;;  %v1344_v26 = vsel %vm1216_vm14, %v874_v3, %v1280_v11 }
  0xe8   : > { %v1315_v15 = vsel %vm1187_vm12, %v2237_v7, %v1251_v9  ;;  %vm1185_vm15 = vcmp.gt.f32.partialorder %v749_v13, 0.0  ;;  %v1249_v16 = vmul.f32 0.2, %v749_v13  ;;  %vm1217_vm0 = vcmp.gt.f32.partialorder %v877_v14, 0.0 }
  0xe9   : > { %v2016_v18 = vpack.c.bf16 %v1315_v15, %v1314_v5  ;;  %v1347_v19 = vsel %vm1219_vm13, %v2269_v8, %v1283_v12  ;;  %v1281_v20 = vmul.f32 0.2, %v877_v14  ;;  %v2240_v21 = vpop.f32.mrf.mxu0  ;;  %v2272_v22 = vpop.f32.mrf.mxu1 }
  0xea   : > { %v2096_v23 = vpack.c.bf16 %v1347_v19, %v1346_v10  ;;  %v1313_v24 = vsel %vm1185_vm15, %v749_v13, %v1249_v16  ;;  %vm1190_vm1 = vcmp.gt.f32.partialorder %v2240_v21, 0.0  ;;  %v1254_v25 = vmul.f32 0.2, %v2240_v21 }
  0xeb   : > { %2160 = vst [vmem:[%s2504_s26 + $0x18] sm:$0xff] %v2016_v18   ;;  %v2011_v27 = vpack.c.bf16 %v1313_v24, %v1312_v17  ;;  %v1345_v28 = vsel %vm1217_vm0, %v877_v14, %v1281_v20  ;;  %v1286_v29 = vmul.f32 0.2, %v2272_v22  ;;  %v762_v30 = vpop.f32.mrf.mxu0  ;;  %v890_v31 = vpop.f32.mrf.mxu1  ;;  %vm1222_vm2 = vcmp.gt.f32.partialorder %v2272_v22, 0.0 }
  0xec   : > { %2176 = vst [vmem:[%s2504_s26 + $0x98] sm:$0xff] %v2096_v23   ;;  %v2091_v32 = vpack.c.bf16 %v1345_v28, %v1344_v26  ;;  %v1318_v33 = vsel %vm1190_vm1, %v2240_v21, %v1254_v25  ;;  %v1252_v34 = vmul.f32 0.2, %v762_v30  ;;  %vm1188_vm3 = vcmp.gt.f32.partialorder %v762_v30, 0.0 }
  0xed   : > { %2159 = vst [vmem:[%s2504_s26 + $0x10] sm:$0xff] %v2011_v27   ;;  %v2241_v35 = vpop.f32.mrf.mxu0  ;;  %v2273_v36 = vpop.f32.mrf.mxu1  ;;  %v1350_v38 = vsel %vm1222_vm2, %v2272_v22, %v1286_v29  ;;  %vm1220_vm6 = vcmp.gt.f32.partialorder %v890_v31, 0.0  ;;  %v1284_v39 = vmul.f32 0.2, %v890_v31 }
  0xee   : > { %2175 = vst [vmem:[%s2504_s26 + $0x90] sm:$0xff] %v2091_v32   ;;  %vm1191_vm4 = vcmp.gt.f32.partialorder %v2241_v35, 0.0  ;;  %v1255_v37 = vmul.f32 0.2, %v2241_v35  ;;  %vm1223_vm5 = vcmp.gt.f32.partialorder %v2273_v36, 0.0  ;;  %v1316_v45 = vsel %vm1188_vm3, %v762_v30, %v1252_v34 }
  0xef   : > { %v1287_v40 = vmul.f32 0.2, %v2273_v36  ;;  %v765_v41 = vpop.f32.mrf.mxu0  ;;  %v893_v42 = vpop.f32.mrf.mxu1  ;;  %v1348_v54 = vsel %vm1220_vm6, %v890_v31, %v1284_v39 }
  0xf0   : > { %v1319_v43 = vsel %vm1191_vm4, %v2241_v35, %v1255_v37  ;;  %vm1189_vm7 = vcmp.gt.f32.partialorder %v765_v41, 0.0  ;;  %v1253_v44 = vmul.f32 0.2, %v765_v41  ;;  %vm1221_vm8 = vcmp.gt.f32.partialorder %v893_v42, 0.0 }
  0xf1   : > { %v2026_v46 = vpack.c.bf16 %v1319_v43, %v1318_v33  ;;  %v1351_v47 = vsel %vm1223_vm5, %v2273_v36, %v1287_v40  ;;  %v1285_v48 = vmul.f32 0.2, %v893_v42  ;;  %v2244_v49 = vpop.f32.mrf.mxu0  ;;  %v2276_v50 = vpop.f32.mrf.mxu1 }
  0xf2   : > { %v2106_v51 = vpack.c.bf16 %v1351_v47, %v1350_v38  ;;  %v1317_v52 = vsel %vm1189_vm7, %v765_v41, %v1253_v44  ;;  %vm1194_vm9 = vcmp.gt.f32.partialorder %v2244_v49, 0.0  ;;  %v1258_v53 = vmul.f32 0.2, %v2244_v49 }
  0xf3   : > { %2162 = vst [vmem:[%s2504_s26 + $0x28] sm:$0xff] %v2026_v46   ;;  %v2021_v55 = vpack.c.bf16 %v1317_v52, %v1316_v45  ;;  %v1349_v56 = vsel %vm1221_vm8, %v893_v42, %v1285_v48  ;;  %v1290_v57 = vmul.f32 0.2, %v2276_v50  ;;  %v778_v58 = vpop.f32.mrf.mxu0  ;;  %v906_v59 = vpop.f32.mrf.mxu1  ;;  %vm1226_vm10 = vcmp.gt.f32.partialorder %v2276_v50, 0.0 }
  0xf4   : > { %2178 = vst [vmem:[%s2504_s26 + $0xa8] sm:$0xff] %v2106_v51   ;;  %v2101_v60 = vpack.c.bf16 %v1349_v56, %v1348_v54  ;;  %v1322_v61 = vsel %vm1194_vm9, %v2244_v49, %v1258_v53  ;;  %v1256_v62 = vmul.f32 0.2, %v778_v58  ;;  %vm1192_vm11 = vcmp.gt.f32.partialorder %v778_v58, 0.0 }
  0xf5   : > { %2161 = vst [vmem:[%s2504_s26 + $0x20] sm:$0xff] %v2021_v55   ;;  %v2245_v63 = vpop.f32.mrf.mxu0  ;;  %v2277_v0 = vpop.f32.mrf.mxu1  ;;  %v1354_v2 = vsel %vm1226_vm10, %v2276_v50, %v1290_v57  ;;  %vm1224_vm14 = vcmp.gt.f32.partialorder %v906_v59, 0.0  ;;  %v1288_v3 = vmul.f32 0.2, %v906_v59 }
  0xf6   : > { %2177 = vst [vmem:[%s2504_s26 + $0xa0] sm:$0xff] %v2101_v60   ;;  %vm1195_vm12 = vcmp.gt.f32.partialorder %v2245_v63, 0.0  ;;  %v1259_v1 = vmul.f32 0.2, %v2245_v63  ;;  %vm1227_vm13 = vcmp.gt.f32.partialorder %v2277_v0, 0.0  ;;  %v1320_v9 = vsel %vm1192_vm11, %v778_v58, %v1256_v62 }
  0xf7   : > { %v1291_v4 = vmul.f32 0.2, %v2277_v0  ;;  %v781_v5 = vpop.f32.mrf.mxu0  ;;  %v909_v6 = vpop.f32.mrf.mxu1  ;;  %v1352_v18 = vsel %vm1224_vm14, %v906_v59, %v1288_v3 }
  0xf8   : > { %v1323_v7 = vsel %vm1195_vm12, %v2245_v63, %v1259_v1  ;;  %vm1193_vm15 = vcmp.gt.f32.partialorder %v781_v5, 0.0  ;;  %v1257_v8 = vmul.f32 0.2, %v781_v5  ;;  %vm1225_vm0 = vcmp.gt.f32.partialorder %v909_v6, 0.0 }
  0xf9   : > { %v2036_v10 = vpack.c.bf16 %v1323_v7, %v1322_v61  ;;  %v1355_v11 = vsel %vm1227_vm13, %v2277_v0, %v1291_v4  ;;  %v1289_v12 = vmul.f32 0.2, %v909_v6  ;;  %v2248_v13 = vpop.f32.mrf.mxu0  ;;  %v2280_v14 = vpop.f32.mrf.mxu1 }
  0xfa   : > { %v2116_v15 = vpack.c.bf16 %v1355_v11, %v1354_v2  ;;  %v1321_v16 = vsel %vm1193_vm15, %v781_v5, %v1257_v8  ;;  %vm1198_vm1 = vcmp.gt.f32.partialorder %v2248_v13, 0.0  ;;  %v1262_v17 = vmul.f32 0.2, %v2248_v13 }
  0xfb   : > { %2164 = vst [vmem:[%s2504_s26 + $0x38] sm:$0xff] %v2036_v10   ;;  %v2031_v19 = vpack.c.bf16 %v1321_v16, %v1320_v9  ;;  %v1353_v20 = vsel %vm1225_vm0, %v909_v6, %v1289_v12  ;;  %v1294_v21 = vmul.f32 0.2, %v2280_v14  ;;  %v794_v22 = vpop.f32.mrf.mxu0  ;;  %v922_v23 = vpop.f32.mrf.mxu1  ;;  %vm1230_vm2 = vcmp.gt.f32.partialorder %v2280_v14, 0.0 }
  0xfc   : > { %2180 = vst [vmem:[%s2504_s26 + $0xb8] sm:$0xff] %v2116_v15   ;;  %v2111_v24 = vpack.c.bf16 %v1353_v20, %v1352_v18  ;;  %v1326_v25 = vsel %vm1198_vm1, %v2248_v13, %v1262_v17  ;;  %v1260_v26 = vmul.f32 0.2, %v794_v22  ;;  %vm1196_vm3 = vcmp.gt.f32.partialorder %v794_v22, 0.0 }
  0xfd   : > { %2163 = vst [vmem:[%s2504_s26 + $0x30] sm:$0xff] %v2031_v19   ;;  %v2249_v27 = vpop.f32.mrf.mxu0  ;;  %v2281_v28 = vpop.f32.mrf.mxu1  ;;  %v1358_v30 = vsel %vm1230_vm2, %v2280_v14, %v1294_v21  ;;  %vm1228_vm6 = vcmp.gt.f32.partialorder %v922_v23, 0.0  ;;  %v1292_v31 = vmul.f32 0.2, %v922_v23 }
  0xfe   : > { %2179 = vst [vmem:[%s2504_s26 + $0xb0] sm:$0xff] %v2111_v24   ;;  %vm1199_vm4 = vcmp.gt.f32.partialorder %v2249_v27, 0.0  ;;  %v1263_v29 = vmul.f32 0.2, %v2249_v27  ;;  %vm1231_vm5 = vcmp.gt.f32.partialorder %v2281_v28, 0.0  ;;  %v1324_v37 = vsel %vm1196_vm3, %v794_v22, %v1260_v26 }
  0xff   : > { %v1295_v32 = vmul.f32 0.2, %v2281_v28  ;;  %v797_v33 = vpop.f32.mrf.mxu0  ;;  %v925_v34 = vpop.f32.mrf.mxu1  ;;  %v1356_v46 = vsel %vm1228_vm6, %v922_v23, %v1292_v31 }
 0x100   : > { %v1327_v35 = vsel %vm1199_vm4, %v2249_v27, %v1263_v29  ;;  %vm1197_vm7 = vcmp.gt.f32.partialorder %v797_v33, 0.0  ;;  %v1261_v36 = vmul.f32 0.2, %v797_v33  ;;  %vm1229_vm8 = vcmp.gt.f32.partialorder %v925_v34, 0.0 }
 0x101   : > { %v2046_v38 = vpack.c.bf16 %v1327_v35, %v1326_v25  ;;  %v1359_v39 = vsel %vm1231_vm5, %v2281_v28, %v1295_v32  ;;  %v1293_v40 = vmul.f32 0.2, %v925_v34  ;;  %v2252_v41 = vpop.f32.mrf.mxu0  ;;  %v2284_v42 = vpop.f32.mrf.mxu1 }
 0x102   : > { %v2126_v43 = vpack.c.bf16 %v1359_v39, %v1358_v30  ;;  %v1325_v44 = vsel %vm1197_vm7, %v797_v33, %v1261_v36  ;;  %vm1202_vm9 = vcmp.gt.f32.partialorder %v2252_v41, 0.0  ;;  %v1266_v45 = vmul.f32 0.2, %v2252_v41 }
 0x103   : > { %2166 = vst [vmem:[%s2504_s26 + $0x48] sm:$0xff] %v2046_v38   ;;  %v2041_v47 = vpack.c.bf16 %v1325_v44, %v1324_v37  ;;  %v1357_v48 = vsel %vm1229_vm8, %v925_v34, %v1293_v40  ;;  %v1298_v49 = vmul.f32 0.2, %v2284_v42  ;;  %v810_v50 = vpop.f32.mrf.mxu0  ;;  %v938_v51 = vpop.f32.mrf.mxu1  ;;  %vm1234_vm10 = vcmp.gt.f32.partialorder %v2284_v42, 0.0 }
 0x104   : > { %2182 = vst [vmem:[%s2504_s26 + $0xc8] sm:$0xff] %v2126_v43   ;;  %v2121_v52 = vpack.c.bf16 %v1357_v48, %v1356_v46  ;;  %v1330_v53 = vsel %vm1202_vm9, %v2252_v41, %v1266_v45  ;;  %v1264_v54 = vmul.f32 0.2, %v810_v50  ;;  %vm1200_vm11 = vcmp.gt.f32.partialorder %v810_v50, 0.0 }
 0x105   : > { %2165 = vst [vmem:[%s2504_s26 + $0x40] sm:$0xff] %v2041_v47   ;;  %v2253_v55 = vpop.f32.mrf.mxu0  ;;  %v2285_v56 = vpop.f32.mrf.mxu1  ;;  %v1362_v58 = vsel %vm1234_vm10, %v2284_v42, %v1298_v49  ;;  %vm1232_vm14 = vcmp.gt.f32.partialorder %v938_v51, 0.0  ;;  %v1296_v59 = vmul.f32 0.2, %v938_v51 }
 0x106   : > { %2181 = vst [vmem:[%s2504_s26 + $0xc0] sm:$0xff] %v2121_v52   ;;  %vm1203_vm12 = vcmp.gt.f32.partialorder %v2253_v55, 0.0  ;;  %v1267_v57 = vmul.f32 0.2, %v2253_v55  ;;  %vm1235_vm13 = vcmp.gt.f32.partialorder %v2285_v56, 0.0  ;;  %v1328_v1 = vsel %vm1200_vm11, %v810_v50, %v1264_v54 }
 0x107   : > { %v1299_v60 = vmul.f32 0.2, %v2285_v56  ;;  %v813_v61 = vpop.f32.mrf.mxu0  ;;  %v941_v62 = vpop.f32.mrf.mxu1  ;;  %v1360_v10 = vsel %vm1232_vm14, %v938_v51, %v1296_v59 }
 0x108   : > { %v1331_v63 = vsel %vm1203_vm12, %v2253_v55, %v1267_v57  ;;  %vm1201_vm15 = vcmp.gt.f32.partialorder %v813_v61, 0.0  ;;  %v1265_v0 = vmul.f32 0.2, %v813_v61  ;;  %vm1233_vm0 = vcmp.gt.f32.partialorder %v941_v62, 0.0 }
 0x109   : > { %v2056_v2 = vpack.c.bf16 %v1331_v63, %v1330_v53  ;;  %v1363_v3 = vsel %vm1235_vm13, %v2285_v56, %v1299_v60  ;;  %v1297_v4 = vmul.f32 0.2, %v941_v62  ;;  %v2256_v5 = vpop.f32.mrf.mxu0  ;;  %v2288_v6 = vpop.f32.mrf.mxu1 }
 0x10a   : > { %v2136_v7 = vpack.c.bf16 %v1363_v3, %v1362_v58  ;;  %v1329_v8 = vsel %vm1201_vm15, %v813_v61, %v1265_v0  ;;  %vm1206_vm1 = vcmp.gt.f32.partialorder %v2256_v5, 0.0  ;;  %v1270_v9 = vmul.f32 0.2, %v2256_v5 }
 0x10b   : > { %2168 = vst [vmem:[%s2504_s26 + $0x58] sm:$0xff] %v2056_v2   ;;  %v2051_v11 = vpack.c.bf16 %v1329_v8, %v1328_v1  ;;  %v1361_v12 = vsel %vm1233_vm0, %v941_v62, %v1297_v4  ;;  %v1302_v13 = vmul.f32 0.2, %v2288_v6  ;;  %v826_v14 = vpop.f32.mrf.mxu0  ;;  %v954_v15 = vpop.f32.mrf.mxu1  ;;  %vm1238_vm2 = vcmp.gt.f32.partialorder %v2288_v6, 0.0 }
 0x10c   : > { %2184 = vst [vmem:[%s2504_s26 + $0xd8] sm:$0xff] %v2136_v7   ;;  %v2131_v16 = vpack.c.bf16 %v1361_v12, %v1360_v10  ;;  %v1334_v17 = vsel %vm1206_vm1, %v2256_v5, %v1270_v9  ;;  %v1268_v18 = vmul.f32 0.2, %v826_v14  ;;  %vm1204_vm3 = vcmp.gt.f32.partialorder %v826_v14, 0.0 }
 0x10d   : > { %2167 = vst [vmem:[%s2504_s26 + $0x50] sm:$0xff] %v2051_v11   ;;  %v2257_v19 = vpop.f32.mrf.mxu0  ;;  %v2289_v20 = vpop.f32.mrf.mxu1  ;;  %v1366_v22 = vsel %vm1238_vm2, %v2288_v6, %v1302_v13  ;;  %vm1236_vm6 = vcmp.gt.f32.partialorder %v954_v15, 0.0  ;;  %v1300_v23 = vmul.f32 0.2, %v954_v15 }
 0x10e   : > { %2183 = vst [vmem:[%s2504_s26 + $0xd0] sm:$0xff] %v2131_v16   ;;  %vm1207_vm4 = vcmp.gt.f32.partialorder %v2257_v19, 0.0  ;;  %v1271_v21 = vmul.f32 0.2, %v2257_v19  ;;  %vm1239_vm5 = vcmp.gt.f32.partialorder %v2289_v20, 0.0  ;;  %v1332_v29 = vsel %vm1204_vm3, %v826_v14, %v1268_v18 }
 0x10f   : > { %v1303_v24 = vmul.f32 0.2, %v2289_v20  ;;  %v829_v25 = vpop.f32.mrf.mxu0  ;;  %v957_v26 = vpop.f32.mrf.mxu1  ;;  %v1364_v38 = vsel %vm1236_vm6, %v954_v15, %v1300_v23 }
 0x110   : > { %v1335_v27 = vsel %vm1207_vm4, %v2257_v19, %v1271_v21  ;;  %vm1205_vm7 = vcmp.gt.f32.partialorder %v829_v25, 0.0  ;;  %v1269_v28 = vmul.f32 0.2, %v829_v25  ;;  %vm1237_vm8 = vcmp.gt.f32.partialorder %v957_v26, 0.0 }
 0x111   : > { %v2066_v30 = vpack.c.bf16 %v1335_v27, %v1334_v17  ;;  %v1367_v31 = vsel %vm1239_vm5, %v2289_v20, %v1303_v24  ;;  %v1301_v32 = vmul.f32 0.2, %v957_v26  ;;  %v2260_v33 = vpop.f32.mrf.mxu0  ;;  %v2292_v34 = vpop.f32.mrf.mxu1 }
 0x112   : > { %v2146_v35 = vpack.c.bf16 %v1367_v31, %v1366_v22  ;;  %v1333_v36 = vsel %vm1205_vm7, %v829_v25, %v1269_v28  ;;  %vm1210_vm9 = vcmp.gt.f32.partialorder %v2260_v33, 0.0  ;;  %v1274_v37 = vmul.f32 0.2, %v2260_v33 }
 0x113   : > { %2170 = vst [vmem:[%s2504_s26 + $0x68] sm:$0xff] %v2066_v30   ;;  %v2061_v39 = vpack.c.bf16 %v1333_v36, %v1332_v29  ;;  %v1365_v40 = vsel %vm1237_vm8, %v957_v26, %v1301_v32  ;;  %v842_v41 = vpop.f32.mrf.mxu0  ;;  %v970_v42 = vpop.f32.mrf.mxu1  ;;  %vm1242_vm10 = vcmp.gt.f32.partialorder %v2292_v34, 0.0  ;;  %v1306_v45 = vmul.f32 0.2, %v2292_v34 }
 0x114   : > { %2186 = vst [vmem:[%s2504_s26 + $0xe8] sm:$0xff] %v2146_v35   ;;  %v2141_v43 = vpack.c.bf16 %v1365_v40, %v1364_v38  ;;  %v1338_v44 = vsel %vm1210_vm9, %v2260_v33, %v1274_v37  ;;  %v1272_v48 = vmul.f32 0.2, %v842_v41  ;;  %vm1208_vm13 = vcmp.gt.f32.partialorder %v842_v41, 0.0 }
 0x115   : > { %2169 = vst [vmem:[%s2504_s26 + $0x60] sm:$0xff] %v2061_v39   ;;  %v2261_v46 = vpop.f32.mrf.mxu0  ;;  %v2293_v47 = vpop.f32.mrf.mxu1  ;;  %vm1240_vm14 = vcmp.gt.f32.partialorder %v970_v42, 0.0  ;;  %v1304_v50 = vmul.f32 0.2, %v970_v42  ;;  %v1370_v56 = vsel %vm1242_vm10, %v2292_v34, %v1306_v45 }
 0x116   : > { %2185 = vst [vmem:[%s2504_s26 + $0xe0] sm:$0xff] %v2141_v43   ;;  %vm1211_vm11 = vcmp.gt.f32.partialorder %v2261_v46, 0.0  ;;  %v1275_v49 = vmul.f32 0.2, %v2261_v46  ;;  %vm1243_vm12 = vcmp.gt.f32.partialorder %v2293_v47, 0.0  ;;  %v1336_v60 = vsel %vm1208_vm13, %v842_v41, %v1272_v48 }
 0x117   : > { %v1307_v51 = vmul.f32 0.2, %v2293_v47  ;;  %v845_v52 = vpop.f32.mrf.mxu0  ;;  %v973_v53 = vpop.f32.mrf.mxu1  ;;  %v1368_v63 = vsel %vm1240_vm14, %v970_v42, %v1304_v50 }
 0x118   : > { %v1339_v54 = vsel %vm1211_vm11, %v2261_v46, %v1275_v49  ;;  %vm1209_vm15 = vcmp.gt.f32.partialorder %v845_v52, 0.0  ;;  %v1273_v55 = vmul.f32 0.2, %v845_v52  ;;  %vm1241_vm0 = vcmp.gt.f32.partialorder %v973_v53, 0.0 }
 0x119   : > { %v2076_v57 = vpack.c.bf16 %v1339_v54, %v1338_v44  ;;  %v1371_v58 = vsel %vm1243_vm12, %v2293_v47, %v1307_v51  ;;  %v1305_v59 = vmul.f32 0.2, %v973_v53 }
 0x11a   : > { %v2156_v61 = vpack.c.bf16 %v1371_v58, %v1370_v56  ;;  %v1337_v62 = vsel %vm1209_vm15, %v845_v52, %v1273_v55 }
 0x11b   : > { %2172 = vst [vmem:[%s2504_s26 + $0x78] sm:$0xff] %v2076_v57   ;;  %v2071_v0 = vpack.c.bf16 %v1337_v62, %v1336_v60  ;;  %v1369_v1 = vsel %vm1241_vm0, %v973_v53, %v1305_v59 }
 0x11c   : > { %2188 = vst [vmem:[%s2504_s26 + $0xf8] sm:$0xff] %v2156_v61   ;;  %v2151_v2 = vpack.c.bf16 %v1369_v1, %v1368_v63 }
 0x11d   : > { %2171 = vst [vmem:[%s2504_s26 + $0x70] sm:$0xff] %v2071_v0  }
 0x11e   : > { %2187 = vst [vmem:[%s2504_s26 + $0xf0] sm:$0xff] %v2151_v2  }
 0x11f PF: > { %s12_s11 = sadd.s32 1, %s2381_s11   ;;  %s2559_s9 = smov %s2377_s10 }
 0x120   : > { %p9_p5 = scmp.ge.s32.totalorder %s12_s11, 6   ;;  %s2560_s10 = smov %s2562_s12 }
 0x122   :  { %11 = sbr.rel (!%p9_p5) target bundleno = 2 (0x2), region = 69 }

// kernel: discriminator_forward.9
= control target key start
LH: loop header
LB: loop body
LE: loop exit
PB: predicated region body
PF: predicated region fallthrough
CT: control target
= control target key end

     0   :  { %s2461_s1 = inlined_call_operand.vmem [shape: bf16[128,128], index: 1, kind: input, shape index: {}]   ;;  %s2462_s0 = inlined_call_operand.vmem [shape: bf16[512,128], index: 0, kind: input, shape index: {}]   ;;  %s2463_s2 = inlined_call_operand.vmem [shape: bf16[512,128], index: 2, kind: output, shape index: {0}]   ;;  %s2464_s3 = inlined_call_operand.vmem [shape: f32[8,128], index: 3, kind: output, shape index: {1}]   ;;  %s2465_s4 = inlined_call_operand.vmem [shape: f32[8,128], index: 4, kind: output, shape index: {2}]  }
   0x1   :  { %v1982_v0 = vld [vmem:[%s2461_s1 + $0x38] sm:$0xff]   ;;  %v1983_v1 = vld [vmem:[%s2461_s1 + $0x30] sm:$0xff]   ;;  %v1984_v2 = vld [vmem:[%s2461_s1 + $0x28] sm:$0xff]  }
   0x2   :  { %1886 = vmatprep.subr.bf16.mxu0 %v1982_v0  ;;  %1966 = vmatprep.subr.bf16.mxu1 %v1982_v0  ;;  %v1985_v3 = vld [vmem:[%s2461_s1 + $0x20] sm:$0xff]   ;;  %v1986_v5 = vld [vmem:[%s2461_s1 + $0x18] sm:$0xff]   ;;  %v1987_v6 = vld [vmem:[%s2461_s1 + $0x10] sm:$0xff]  }
   0x3   :  { %1887 = vmatpush3.bf16.msra.mxu0 %v1982_v0  ;;  %1974 = vmatpush3.bf16.msra.mxu1 %v1982_v0  ;;  %v1990_v4 = vld [vmem:[%s2462_s0] sm:$0xff]   ;;  %v1988_v7 = vld [vmem:[%s2461_s1 + $0x8] sm:$0xff]   ;;  %v1992_v11 = vld [vmem:[%s2462_s0 + $0x10] sm:$0xff]  }
   0x4   :  { %1888 = vmatprep.subr.bf16.mxu0 %v1983_v1  ;;  %1967 = vmatprep.subr.bf16.mxu1 %v1983_v1  ;;  %v1989_v8 = vld [vmem:[%s2461_s1] sm:$0xff]   ;;  %v1991_v10 = vld [vmem:[%s2462_s0 + $0x8] sm:$0xff]   ;;  %v2008_v13 = vld [vmem:[%s2462_s0 + $0x90] sm:$0xff]  }
   0x5   :  { %1902 = vmatprep.mubr.bf16.mxu0 %v1990_v4  ;;  %v2006_v9 = vld [vmem:[%s2462_s0 + $0x80] sm:$0xff]   ;;  %v2007_v12 = vld [vmem:[%s2462_s0 + $0x88] sm:$0xff]   ;;  %v1993_v14 = vld [vmem:[%s2462_s0 + $0x18] sm:$0xff]  }
   0x6   :  { %1934 = vmatprep.mubr.bf16.mxu1 %v2006_v9  ;;  %v1994_v15 = vld [vmem:[%s2462_s0 + $0x20] sm:$0xff]   ;;  %v2009_v16 = vld [vmem:[%s2462_s0 + $0x98] sm:$0xff]   ;;  %v1995_v18 = vld [vmem:[%s2462_s0 + $0x28] sm:$0xff]  }
   0x7   :  { %1889 = vmatpush3.bf16.msra.mxu0 %v1983_v1  ;;  %1975 = vmatpush3.bf16.msra.mxu1 %v1983_v1  ;;  %v2010_v17 = vld [vmem:[%s2462_s0 + $0xa0] sm:$0xff]   ;;  %v2011_v19 = vld [vmem:[%s2462_s0 + $0xa8] sm:$0xff]   ;;  %v1996_v20 = vld [vmem:[%s2462_s0 + $0x30] sm:$0xff]  }
   0x8   :  { %1890 = vmatprep.subr.bf16.mxu0 %v1984_v2  ;;  %1968 = vmatprep.subr.bf16.mxu1 %v1984_v2  ;;  %v2012_v21 = vld [vmem:[%s2462_s0 + $0xb0] sm:$0xff]   ;;  %v1997_v22 = vld [vmem:[%s2462_s0 + $0x38] sm:$0xff]   ;;  %v1998_v24 = vld [vmem:[%s2462_s0 + $0x40] sm:$0xff]  }
   0x9   :  { %v2013_v23 = vld [vmem:[%s2462_s0 + $0xb8] sm:$0xff]   ;;  %v2014_v25 = vld [vmem:[%s2462_s0 + $0xc0] sm:$0xff]   ;;  %v1999_v26 = vld [vmem:[%s2462_s0 + $0x48] sm:$0xff]  }
   0xa   :  { %v2015_v27 = vld [vmem:[%s2462_s0 + $0xc8] sm:$0xff]   ;;  %v2000_v28 = vld [vmem:[%s2462_s0 + $0x50] sm:$0xff]   ;;  %v2001_v30 = vld [vmem:[%s2462_s0 + $0x58] sm:$0xff]  }
   0xb   :  { %1891 = vmatpush3.bf16.msra.mxu0 %v1984_v2  ;;  %1976 = vmatpush3.bf16.msra.mxu1 %v1984_v2  ;;  %v2016_v29 = vld [vmem:[%s2462_s0 + $0xd0] sm:$0xff]   ;;  %v2017_v31 = vld [vmem:[%s2462_s0 + $0xd8] sm:$0xff]   ;;  %v2002_v32 = vld [vmem:[%s2462_s0 + $0x60] sm:$0xff]  }
   0xc   :  { %1892 = vmatprep.subr.bf16.mxu0 %v1985_v3  ;;  %1969 = vmatprep.subr.bf16.mxu1 %v1985_v3  ;;  %v2018_v33 = vld [vmem:[%s2462_s0 + $0xe0] sm:$0xff]   ;;  %v2003_v34 = vld [vmem:[%s2462_s0 + $0x68] sm:$0xff]   ;;  %v2004_v36 = vld [vmem:[%s2462_s0 + $0x70] sm:$0xff]  }
   0xd   :  { %v2019_v35 = vld [vmem:[%s2462_s0 + $0xe8] sm:$0xff]   ;;  %v2020_v37 = vld [vmem:[%s2462_s0 + $0xf0] sm:$0xff]   ;;  %v2005_v38 = vld [vmem:[%s2462_s0 + $0x78] sm:$0xff]  }
   0xe   :  { %v2021_v39 = vld [vmem:[%s2462_s0 + $0xf8] sm:$0xff]  }
   0xf   :  { %1893 = vmatpush3.bf16.msra.mxu0 %v1985_v3  ;;  %1977 = vmatpush3.bf16.msra.mxu1 %v1985_v3 }
  0x10   :  { %1894 = vmatprep.subr.bf16.mxu0 %v1986_v5  ;;  %1970 = vmatprep.subr.bf16.mxu1 %v1986_v5 }
  0x13   :  { %1895 = vmatpush3.bf16.msra.mxu0 %v1986_v5  ;;  %1978 = vmatpush3.bf16.msra.mxu1 %v1986_v5 }
  0x14   :  { %1896 = vmatprep.subr.bf16.mxu0 %v1987_v6  ;;  %1971 = vmatprep.subr.bf16.mxu1 %v1987_v6 }
  0x17   :  { %1897 = vmatpush3.bf16.msra.mxu0 %v1987_v6  ;;  %1979 = vmatpush3.bf16.msra.mxu1 %v1987_v6 }
  0x18   :  { %1898 = vmatprep.subr.bf16.mxu0 %v1988_v7  ;;  %1972 = vmatprep.subr.bf16.mxu1 %v1988_v7 }
  0x1b   :  { %1899 = vmatpush3.bf16.msra.mxu0 %v1988_v7  ;;  %1980 = vmatpush3.bf16.msra.mxu1 %v1988_v7 }
  0x1c   :  { %1900 = vmatprep.subr.bf16.mxu0 %v1989_v8  ;;  %1973 = vmatprep.subr.bf16.mxu1 %v1989_v8 }
  0x1f   :  { %1901 = vmatpush3.bf16.msra.mxu0 %v1989_v8  ;;  %1981 = vmatpush3.bf16.msra.mxu1 %v1989_v8 }
  0x22   :  { %1903 = vmatmul.mubr.bf16.vlgmr.msra.gmra.mxu0 %v1991_v10  ;;  %1935 = vmatmul.mubr.bf16.vlgmr.msra.gmra.mxu1 %v2007_v12 }
  0x23   :  { %1906 = vmatprep.mubr.bf16.mxu0 %v1992_v11  ;;  %1938 = vmatprep.mubr.bf16.mxu1 %v2008_v13 }
  0x2a   :  { %1907 = vmatmul.mubr.bf16.gmra.mxu0 %v1993_v14  ;;  %1939 = vmatmul.mubr.bf16.gmra.mxu1 %v2009_v16 }
  0x2b   :  { %1910 = vmatprep.mubr.bf16.mxu0 %v1994_v15  ;;  %1942 = vmatprep.mubr.bf16.mxu1 %v2010_v17 }
  0x32   :  { %1911 = vmatmul.mubr.bf16.gmra.mxu0 %v1995_v18  ;;  %1943 = vmatmul.mubr.bf16.gmra.mxu1 %v2011_v19 }
  0x33   :  { %1914 = vmatprep.mubr.bf16.mxu0 %v1996_v20  ;;  %1946 = vmatprep.mubr.bf16.mxu1 %v2012_v21 }
  0x3a   :  { %1915 = vmatmul.mubr.bf16.gmra.mxu0 %v1997_v22  ;;  %1947 = vmatmul.mubr.bf16.gmra.mxu1 %v2013_v23 }
  0x3b   :  { %1918 = vmatprep.mubr.bf16.mxu0 %v1998_v24  ;;  %1950 = vmatprep.mubr.bf16.mxu1 %v2014_v25 }
  0x42   :  { %1919 = vmatmul.mubr.bf16.gmra.mxu0 %v1999_v26  ;;  %1951 = vmatmul.mubr.bf16.gmra.mxu1 %v2015_v27 }
  0x43   :  { %1922 = vmatprep.mubr.bf16.mxu0 %v2000_v28  ;;  %1954 = vmatprep.mubr.bf16.mxu1 %v2016_v29 }
  0x4a   :  { %1923 = vmatmul.mubr.bf16.gmra.mxu0 %v2001_v30  ;;  %1955 = vmatmul.mubr.bf16.gmra.mxu1 %v2017_v31 }
  0x4b   :  { %1926 = vmatprep.mubr.bf16.mxu0 %v2002_v32  ;;  %1958 = vmatprep.mubr.bf16.mxu1 %v2018_v33 }
  0x52   :  { %1927 = vmatmul.mubr.bf16.gmra.mxu0 %v2003_v34  ;;  %1959 = vmatmul.mubr.bf16.gmra.mxu1 %v2019_v35 }
  0x53   :  { %1930 = vmatprep.mubr.bf16.mxu0 %v2004_v36  ;;  %1962 = vmatprep.mubr.bf16.mxu1 %v2020_v37 }
  0x5a   :  { %1931 = vmatmul.mubr.bf16.gmra.mxu0 %v2005_v38  ;;  %1963 = vmatmul.mubr.bf16.gmra.mxu1 %v2021_v39 }
  0xe2   :  { %v1904_v40 = vpop.f32.mrf.mxu0  ;;  %v2167_v41 = vpop.f32.mrf.mxu1 }
  0xe3   :  { %v1342_v57 = vmul.f32 %v1904_v40, %v1904_v40 }
  0xe4   :  { %v501_v42 = vpop.f32.mrf.mxu0  ;;  %v2169_v43 = vpop.f32.mrf.mxu1 }
  0xe5   :  { %v1340_v48 = vmul.f32 %v501_v42, %v501_v42 }
  0xe6   :  { %v1905_v44 = vpop.f32.mrf.mxu0  ;;  %v2171_v45 = vpop.f32.mrf.mxu1 }
  0xe7   :  { %v1663_v46 = vpack.c.bf16 %v1905_v44, %v1904_v40  ;;  %v1743_v47 = vpack.c.bf16 %v2171_v45, %v2167_v41  ;;  %v1343_v62 = vmul.f32 %v1905_v44, %v1905_v44 }
  0xe8   :  { %v504_v49 = vpop.f32.mrf.mxu0  ;;  %v2175_v50 = vpop.f32.mrf.mxu1 }
  0xe9   :  { %1815 = vst [vmem:[%s2463_s2 + $0x8] sm:$0xff] %v1663_v46   ;;  %v1658_v51 = vpack.c.bf16 %v504_v49, %v501_v42  ;;  %v1271_v52 = vadd.f32 %v504_v49, %v501_v42  ;;  %v1341_v53 = vmul.f32 %v504_v49, %v504_v49  ;;  %1831 = vst [vmem:[%s2463_s2 + $0x88] sm:$0xff] %v1743_v47  }
  0xea   :  { %v1738_v54 = vpack.c.bf16 %v2175_v50, %v2169_v43  ;;  %v1908_v55 = vpop.f32.mrf.mxu0  ;;  %v2185_v56 = vpop.f32.mrf.mxu1 }
  0xeb   :  { %1659 = vst [vmem:[%s2463_s2] sm:$0xff] %v1658_v51   ;;  %v1272_v58 = vadd.f32 %v1904_v40, %v1271_v52  ;;  %v1404_v59 = vadd.f32 %v1341_v53, %v1340_v48  ;;  %v1346_v17 = vmul.f32 %v1908_v55, %v1908_v55 }
  0xec   :  { %1830 = vst [vmem:[%s2463_s2 + $0x80] sm:$0xff] %v1738_v54   ;;  %v517_v60 = vpop.f32.mrf.mxu0  ;;  %v2193_v61 = vpop.f32.mrf.mxu1 }
  0xed   :  { %v1405_v63 = vadd.f32 %v1404_v59, %v1342_v57  ;;  %v1273_v0 = vadd.f32 %v1905_v44, %v1272_v58  ;;  %v1344_v4 = vmul.f32 %v517_v60, %v517_v60 }
  0xee   :  { %v1909_v1 = vpop.f32.mrf.mxu0  ;;  %v2195_v2 = vpop.f32.mrf.mxu1 }
  0xef   :  { %v1274_v3 = vadd.f32 %v1273_v0, %v517_v60  ;;  %v1406_v5 = vadd.f32 %v1405_v63, %v1343_v62  ;;  %v1673_v6 = vpack.c.bf16 %v1909_v1, %v1908_v55  ;;  %v1753_v8 = vpack.c.bf16 %v2195_v2, %v2185_v56 }
  0xf0   :  { %v520_v7 = vpop.f32.mrf.mxu0  ;;  %v2199_v9 = vpop.f32.mrf.mxu1  ;;  %v1347_v22 = vmul.f32 %v1909_v1, %v1909_v1 }
  0xf1   :  { %v1407_v10 = vadd.f32 %v1406_v5, %v1344_v4  ;;  %1817 = vst [vmem:[%s2463_s2 + $0x18] sm:$0xff] %v1673_v6   ;;  %v1668_v11 = vpack.c.bf16 %v520_v7, %v517_v60  ;;  %v1275_v12 = vadd.f32 %v1274_v3, %v520_v7  ;;  %v1345_v13 = vmul.f32 %v520_v7, %v520_v7 }
  0xf2   :  { %v1912_v14 = vpop.f32.mrf.mxu0  ;;  %1833 = vst [vmem:[%s2463_s2 + $0x98] sm:$0xff] %v1753_v8   ;;  %v1748_v15 = vpack.c.bf16 %v2199_v9, %v2193_v61  ;;  %v2209_v16 = vpop.f32.mrf.mxu1 }
  0xf3   :  { %1816 = vst [vmem:[%s2463_s2 + $0x10] sm:$0xff] %v1668_v11   ;;  %v1276_v18 = vadd.f32 %v1908_v55, %v1275_v12  ;;  %v1408_v19 = vadd.f32 %v1407_v10, %v1345_v13  ;;  %v1350_v42 = vmul.f32 %v1912_v14, %v1912_v14 }
  0xf4   :  { %v533_v20 = vpop.f32.mrf.mxu0  ;;  %1832 = vst [vmem:[%s2463_s2 + $0x90] sm:$0xff] %v1748_v15   ;;  %v2217_v21 = vpop.f32.mrf.mxu1 }
  0xf5   :  { %v1409_v23 = vadd.f32 %v1408_v19, %v1346_v17  ;;  %v1277_v24 = vadd.f32 %v1909_v1, %v1276_v18  ;;  %v1348_v28 = vmul.f32 %v533_v20, %v533_v20 }
  0xf6   :  { %v1913_v25 = vpop.f32.mrf.mxu0  ;;  %v2219_v26 = vpop.f32.mrf.mxu1 }
  0xf7   :  { %v1278_v27 = vadd.f32 %v1277_v24, %v533_v20  ;;  %v1410_v29 = vadd.f32 %v1409_v23, %v1347_v22  ;;  %v1683_v30 = vpack.c.bf16 %v1913_v25, %v1912_v14  ;;  %v1763_v32 = vpack.c.bf16 %v2219_v26, %v2209_v16 }
  0xf8   :  { %v536_v31 = vpop.f32.mrf.mxu0  ;;  %v2223_v33 = vpop.f32.mrf.mxu1  ;;  %v1351_v49 = vmul.f32 %v1913_v25, %v1913_v25 }
  0xf9   :  { %v1411_v34 = vadd.f32 %v1410_v29, %v1348_v28  ;;  %1819 = vst [vmem:[%s2463_s2 + $0x28] sm:$0xff] %v1683_v30   ;;  %v1678_v35 = vpack.c.bf16 %v536_v31, %v533_v20  ;;  %v1279_v36 = vadd.f32 %v1278_v27, %v536_v31  ;;  %v1349_v37 = vmul.f32 %v536_v31, %v536_v31 }
  0xfa   :  { %v1916_v38 = vpop.f32.mrf.mxu0  ;;  %1835 = vst [vmem:[%s2463_s2 + $0xa8] sm:$0xff] %v1763_v32   ;;  %v1758_v39 = vpack.c.bf16 %v2223_v33, %v2217_v21  ;;  %v2233_v40 = vpop.f32.mrf.mxu1 }
  0xfb   :  { %1818 = vst [vmem:[%s2463_s2 + $0x20] sm:$0xff] %v1678_v35   ;;  %v1280_v44 = vadd.f32 %v1912_v14, %v1279_v36  ;;  %v1412_v46 = vadd.f32 %v1411_v34, %v1349_v37  ;;  %v1354_v8 = vmul.f32 %v1916_v38, %v1916_v38 }
  0xfc   :  { %v549_v47 = vpop.f32.mrf.mxu0  ;;  %1834 = vst [vmem:[%s2463_s2 + $0xa0] sm:$0xff] %v1758_v39   ;;  %v2241_v48 = vpop.f32.mrf.mxu1 }
  0xfd   :  { %v1413_v51 = vadd.f32 %v1412_v46, %v1350_v42  ;;  %v1281_v52 = vadd.f32 %v1913_v25, %v1280_v44  ;;  %v1352_v57 = vmul.f32 %v549_v47, %v549_v47 }
  0xfe   :  { %v1917_v53 = vpop.f32.mrf.mxu0  ;;  %v2243_v54 = vpop.f32.mrf.mxu1 }
  0xff   :  { %v1282_v55 = vadd.f32 %v1281_v52, %v549_v47  ;;  %v1414_v58 = vadd.f32 %v1413_v51, %v1351_v49  ;;  %v1693_v59 = vpack.c.bf16 %v1917_v53, %v1916_v38  ;;  %v1773_v62 = vpack.c.bf16 %v2243_v54, %v2233_v40 }
 0x100   :  { %v552_v60 = vpop.f32.mrf.mxu0  ;;  %v2247_v63 = vpop.f32.mrf.mxu1  ;;  %v1355_v14 = vmul.f32 %v1917_v53, %v1917_v53 }
 0x101   :  { %v1415_v0 = vadd.f32 %v1414_v58, %v1352_v57  ;;  %1821 = vst [vmem:[%s2463_s2 + $0x38] sm:$0xff] %v1693_v59   ;;  %v1688_v1 = vpack.c.bf16 %v552_v60, %v549_v47  ;;  %v1283_v3 = vadd.f32 %v1282_v55, %v552_v60  ;;  %v1353_v4 = vmul.f32 %v552_v60, %v552_v60 }
 0x102   :  { %v1920_v5 = vpop.f32.mrf.mxu0  ;;  %1837 = vst [vmem:[%s2463_s2 + $0xb8] sm:$0xff] %v1773_v62   ;;  %v1768_v6 = vpack.c.bf16 %v2247_v63, %v2241_v48  ;;  %v2257_v7 = vpop.f32.mrf.mxu1 }
 0x103   :  { %1820 = vst [vmem:[%s2463_s2 + $0x30] sm:$0xff] %v1688_v1   ;;  %v1284_v10 = vadd.f32 %v1916_v38, %v1283_v3  ;;  %v1416_v11 = vadd.f32 %v1415_v0, %v1353_v4  ;;  %v1358_v37 = vmul.f32 %v1920_v5, %v1920_v5 }
 0x104   :  { %v565_v12 = vpop.f32.mrf.mxu0  ;;  %1836 = vst [vmem:[%s2463_s2 + $0xb0] sm:$0xff] %v1768_v6   ;;  %v2265_v13 = vpop.f32.mrf.mxu1 }
 0x105   :  { %v1417_v15 = vadd.f32 %v1416_v11, %v1354_v8  ;;  %v1285_v17 = vadd.f32 %v1917_v53, %v1284_v10  ;;  %v1356_v22 = vmul.f32 %v565_v12, %v565_v12 }
 0x106   :  { %v1921_v18 = vpop.f32.mrf.mxu0  ;;  %v2267_v19 = vpop.f32.mrf.mxu1 }
 0x107   :  { %v1286_v20 = vadd.f32 %v1285_v17, %v565_v12  ;;  %v1418_v23 = vadd.f32 %v1417_v15, %v1355_v14  ;;  %v1703_v24 = vpack.c.bf16 %v1921_v18, %v1920_v5  ;;  %v1783_v27 = vpack.c.bf16 %v2267_v19, %v2257_v7 }
 0x108   :  { %v568_v25 = vpop.f32.mrf.mxu0  ;;  %v2271_v28 = vpop.f32.mrf.mxu1  ;;  %v1359_v46 = vmul.f32 %v1921_v18, %v1921_v18 }
 0x109   :  { %v1419_v29 = vadd.f32 %v1418_v23, %v1356_v22  ;;  %1823 = vst [vmem:[%s2463_s2 + $0x48] sm:$0xff] %v1703_v24   ;;  %v1698_v30 = vpack.c.bf16 %v568_v25, %v565_v12  ;;  %v1287_v31 = vadd.f32 %v1286_v20, %v568_v25  ;;  %v1357_v32 = vmul.f32 %v568_v25, %v568_v25 }
 0x10a   :  { %v1924_v34 = vpop.f32.mrf.mxu0  ;;  %1839 = vst [vmem:[%s2463_s2 + $0xc8] sm:$0xff] %v1783_v27   ;;  %v1778_v35 = vpack.c.bf16 %v2271_v28, %v2265_v13  ;;  %v2281_v36 = vpop.f32.mrf.mxu1 }
 0x10b   :  { %1822 = vst [vmem:[%s2463_s2 + $0x40] sm:$0xff] %v1698_v30   ;;  %v1288_v38 = vadd.f32 %v1920_v5, %v1287_v31  ;;  %v1420_v39 = vadd.f32 %v1419_v29, %v1357_v32  ;;  %v1362_v10 = vmul.f32 %v1924_v34, %v1924_v34 }
 0x10c   :  { %v581_v42 = vpop.f32.mrf.mxu0  ;;  %1838 = vst [vmem:[%s2463_s2 + $0xc0] sm:$0xff] %v1778_v35   ;;  %v2289_v44 = vpop.f32.mrf.mxu1 }
 0x10d   :  { %v1421_v47 = vadd.f32 %v1420_v39, %v1358_v37  ;;  %v1289_v49 = vadd.f32 %v1921_v18, %v1288_v38  ;;  %v1360_v55 = vmul.f32 %v581_v42, %v581_v42 }
 0x10e   :  { %v1925_v51 = vpop.f32.mrf.mxu0  ;;  %v2291_v52 = vpop.f32.mrf.mxu1 }
 0x10f   :  { %v1290_v53 = vadd.f32 %v1289_v49, %v581_v42  ;;  %v1422_v57 = vadd.f32 %v1421_v47, %v1359_v46  ;;  %v1713_v58 = vpack.c.bf16 %v1925_v51, %v1924_v34  ;;  %v1793_v60 = vpack.c.bf16 %v2291_v52, %v2281_v36 }
 0x110   :  { %v584_v59 = vpop.f32.mrf.mxu0  ;;  %v2295_v62 = vpop.f32.mrf.mxu1  ;;  %v1363_v17 = vmul.f32 %v1925_v51, %v1925_v51 }
 0x111   :  { %v1423_v0 = vadd.f32 %v1422_v57, %v1360_v55  ;;  %1825 = vst [vmem:[%s2463_s2 + $0x58] sm:$0xff] %v1713_v58   ;;  %v1708_v1 = vpack.c.bf16 %v584_v59, %v581_v42  ;;  %v1291_v3 = vadd.f32 %v1290_v53, %v584_v59  ;;  %v1361_v4 = vmul.f32 %v584_v59, %v584_v59 }
 0x112   :  { %v1928_v5 = vpop.f32.mrf.mxu0  ;;  %1841 = vst [vmem:[%s2463_s2 + $0xd8] sm:$0xff] %v1793_v60   ;;  %v1788_v6 = vpack.c.bf16 %v2295_v62, %v2289_v44  ;;  %v2305_v8 = vpop.f32.mrf.mxu1 }
 0x113   :  { %1824 = vst [vmem:[%s2463_s2 + $0x50] sm:$0xff] %v1708_v1   ;;  %v1292_v11 = vadd.f32 %v1924_v34, %v1291_v3  ;;  %v1424_v12 = vadd.f32 %v1423_v0, %v1361_v4  ;;  %v1366_v47 = vmul.f32 %v1928_v5, %v1928_v5 }
 0x114   :  { %v597_v14 = vpop.f32.mrf.mxu0  ;;  %1840 = vst [vmem:[%s2463_s2 + $0xd0] sm:$0xff] %v1788_v6   ;;  %v2313_v15 = vpop.f32.mrf.mxu1 }
 0x115   :  { %v1425_v18 = vadd.f32 %v1424_v12, %v1362_v10  ;;  %v1293_v20 = vadd.f32 %v1925_v51, %v1292_v11  ;;  %v1364_v25 = vmul.f32 %v597_v14, %v597_v14 }
 0x116   :  { %v1929_v22 = vpop.f32.mrf.mxu0  ;;  %v2315_v23 = vpop.f32.mrf.mxu1 }
 0x117   :  { %v1294_v24 = vadd.f32 %v1293_v20, %v597_v14  ;;  %v1426_v27 = vadd.f32 %v1425_v18, %v1363_v17  ;;  %v1723_v29 = vpack.c.bf16 %v1929_v22, %v1928_v5  ;;  %v1803_v31 = vpack.c.bf16 %v2315_v23, %v2305_v8 }
 0x118   :  { %v600_v30 = vpop.f32.mrf.mxu0  ;;  %v2319_v32 = vpop.f32.mrf.mxu1  ;;  %v1367_v57 = vmul.f32 %v1929_v22, %v1929_v22 }
 0x119   :  { %v1427_v34 = vadd.f32 %v1426_v27, %v1364_v25  ;;  %1827 = vst [vmem:[%s2463_s2 + $0x68] sm:$0xff] %v1723_v29   ;;  %v1718_v35 = vpack.c.bf16 %v600_v30, %v597_v14  ;;  %v1295_v37 = vadd.f32 %v1294_v24, %v600_v30  ;;  %v1365_v38 = vmul.f32 %v600_v30, %v600_v30 }
 0x11a   :  { %v1932_v39 = vpop.f32.mrf.mxu0  ;;  %1843 = vst [vmem:[%s2463_s2 + $0xe8] sm:$0xff] %v1803_v31   ;;  %v1798_v42 = vpack.c.bf16 %v2319_v32, %v2313_v15  ;;  %v2329_v46 = vpop.f32.mrf.mxu1  ;;  %v1372_v31 = vmul.f32 %v2169_v43, %v2169_v43 }
 0x11b   :  { %1826 = vst [vmem:[%s2463_s2 + $0x60] sm:$0xff] %v1718_v35   ;;  %v1296_v49 = vadd.f32 %v1928_v5, %v1295_v37  ;;  %v1428_v51 = vadd.f32 %v1427_v34, %v1365_v38  ;;  %v1373_v38 = vmul.f32 %v2175_v50, %v2175_v50 }
 0x11c   :  { %v613_v53 = vpop.f32.mrf.mxu0  ;;  %1842 = vst [vmem:[%s2463_s2 + $0xe0] sm:$0xff] %v1798_v42   ;;  %v2337_v55 = vpop.f32.mrf.mxu1  ;;  %v1374_v42 = vmul.f32 %v2167_v41, %v2167_v41 }
 0x11d   :  { %v1429_v58 = vadd.f32 %v1428_v51, %v1366_v47  ;;  %v1297_v59 = vadd.f32 %v1929_v22, %v1296_v49  ;;  %v1368_v3 = vmul.f32 %v613_v53, %v613_v53  ;;  %v1370_v22 = vmul.f32 %v1932_v39, %v1932_v39 }
 0x11e   :  { %v1933_v60 = vpop.f32.mrf.mxu0  ;;  %v2339_v0 = vpop.f32.mrf.mxu1  ;;  %v1375_v51 = vmul.f32 %v2171_v45, %v2171_v45 }
 0x11f   :  { %v1298_v1 = vadd.f32 %v1297_v59, %v613_v53  ;;  %v1430_v4 = vadd.f32 %v1429_v58, %v1367_v57  ;;  %v1733_v6 = vpack.c.bf16 %v1933_v60, %v1932_v39  ;;  %v1813_v5 = vpack.c.bf16 %v2339_v0, %v2329_v46 }
 0x120   :  { %v616_v10 = vpop.f32.mrf.mxu0  ;;  %v2343_v11 = vpop.f32.mrf.mxu1  ;;  %v1371_v27 = vmul.f32 %v1933_v60, %v1933_v60  ;;  %v1376_v58 = vmul.f32 %v2193_v61, %v2193_v61 }
 0x121   :  { %v1431_v12 = vadd.f32 %v1430_v4, %v1368_v3  ;;  %1829 = vst [vmem:[%s2463_s2 + $0x78] sm:$0xff] %v1733_v6   ;;  %v1728_v14 = vpack.c.bf16 %v616_v10, %v613_v53  ;;  %v1299_v17 = vadd.f32 %v1298_v1, %v616_v10  ;;  %v1369_v18 = vmul.f32 %v616_v10, %v616_v10 }
 0x122   :  { %1845 = vst [vmem:[%s2463_s2 + $0xf8] sm:$0xff] %v1813_v5   ;;  %v1808_v20 = vpack.c.bf16 %v2343_v11, %v2337_v55  ;;  %v1377_v1 = vmul.f32 %v2199_v9, %v2199_v9  ;;  %v1380_v5 = vmul.f32 %v2217_v21, %v2217_v21 }
 0x123   :  { %1828 = vst [vmem:[%s2463_s2 + $0x70] sm:$0xff] %v1728_v14   ;;  %v1300_v24 = vadd.f32 %v1932_v39, %v1299_v17  ;;  %v1432_v25 = vadd.f32 %v1431_v12, %v1369_v18  ;;  %v1381_v17 = vmul.f32 %v2223_v33, %v2223_v33 }
 0x124   :  { %1844 = vst [vmem:[%s2463_s2 + $0xf0] sm:$0xff] %v1808_v20  }
 0x125   :  { %v1301_v29 = vadd.f32 %v1933_v60, %v1300_v24  ;;  %v1433_v30 = vadd.f32 %v1432_v25, %v1370_v22  ;;  %v1384_v25 = vmul.f32 %v2241_v48, %v2241_v48 }
 0x127   :  { %v1434_v34 = vadd.f32 %v1433_v30, %v1371_v27  ;;  %v1302_v35 = vadd.f32 %v1301_v29, %v2169_v43  ;;  %v1385_v30 = vmul.f32 %v2247_v63, %v2247_v63 }
 0x129   :  { %v1303_v37 = vadd.f32 %v1302_v35, %v2175_v50  ;;  %v1435_v39 = vadd.f32 %v1434_v34, %v1372_v31 }
 0x12b   :  { %v1304_v47 = vadd.f32 %v2167_v41, %v1303_v37  ;;  %v1436_v49 = vadd.f32 %v1435_v39, %v1373_v38  ;;  %v1378_v41 = vmul.f32 %v2185_v56, %v2185_v56  ;;  %v1388_v38 = vmul.f32 %v2265_v13, %v2265_v13 }
 0x12d   :  { %v1437_v53 = vadd.f32 %v1436_v49, %v1374_v42  ;;  %v1305_v57 = vadd.f32 %v2171_v45, %v1304_v47  ;;  %v1379_v45 = vmul.f32 %v2195_v2, %v2195_v2  ;;  %v1389_v47 = vmul.f32 %v2271_v28, %v2271_v28 }
 0x12f   :  { %v1306_v43 = vadd.f32 %v1305_v57, %v2193_v61  ;;  %v1438_v59 = vadd.f32 %v1437_v53, %v1375_v51 }
 0x131   :  { %v1439_v50 = vadd.f32 %v1438_v59, %v1376_v58  ;;  %v1307_v60 = vadd.f32 %v1306_v43, %v2199_v9  ;;  %v1392_v43 = vmul.f32 %v2289_v44, %v2289_v44 }
 0x133   :  { %v1308_v3 = vadd.f32 %v2185_v56, %v1307_v60  ;;  %v1440_v4 = vadd.f32 %v1439_v50, %v1377_v1  ;;  %v1382_v56 = vmul.f32 %v2209_v16, %v2209_v16  ;;  %v1393_v50 = vmul.f32 %v2295_v62, %v2295_v62 }
 0x135   :  { %v1441_v6 = vadd.f32 %v1440_v4, %v1378_v41  ;;  %v1309_v10 = vadd.f32 %v2195_v2, %v1308_v3  ;;  %v1383_v2 = vmul.f32 %v2219_v26, %v2219_v26  ;;  %v1396_v4 = vmul.f32 %v2313_v15, %v2313_v15 }
 0x137   :  { %v1310_v61 = vadd.f32 %v1309_v10, %v2217_v21  ;;  %v1442_v12 = vadd.f32 %v1441_v6, %v1379_v45  ;;  %v1397_v10 = vmul.f32 %v2319_v32, %v2319_v32 }
 0x139   :  { %v1443_v14 = vadd.f32 %v1442_v12, %v1380_v5  ;;  %v1311_v9 = vadd.f32 %v1310_v61, %v2223_v33 }
 0x13b   :  { %v1312_v18 = vadd.f32 %v2209_v16, %v1311_v9  ;;  %v1444_v20 = vadd.f32 %v1443_v14, %v1381_v17  ;;  %v1386_v16 = vmul.f32 %v2233_v40, %v2233_v40  ;;  %v1400_v9 = vmul.f32 %v2337_v55, %v2337_v55 }
 0x13d   :  { %v1445_v22 = vadd.f32 %v1444_v20, %v1382_v56  ;;  %v1313_v24 = vadd.f32 %v2219_v26, %v1312_v18  ;;  %v1387_v26 = vmul.f32 %v2243_v54, %v2243_v54  ;;  %v1401_v18 = vmul.f32 %v2343_v11, %v2343_v11 }
 0x13f   :  { %v1314_v21 = vadd.f32 %v1313_v24, %v2241_v48  ;;  %v1446_v27 = vadd.f32 %v1445_v22, %v1383_v2 }
 0x141   :  { %v1447_v29 = vadd.f32 %v1446_v27, %v1384_v25  ;;  %v1315_v33 = vadd.f32 %v1314_v21, %v2247_v63 }
 0x143   :  { %v1316_v31 = vadd.f32 %v2233_v40, %v1315_v33  ;;  %v1448_v34 = vadd.f32 %v1447_v29, %v1385_v30  ;;  %v1390_v40 = vmul.f32 %v2257_v7, %v2257_v7 }
 0x145   :  { %v1449_v35 = vadd.f32 %v1448_v34, %v1386_v16  ;;  %v1317_v37 = vadd.f32 %v2243_v54, %v1316_v31  ;;  %v1391_v54 = vmul.f32 %v2267_v19, %v2267_v19 }
 0x147   :  { %v1318_v48 = vadd.f32 %v1317_v37, %v2265_v13  ;;  %v1450_v39 = vadd.f32 %v1449_v35, %v1387_v26 }
 0x149   :  { %v1451_v42 = vadd.f32 %v1450_v39, %v1388_v38  ;;  %v1319_v63 = vadd.f32 %v1318_v48, %v2271_v28 }
 0x14b   :  { %v1320_v49 = vadd.f32 %v2257_v7, %v1319_v63  ;;  %v1452_v51 = vadd.f32 %v1451_v42, %v1389_v47  ;;  %v1394_v7 = vmul.f32 %v2281_v36, %v2281_v36 }
 0x14d   :  { %v1453_v53 = vadd.f32 %v1452_v51, %v1390_v40  ;;  %v1321_v57 = vadd.f32 %v2267_v19, %v1320_v49  ;;  %v1395_v19 = vmul.f32 %v2291_v52, %v2291_v52 }
 0x14f   :  { %v1322_v13 = vadd.f32 %v1321_v57, %v2289_v44  ;;  %v1454_v58 = vadd.f32 %v1453_v53, %v1391_v54 }
 0x151   :  { %v1455_v59 = vadd.f32 %v1454_v58, %v1392_v43  ;;  %v1323_v28 = vadd.f32 %v1322_v13, %v2295_v62 }
 0x153   :  { %v1324_v60 = vadd.f32 %v2281_v36, %v1323_v28  ;;  %v1456_v1 = vadd.f32 %v1455_v59, %v1393_v50  ;;  %v1398_v36 = vmul.f32 %v2305_v8, %v2305_v8 }
 0x155   :  { %v1457_v41 = vadd.f32 %v1456_v1, %v1394_v7  ;;  %v1325_v3 = vadd.f32 %v2291_v52, %v1324_v60  ;;  %v1399_v52 = vmul.f32 %v2315_v23, %v2315_v23 }
 0x157   :  { %v1326_v44 = vadd.f32 %v1325_v3, %v2313_v15  ;;  %v1458_v45 = vadd.f32 %v1457_v41, %v1395_v19 }
 0x159   :  { %v1459_v6 = vadd.f32 %v1458_v45, %v1396_v4  ;;  %v1327_v62 = vadd.f32 %v1326_v44, %v2319_v32 }
 0x15b   :  { %v1328_v61 = vadd.f32 %v2305_v8, %v1327_v62  ;;  %v1460_v5 = vadd.f32 %v1459_v6, %v1397_v10  ;;  %v1402_v8 = vmul.f32 %v2329_v46, %v2329_v46 }
 0x15d   :  { %v1461_v12 = vadd.f32 %v1460_v5, %v1398_v36  ;;  %v1329_v14 = vadd.f32 %v2315_v23, %v1328_v61  ;;  %v1403_v23 = vmul.f32 %v2339_v0, %v2339_v0 }
 0x15f   :  { %v1330_v15 = vadd.f32 %v1329_v14, %v2337_v55  ;;  %v1462_v17 = vadd.f32 %v1461_v12, %v1399_v52 }
 0x161   :  { %v1463_v56 = vadd.f32 %v1462_v17, %v1400_v9  ;;  %v1331_v32 = vadd.f32 %v1330_v15, %v2343_v11 }
 0x163   :  { %v1332_v20 = vadd.f32 %v2329_v46, %v1331_v32  ;;  %v1464_v2 = vadd.f32 %v1463_v56, %v1401_v18 }
 0x165   :  { %v1333_v22 = vadd.f32 %v2339_v0, %v1332_v20  ;;  %v1465_v24 = vadd.f32 %v1464_v2, %v1402_v8 }
 0x167   :  { %v1334_v55 = vrot.slane %v1333_v22, 4  ;;  %v1466_v21 = vadd.f32 %v1465_v24, %v1403_v23 }
 0x169   :  { %v1335_v25 = vadd.f32 %v1334_v55, %v1333_v22  ;;  %v1467_v27 = vrot.slane %v1466_v21, 4 }
 0x16b   :  { %v1336_v29 = vrot.slane %v1335_v25, 2  ;;  %v1468_v33 = vadd.f32 %v1467_v27, %v1466_v21 }
 0x16d   :  { %v1337_v30 = vadd.f32 %v1336_v29, %v1335_v25  ;;  %v1469_v11 = vrot.slane %v1468_v33, 2 }
 0x16f   :  { %v1338_v16 = vrot.slane %v1337_v30, 1  ;;  %v1470_v31 = vadd.f32 %v1469_v11, %v1468_v33 }
 0x171   :  { %v1339_v34 = vadd.f32 %v1338_v16, %v1337_v30  ;;  %v1471_v26 = vrot.slane %v1470_v31, 1 }
 0x173   :  { %v1472_v46 = vadd.f32 %v1471_v26, %v1470_v31  ;;  %1473 = vst [vmem:[%s2464_s3] sm:$0xff] %v1339_v34 }
 0x175   :  { %1474 = vst [vmem:[%s2465_s4] sm:$0xff] %v1472_v46 }

// kernel: discriminator_forward.10
= control target key start
LH: loop header
LB: loop body
LE: loop exit
PB: predicated region body
PF: predicated region fallthrough
CT: control target
= control target key end

     0   :  { %v163_v5 = vlaneseq  ;;  %s1932_s1 = inlined_call_operand.vmem [shape: f32[1,128], index: 1, kind: input, shape index: {}]   ;;  %s1933_s2 = inlined_call_operand.vmem [shape: f32[1,128], index: 2, kind: input, shape index: {}]   ;;  %s1934_s0 = inlined_call_operand.vmem [shape: bf16[512,128], index: 0, kind: input, shape index: {}]   ;;  %s1935_s3 = inlined_call_operand.vmem [shape: f32[1,128], index: 3, kind: input, shape index: {}]   ;;  %s1936_s4 = inlined_call_operand.vmem [shape: f32[1,128], index: 4, kind: input, shape index: {}]   ;;  %s1937_s5 = inlined_call_operand.vmem [shape: bf16[512,128], index: 5, kind: output, shape index: {}]  }
   0x1   :  { %v20_v0 = vld [vmem:[%s1932_s1] sm:$0x1]  ;;  %v1348_v11 = vld [vmem:[%s1934_s0 + $0x8] sm:$0xff]   ;;  %v1353_v12 = vld [vmem:[%s1934_s0 + $0x10] sm:$0xff]  }
   0x2   :  { %v22_v1 = vld [vmem:[%s1933_s2] sm:$0x1]  ;;  %v1334_v2 = vmul.f32 0.001953125, %v20_v0  ;;  %v1338_v8 = vshrl.u32 %v163_v5, 7  ;;  %v1358_v13 = vld [vmem:[%s1934_s0 + $0x18] sm:$0xff]   ;;  %v1368_v15 = vld [vmem:[%s1934_s0 + $0x28] sm:$0xff]   ;;  %v952_v19 = vunpack.c.l.bf16 %v1348_v11  ;;  %v953_v22 = vunpack.c.h.bf16 %v1348_v11 }
   0x3   :  { %v23_v3 = vmul.f32 0.001953125, %v22_v1  ;;  %v1343_v10 = vld [vmem:[%s1934_s0] sm:$0xff]   ;;  %v1377_v20 = vld [vmem:[%s1934_s0 + $0x30] sm:$0xff]   ;;  %v1382_v21 = vld [vmem:[%s1934_s0 + $0x38] sm:$0xff]   ;;  %v956_v23 = vunpack.c.l.bf16 %v1353_v12  ;;  %v957_v24 = vunpack.c.h.bf16 %v1353_v12  ;;  %v960_v25 = vunpack.c.l.bf16 %v1358_v13 }
   0x4   :  { %v24_v4 = vmul.f32 %v1334_v2, %v1334_v2  ;;  %v1363_v14 = vld [vmem:[%s1934_s0 + $0x20] sm:$0xff]   ;;  %v948_v16 = vunpack.c.l.bf16 %v1343_v10  ;;  %v949_v17 = vunpack.c.h.bf16 %v1343_v10  ;;  %v165_v18 = vsub.s32 0, %v1338_v8  ;;  %v1396_v27 = vld [vmem:[%s1934_s0 + $0x48] sm:$0xff]   ;;  %v1405_v32 = vld [vmem:[%s1934_s0 + $0x50] sm:$0xff]  }
   0x5   :  { %v1391_v26 = vld [vmem:[%s1934_s0 + $0x40] sm:$0xff]   ;;  %v961_v28 = vunpack.c.h.bf16 %v1358_v13  ;;  %v964_v29 = vunpack.c.l.bf16 %v1363_v14  ;;  %v965_v30 = vunpack.c.h.bf16 %v1363_v14  ;;  %v968_v31 = vunpack.c.l.bf16 %v1368_v15  ;;  %v1410_v33 = vld [vmem:[%s1934_s0 + $0x58] sm:$0xff]   ;;  %v1424_v39 = vld [vmem:[%s1934_s0 + $0x68] sm:$0xff]  }
   0x6   :  { %v25_v6 = vsub.f32 %v23_v3, %v24_v4  ;;  %v969_v34 = vunpack.c.h.bf16 %v1368_v15  ;;  %v972_v35 = vunpack.c.l.bf16 %v1377_v20  ;;  %v973_v36 = vunpack.c.h.bf16 %v1377_v20  ;;  %v1419_v38 = vld [vmem:[%s1934_s0 + $0x60] sm:$0xff]   ;;  %v1433_v44 = vld [vmem:[%s1934_s0 + $0x70] sm:$0xff]   ;;  %v1438_v45 = vld [vmem:[%s1934_s0 + $0x78] sm:$0xff]  }
   0x7   :  { %v976_v37 = vunpack.c.l.bf16 %v1382_v21  ;;  %v977_v40 = vunpack.c.h.bf16 %v1382_v21  ;;  %v980_v41 = vunpack.c.l.bf16 %v1391_v26  ;;  %v1447_v50 = vld [vmem:[%s1934_s0 + $0x80] sm:$0xff]   ;;  %v1452_v51 = vld [vmem:[%s1934_s0 + $0x88] sm:$0xff]   ;;  %v1461_v56 = vld [vmem:[%s1934_s0 + $0x90] sm:$0xff]  }
   0x8   :  { %v26_v7 = vmax.f32 %v25_v6, 0.0  ;;  %v1466_v57 = vld [vmem:[%s1934_s0 + $0x98] sm:$0xff]   ;;  %v1475_v62 = vld [vmem:[%s1934_s0 + $0xa0] sm:$0xff]   ;;  %v1480_v63 = vld [vmem:[%s1934_s0 + $0xa8] sm:$0xff]  }
   0x9   :  { %v1489_v5 = vld [vmem:[%s1934_s0 + $0xb0] sm:$0xff]   ;;  %v1494_v6 = vld [vmem:[%s1934_s0 + $0xb8] sm:$0xff]   ;;  %v1503_v4 = vld [vmem:[%s1934_s0 + $0xc0] sm:$0xff]  }
   0xa   :  { %v28_v9 = vadd.f32 1e-05, %v26_v7  ;;  %v1508_v0 = vld [vmem:[%s1934_s0 + $0xc8] sm:$0xff]   ;;  %v27_v7 = vld [vmem:[%s1935_s3] sm:$0x1]  ;;  %v1520_v60 = vld [vmem:[%s1934_s0 + $0xd0] sm:$0xff]  }
   0xb   :  { %v1529_v1 = vld [vmem:[%s1934_s0 + $0xd8] sm:$0xff]   ;;  %v1534_v61 = vld [vmem:[%s1934_s0 + $0xe0] sm:$0xff]   ;;  %v1543_v54 = vld [vmem:[%s1934_s0 + $0xe8] sm:$0xff]  }
   0xc   :  { %1296 = vrsqrt.f32 %v28_v9  ;;  %v1551_v59 = vld [vmem:[%s1934_s0 + $0xf0] sm:$0xff]   ;;  %v1556_v55 = vld [vmem:[%s1934_s0 + $0xf8] sm:$0xff]   ;;  %v1061_v52 = vunpack.c.h.bf16 %v1534_v61  ;;  %v1064_v47 = vunpack.c.l.bf16 %v1543_v54 }
   0xd   :  { %v1068_v43 = vunpack.c.l.bf16 %v1551_v59  ;;  %v1072_v49 = vunpack.c.l.bf16 %v1556_v55  ;;  %v1073_v48 = vunpack.c.h.bf16 %v1556_v55 }
  0x19   :  { %v1297_v3 = vpop.eup %1296 }
  0x1a   :  { %v30_v53 = vmul.f32 %v1297_v3, %v27_v7  ;;  %v31_v3 = vld [vmem:[%s1936_s4] sm:$0x1] }
  0x1c   :  { %v32_v58 = vmul.f32 %v30_v53, %v1334_v2  ;;  %v1568_v9 = vrot.slane %v30_v53, %v165_v18 }
  0x1e   :  { %v33_v42 = vsub.f32 %v31_v3, %v32_v58  ;;  %v168_v2 = vmul.f32 %v948_v16, %v1568_v9  ;;  %v169_v53 = vmul.f32 %v949_v17, %v1568_v9  ;;  %v170_v46 = vmul.f32 %v952_v19, %v1568_v9 }
  0x1f   :  { %v171_v7 = vmul.f32 %v953_v22, %v1568_v9  ;;  %v172_v58 = vmul.f32 %v956_v23, %v1568_v9  ;;  %v173_v16 = vmul.f32 %v957_v24, %v1568_v9  ;;  %v174_v10 = vmul.f32 %v960_v25, %v1568_v9 }
  0x20   :  { %v1599_v17 = vrot.slane %v33_v42, %v165_v18  ;;  %v175_v11 = vmul.f32 %v961_v28, %v1568_v9  ;;  %v176_v19 = vmul.f32 %v964_v29, %v1568_v9  ;;  %v177_v12 = vmul.f32 %v965_v30, %v1568_v9 }
  0x21   :  { %v178_v22 = vmul.f32 %v968_v31, %v1568_v9  ;;  %v179_v8 = vmul.f32 %v969_v34, %v1568_v9  ;;  %v180_v13 = vmul.f32 %v972_v35, %v1568_v9  ;;  %v181_v18 = vmul.f32 %v973_v36, %v1568_v9 }
  0x22   :  { %v238_v23 = vadd.f32 %v1599_v17, %v168_v2  ;;  %v239_v14 = vadd.f32 %v1599_v17, %v169_v53  ;;  %v240_v24 = vadd.f32 %v1599_v17, %v170_v46  ;;  %v241_v25 = vadd.f32 %v1599_v17, %v171_v7 }
  0x23   :  { %v242_v28 = vadd.f32 %v1599_v17, %v172_v58  ;;  %v243_v15 = vadd.f32 %v1599_v17, %v173_v16  ;;  %v244_v29 = vadd.f32 %v1599_v17, %v174_v10  ;;  %v245_v30 = vadd.f32 %v1599_v17, %v175_v11 }
  0x24   :  { %vm302_vm0 = vcmp.gt.f32.partialorder %v238_v23, 0.0  ;;  %vm303_vm1 = vcmp.gt.f32.partialorder %v239_v14, 0.0  ;;  %v366_v20 = vmul.f32 0.2, %v238_v23  ;;  %v367_v31 = vmul.f32 0.2, %v239_v14 }
  0x25   :  { %vm304_vm2 = vcmp.gt.f32.partialorder %v240_v24, 0.0  ;;  %vm305_vm3 = vcmp.gt.f32.partialorder %v241_v25, 0.0  ;;  %v368_v34 = vmul.f32 0.2, %v240_v24  ;;  %v369_v35 = vmul.f32 0.2, %v241_v25 }
  0x26   :  { %v430_v36 = vsel %vm302_vm0, %v238_v23, %v366_v20  ;;  %v431_v42 = vsel %vm303_vm1, %v239_v14, %v367_v31  ;;  %vm306_vm4 = vcmp.gt.f32.partialorder %v242_v28, 0.0  ;;  %vm307_vm5 = vcmp.gt.f32.partialorder %v243_v15, 0.0 }
  0x27   :  { %v1077_v46 = vpack.c.bf16 %v431_v42, %v430_v36  ;;  %v432_v3 = vsel %vm304_vm2, %v240_v24, %v368_v34  ;;  %v433_v7 = vsel %vm305_vm3, %v241_v25, %v369_v35  ;;  %v370_v2 = vmul.f32 0.2, %v242_v28 }
  0x28   :  { %v1082_v53 = vpack.c.bf16 %v433_v7, %v432_v3  ;;  %v371_v58 = vmul.f32 0.2, %v243_v15  ;;  %vm308_vm6 = vcmp.gt.f32.partialorder %v244_v29, 0.0  ;;  %vm309_vm7 = vcmp.gt.f32.partialorder %v245_v30, 0.0 }
  0x29   :  { %1078 = vst [vmem:[%s1937_s5] sm:$0xff] %v1077_v46   ;;  %v434_v16 = vsel %vm306_vm4, %v242_v28, %v370_v2  ;;  %v372_v10 = vmul.f32 0.2, %v244_v29  ;;  %v373_v11 = vmul.f32 0.2, %v245_v30  ;;  %v246_v23 = vadd.f32 %v1599_v17, %v176_v19 }
  0x2a   :  { %1265 = vst [vmem:[%s1937_s5 + $0x8] sm:$0xff] %v1082_v53   ;;  %v435_v14 = vsel %vm307_vm5, %v243_v15, %v371_v58  ;;  %v247_v24 = vadd.f32 %v1599_v17, %v177_v12  ;;  %v248_v25 = vadd.f32 %v1599_v17, %v178_v22  ;;  %v249_v20 = vadd.f32 %v1599_v17, %v179_v8 }
  0x2b   :  { %v1087_v31 = vpack.c.bf16 %v435_v14, %v434_v16  ;;  %v436_v34 = vsel %vm308_vm6, %v244_v29, %v372_v10  ;;  %v437_v35 = vsel %vm309_vm7, %v245_v30, %v373_v11  ;;  %vm310_vm8 = vcmp.gt.f32.partialorder %v246_v23, 0.0 }
  0x2c   :  { %v1092_v28 = vpack.c.bf16 %v437_v35, %v436_v34  ;;  %vm311_vm9 = vcmp.gt.f32.partialorder %v247_v24, 0.0  ;;  %v374_v36 = vmul.f32 0.2, %v246_v23  ;;  %v375_v42 = vmul.f32 0.2, %v247_v24 }
  0x2d   :  { %1266 = vst [vmem:[%s1937_s5 + $0x10] sm:$0xff] %v1087_v31   ;;  %vm312_vm10 = vcmp.gt.f32.partialorder %v248_v25, 0.0  ;;  %vm313_vm11 = vcmp.gt.f32.partialorder %v249_v20, 0.0  ;;  %v376_v19 = vmul.f32 0.2, %v248_v25  ;;  %v250_v15 = vadd.f32 %v1599_v17, %v180_v13 }
  0x2e   :  { %v377_v12 = vmul.f32 0.2, %v249_v20  ;;  %1267 = vst [vmem:[%s1937_s5 + $0x18] sm:$0xff] %v1092_v28   ;;  %v438_v22 = vsel %vm310_vm8, %v246_v23, %v374_v36  ;;  %v439_v8 = vsel %vm311_vm9, %v247_v24, %v375_v42  ;;  %v251_v29 = vadd.f32 %v1599_v17, %v181_v18 }
  0x2f   :  { %v1097_v30 = vpack.c.bf16 %v439_v8, %v438_v22  ;;  %v440_v46 = vsel %vm312_vm10, %v248_v25, %v376_v19  ;;  %v182_v7 = vmul.f32 %v976_v37, %v1568_v9  ;;  %vm314_vm12 = vcmp.gt.f32.partialorder %v250_v15, 0.0 }
  0x30   :  { %v441_v3 = vsel %vm313_vm11, %v249_v20, %v377_v12  ;;  %vm315_vm13 = vcmp.gt.f32.partialorder %v251_v29, 0.0  ;;  %v378_v53 = vmul.f32 0.2, %v250_v15  ;;  %v379_v58 = vmul.f32 0.2, %v251_v29 }
  0x31   :  { %v1102_v2 = vpack.c.bf16 %v441_v3, %v440_v46  ;;  %1268 = vst [vmem:[%s1937_s5 + $0x20] sm:$0xff] %v1097_v30   ;;  %v183_v13 = vmul.f32 %v977_v40, %v1568_v9  ;;  %v252_v18 = vadd.f32 %v1599_v17, %v182_v7  ;;  %v184_v16 = vmul.f32 %v980_v41, %v1568_v9 }
  0x32   :  { %v442_v37 = vsel %vm314_vm12, %v250_v15, %v378_v53  ;;  %v1938_v10 = vunpack.c.h.bf16 %v1391_v26  ;;  %v1939_v23 = vunpack.c.l.bf16 %v1396_v27  ;;  %v1940_v40 = vunpack.c.h.bf16 %v1396_v27 }
  0x33   :  { %1269 = vst [vmem:[%s1937_s5 + $0x28] sm:$0xff] %v1102_v2   ;;  %v443_v24 = vsel %vm315_vm13, %v251_v29, %v379_v58  ;;  %v253_v41 = vadd.f32 %v1599_v17, %v183_v13  ;;  %vm316_vm14 = vcmp.gt.f32.partialorder %v252_v18, 0.0  ;;  %v380_v25 = vmul.f32 0.2, %v252_v18 }
  0x34   :  { %v185_v11 = vmul.f32 %v1938_v10, %v1568_v9  ;;  %v186_v21 = vmul.f32 %v1939_v23, %v1568_v9  ;;  %v187_v14 = vmul.f32 %v1940_v40, %v1568_v9  ;;  %v1107_v20 = vpack.c.bf16 %v443_v24, %v442_v37 }
  0x35   :  { %v254_v31 = vadd.f32 %v1599_v17, %v184_v16  ;;  %vm317_vm15 = vcmp.gt.f32.partialorder %v253_v41, 0.0  ;;  %v381_v35 = vmul.f32 0.2, %v253_v41  ;;  %v444_v28 = vsel %vm316_vm14, %v252_v18, %v380_v25 }
  0x36   :  { %v255_v34 = vadd.f32 %v1599_v17, %v185_v11  ;;  %v256_v26 = vadd.f32 %v1599_v17, %v186_v21  ;;  %v257_v36 = vadd.f32 %v1599_v17, %v187_v14  ;;  %1270 = vst [vmem:[%s1937_s5 + $0x30] sm:$0xff] %v1107_v20   ;;  %v1941_v3 = vunpack.c.l.bf16 %v1405_v32 }
  0x37   :  { %vm318_vm0 = vcmp.gt.f32.partialorder %v254_v31, 0.0  ;;  %v382_v27 = vmul.f32 0.2, %v254_v31  ;;  %v445_v19 = vsel %vm317_vm15, %v253_v41, %v381_v35  ;;  %v1942_v2 = vunpack.c.h.bf16 %v1405_v32 }
  0x38   :  { %vm319_vm1 = vcmp.gt.f32.partialorder %v255_v34, 0.0  ;;  %v383_v42 = vmul.f32 0.2, %v255_v34  ;;  %vm320_vm2 = vcmp.gt.f32.partialorder %v256_v26, 0.0  ;;  %vm321_vm3 = vcmp.gt.f32.partialorder %v257_v36, 0.0 }
  0x39   :  { %v384_v12 = vmul.f32 0.2, %v256_v26  ;;  %v1112_v22 = vpack.c.bf16 %v445_v19, %v444_v28  ;;  %v446_v8 = vsel %vm318_vm0, %v254_v31, %v382_v27  ;;  %v385_v29 = vmul.f32 0.2, %v257_v36 }
  0x3a   :  { %v447_v15 = vsel %vm319_vm1, %v255_v34, %v383_v42  ;;  %v188_v7 = vmul.f32 %v1941_v3, %v1568_v9  ;;  %v189_v53 = vmul.f32 %v1942_v2, %v1568_v9  ;;  %v1943_v13 = vunpack.c.l.bf16 %v1410_v33 }
  0x3b   :  { %v1117_v30 = vpack.c.bf16 %v447_v15, %v446_v8  ;;  %v448_v46 = vsel %vm320_vm2, %v256_v26, %v384_v12  ;;  %1271 = vst [vmem:[%s1937_s5 + $0x38] sm:$0xff] %v1112_v22   ;;  %v449_v58 = vsel %vm321_vm3, %v257_v36, %v385_v29  ;;  %v1944_v16 = vunpack.c.h.bf16 %v1410_v33 }
  0x3c   :  { %v190_v18 = vmul.f32 %v1943_v13, %v1568_v9  ;;  %v1945_v10 = vunpack.c.l.bf16 %v1419_v38  ;;  %v1122_v32 = vpack.c.bf16 %v449_v58, %v448_v46  ;;  %v258_v23 = vadd.f32 %v1599_v17, %v188_v7 }
  0x3d   :  { %v191_v37 = vmul.f32 %v1944_v16, %v1568_v9  ;;  %1272 = vst [vmem:[%s1937_s5 + $0x40] sm:$0xff] %v1117_v30   ;;  %v259_v21 = vadd.f32 %v1599_v17, %v189_v53  ;;  %v1946_v40 = vunpack.c.h.bf16 %v1419_v38  ;;  %v1947_v25 = vunpack.c.l.bf16 %v1424_v39 }
  0x3e   :  { %v192_v11 = vmul.f32 %v1945_v10, %v1568_v9  ;;  %v260_v33 = vadd.f32 %v1599_v17, %v190_v18  ;;  %1273 = vst [vmem:[%s1937_s5 + $0x48] sm:$0xff] %v1122_v32   ;;  %vm322_vm4 = vcmp.gt.f32.partialorder %v258_v23, 0.0  ;;  %v386_v31 = vmul.f32 0.2, %v258_v23 }
  0x3f   :  { %v193_v14 = vmul.f32 %v1946_v40, %v1568_v9  ;;  %v261_v24 = vadd.f32 %v1599_v17, %v191_v37  ;;  %v194_v20 = vmul.f32 %v1947_v25, %v1568_v9  ;;  %vm323_vm5 = vcmp.gt.f32.partialorder %v259_v21, 0.0 }
  0x40   :  { %v262_v41 = vadd.f32 %v1599_v17, %v192_v11  ;;  %v387_v34 = vmul.f32 0.2, %v259_v21  ;;  %vm324_vm6 = vcmp.gt.f32.partialorder %v260_v33, 0.0  ;;  %v388_v38 = vmul.f32 0.2, %v260_v33 }
  0x41   :  { %vm325_vm7 = vcmp.gt.f32.partialorder %v261_v24, 0.0  ;;  %v389_v26 = vmul.f32 0.2, %v261_v24  ;;  %v450_v35 = vsel %vm322_vm4, %v258_v23, %v386_v31  ;;  %v263_v36 = vadd.f32 %v1599_v17, %v193_v14 }
  0x42   :  { %v451_v28 = vsel %vm323_vm5, %v259_v21, %v387_v34  ;;  %vm326_vm8 = vcmp.gt.f32.partialorder %v262_v41, 0.0  ;;  %v452_v42 = vsel %vm324_vm6, %v260_v33, %v388_v38  ;;  %v390_v12 = vmul.f32 0.2, %v262_v41 }
  0x43   :  { %v1127_v27 = vpack.c.bf16 %v451_v28, %v450_v35  ;;  %v453_v19 = vsel %vm325_vm7, %v261_v24, %v389_v26  ;;  %vm327_vm9 = vcmp.gt.f32.partialorder %v263_v36, 0.0  ;;  %v391_v8 = vmul.f32 0.2, %v263_v36 }
  0x44   :  { %v1132_v22 = vpack.c.bf16 %v453_v19, %v452_v42  ;;  %v1948_v15 = vunpack.c.h.bf16 %v1424_v39  ;;  %v454_v30 = vsel %vm326_vm8, %v262_v41, %v390_v12  ;;  %v264_v46 = vadd.f32 %v1599_v17, %v194_v20 }
  0x45   :  { %1274 = vst [vmem:[%s1937_s5 + $0x50] sm:$0xff] %v1127_v27   ;;  %v1949_v3 = vunpack.c.l.bf16 %v1433_v44  ;;  %v1950_v2 = vunpack.c.h.bf16 %v1433_v44  ;;  %v455_v39 = vsel %vm327_vm9, %v263_v36, %v391_v8  ;;  %v1951_v13 = vunpack.c.l.bf16 %v1438_v45 }
  0x46   :  { %v195_v29 = vmul.f32 %v1948_v15, %v1568_v9  ;;  %1275 = vst [vmem:[%s1937_s5 + $0x58] sm:$0xff] %v1132_v22   ;;  %v1952_v16 = vunpack.c.h.bf16 %v1438_v45  ;;  %v1137_v10 = vpack.c.bf16 %v455_v39, %v454_v30  ;;  %vm328_vm10 = vcmp.gt.f32.partialorder %v264_v46, 0.0 }
  0x47   :  { %v196_v7 = vmul.f32 %v1949_v3, %v1568_v9  ;;  %v197_v53 = vmul.f32 %v1950_v2, %v1568_v9  ;;  %v198_v18 = vmul.f32 %v1951_v13, %v1568_v9  ;;  %v392_v11 = vmul.f32 0.2, %v264_v46 }
  0x48   :  { %v265_v58 = vadd.f32 %v1599_v17, %v195_v29  ;;  %v199_v37 = vmul.f32 %v1952_v16, %v1568_v9  ;;  %1276 = vst [vmem:[%s1937_s5 + $0x60] sm:$0xff] %v1137_v10   ;;  %v1953_v38 = vunpack.c.l.bf16 %v1447_v50  ;;  %v1954_v35 = vunpack.c.h.bf16 %v1447_v50 }
  0x49   :  { %v266_v44 = vadd.f32 %v1599_v17, %v196_v7  ;;  %v267_v23 = vadd.f32 %v1599_v17, %v197_v53  ;;  %v268_v21 = vadd.f32 %v1599_v17, %v198_v18  ;;  %v456_v40 = vsel %vm328_vm10, %v264_v46, %v392_v11 }
  0x4a   :  { %vm329_vm11 = vcmp.gt.f32.partialorder %v265_v58, 0.0  ;;  %v393_v32 = vmul.f32 0.2, %v265_v58  ;;  %v269_v45 = vadd.f32 %v1599_v17, %v199_v37  ;;  %v200_v26 = vmul.f32 %v1953_v38, %v1568_v9 }
  0x4b   :  { %vm330_vm12 = vcmp.gt.f32.partialorder %v266_v44, 0.0  ;;  %v394_v14 = vmul.f32 0.2, %v266_v44  ;;  %vm331_vm13 = vcmp.gt.f32.partialorder %v267_v23, 0.0  ;;  %v395_v24 = vmul.f32 0.2, %v267_v23 }
  0x4c   :  { %v457_v33 = vsel %vm329_vm11, %v265_v58, %v393_v32  ;;  %vm332_vm14 = vcmp.gt.f32.partialorder %v268_v21, 0.0  ;;  %vm333_vm15 = vcmp.gt.f32.partialorder %v269_v45, 0.0  ;;  %v396_v20 = vmul.f32 0.2, %v268_v21 }
  0x4d   :  { %v1142_v41 = vpack.c.bf16 %v457_v33, %v456_v40  ;;  %v458_v25 = vsel %vm330_vm12, %v266_v44, %v394_v14  ;;  %v459_v31 = vsel %vm331_vm13, %v267_v23, %v395_v24  ;;  %v397_v34 = vmul.f32 0.2, %v269_v45 }
  0x4e   :  { %v201_v28 = vmul.f32 %v1954_v35, %v1568_v9  ;;  %v1147_v36 = vpack.c.bf16 %v459_v31, %v458_v25  ;;  %v460_v27 = vsel %vm332_vm14, %v268_v21, %v396_v20  ;;  %v1955_v42 = vunpack.c.l.bf16 %v1452_v51 }
  0x4f   :  { %1277 = vst [vmem:[%s1937_s5 + $0x68] sm:$0xff] %v1142_v41   ;;  %v1956_v12 = vunpack.c.h.bf16 %v1452_v51  ;;  %v461_v8 = vsel %vm333_vm15, %v269_v45, %v397_v34  ;;  %v270_v15 = vadd.f32 %v1599_v17, %v200_v26  ;;  %v1957_v29 = vunpack.c.l.bf16 %v1461_v56 }
  0x50   :  { %v202_v19 = vmul.f32 %v1955_v42, %v1568_v9  ;;  %v271_v50 = vadd.f32 %v1599_v17, %v201_v28  ;;  %1278 = vst [vmem:[%s1937_s5 + $0x70] sm:$0xff] %v1147_v36   ;;  %v1152_v46 = vpack.c.bf16 %v461_v8, %v460_v27  ;;  %v1958_v51 = vunpack.c.h.bf16 %v1461_v56 }
  0x51   :  { %v203_v22 = vmul.f32 %v1956_v12, %v1568_v9  ;;  %v204_v30 = vmul.f32 %v1957_v29, %v1568_v9  ;;  %vm334_vm0 = vcmp.gt.f32.partialorder %v270_v15, 0.0  ;;  %v398_v53 = vmul.f32 0.2, %v270_v15 }
  0x52   :  { %v272_v3 = vadd.f32 %v1599_v17, %v202_v19  ;;  %v205_v2 = vmul.f32 %v1958_v51, %v1568_v9  ;;  %vm335_vm1 = vcmp.gt.f32.partialorder %v271_v50, 0.0  ;;  %v399_v39 = vmul.f32 0.2, %v271_v50  ;;  %1279 = vst [vmem:[%s1937_s5 + $0x78] sm:$0xff] %v1152_v46  }
  0x53   :  { %v273_v7 = vadd.f32 %v1599_v17, %v203_v22  ;;  %v462_v18 = vsel %vm334_vm0, %v270_v15, %v398_v53  ;;  %v274_v37 = vadd.f32 %v1599_v17, %v204_v30  ;;  %v1959_v32 = vunpack.c.l.bf16 %v1466_v57 }
  0x54   :  { %vm336_vm2 = vcmp.gt.f32.partialorder %v272_v3, 0.0  ;;  %v400_v58 = vmul.f32 0.2, %v272_v3  ;;  %v463_v16 = vsel %vm335_vm1, %v271_v50, %v399_v39  ;;  %v275_v10 = vadd.f32 %v1599_v17, %v205_v2 }
  0x55   :  { %vm337_vm3 = vcmp.gt.f32.partialorder %v273_v7, 0.0  ;;  %v401_v13 = vmul.f32 0.2, %v273_v7  ;;  %v1157_v56 = vpack.c.bf16 %v463_v16, %v462_v18  ;;  %v206_v23 = vmul.f32 %v1959_v32, %v1568_v9 }
  0x56   :  { %v464_v11 = vsel %vm336_vm2, %v272_v3, %v400_v58  ;;  %vm338_vm4 = vcmp.gt.f32.partialorder %v274_v37, 0.0  ;;  %vm339_vm5 = vcmp.gt.f32.partialorder %v275_v10, 0.0  ;;  %v402_v40 = vmul.f32 0.2, %v274_v37 }
  0x57   :  { %v465_v44 = vsel %vm337_vm3, %v273_v7, %v401_v13  ;;  %1280 = vst [vmem:[%s1937_s5 + $0x80] sm:$0xff] %v1157_v56   ;;  %v403_v14 = vmul.f32 0.2, %v275_v10  ;;  %v1960_v45 = vunpack.c.h.bf16 %v1466_v57  ;;  %v276_v24 = vadd.f32 %v1599_v17, %v206_v23 }
  0x58   :  { %v1162_v21 = vpack.c.bf16 %v465_v44, %v464_v11  ;;  %v1961_v41 = vunpack.c.l.bf16 %v1475_v62  ;;  %v466_v20 = vsel %vm338_vm4, %v274_v37, %v402_v40  ;;  %v1962_v31 = vunpack.c.h.bf16 %v1475_v62 }
  0x59   :  { %v207_v33 = vmul.f32 %v1960_v45, %v1568_v9  ;;  %v1963_v38 = vunpack.c.l.bf16 %v1480_v63  ;;  %v1964_v26 = vunpack.c.h.bf16 %v1480_v63  ;;  %v467_v28 = vsel %vm339_vm5, %v275_v10, %v403_v14 }
  0x5a   :  { %v208_v25 = vmul.f32 %v1961_v41, %v1568_v9  ;;  %1281 = vst [vmem:[%s1937_s5 + $0x88] sm:$0xff] %v1162_v21   ;;  %v209_v34 = vmul.f32 %v1962_v31, %v1568_v9  ;;  %vm340_vm6 = vcmp.gt.f32.partialorder %v276_v24, 0.0  ;;  %v404_v27 = vmul.f32 0.2, %v276_v24 }
  0x5b   :  { %v210_v57 = vmul.f32 %v1963_v38, %v1568_v9  ;;  %v211_v35 = vmul.f32 %v1964_v26, %v1568_v9  ;;  %v277_v36 = vadd.f32 %v1599_v17, %v207_v33  ;;  %v1167_v42 = vpack.c.bf16 %v467_v28, %v466_v20 }
  0x5c   :  { %v278_v19 = vadd.f32 %v1599_v17, %v208_v25  ;;  %v279_v12 = vadd.f32 %v1599_v17, %v209_v34  ;;  %v468_v8 = vsel %vm340_vm6, %v276_v24, %v404_v27  ;;  %v1965_v39 = vunpack.c.l.bf16 %v1489_v5 }
  0x5d   :  { %v280_v62 = vadd.f32 %v1599_v17, %v210_v57  ;;  %vm341_vm7 = vcmp.gt.f32.partialorder %v277_v36, 0.0  ;;  %v405_v22 = vmul.f32 0.2, %v277_v36  ;;  %v281_v15 = vadd.f32 %v1599_v17, %v211_v35  ;;  %1282 = vst [vmem:[%s1937_s5 + $0x90] sm:$0xff] %v1167_v42  }
  0x5e   :  { %vm342_vm8 = vcmp.gt.f32.partialorder %v278_v19, 0.0  ;;  %vm343_vm9 = vcmp.gt.f32.partialorder %v279_v12, 0.0  ;;  %v406_v63 = vmul.f32 0.2, %v278_v19  ;;  %v407_v50 = vmul.f32 0.2, %v279_v12 }
  0x5f   :  { %v469_v29 = vsel %vm341_vm7, %v277_v36, %v405_v22  ;;  %vm344_vm10 = vcmp.gt.f32.partialorder %v280_v62, 0.0  ;;  %vm345_vm11 = vcmp.gt.f32.partialorder %v281_v15, 0.0  ;;  %v408_v30 = vmul.f32 0.2, %v280_v62 }
  0x60   :  { %v1172_v46 = vpack.c.bf16 %v469_v29, %v468_v8  ;;  %v470_v3 = vsel %vm342_vm8, %v278_v19, %v406_v63  ;;  %v471_v7 = vsel %vm343_vm9, %v279_v12, %v407_v50  ;;  %v409_v51 = vmul.f32 0.2, %v281_v15 }
  0x61   :  { %v1177_v2 = vpack.c.bf16 %v471_v7, %v470_v3  ;;  %v472_v53 = vsel %vm344_vm10, %v280_v62, %v408_v30  ;;  %v212_v58 = vmul.f32 %v1965_v39, %v1568_v9  ;;  %v1966_v13 = vunpack.c.h.bf16 %v1489_v5 }
  0x62   :  { %1283 = vst [vmem:[%s1937_s5 + $0x98] sm:$0xff] %v1172_v46   ;;  %v473_v16 = vsel %vm345_vm11, %v281_v15, %v409_v51  ;;  %v1967_v37 = vunpack.c.l.bf16 %v1494_v6  ;;  %v1968_v56 = vunpack.c.h.bf16 %v1494_v6  ;;  %v1969_v44 = vunpack.c.l.bf16 %v1503_v4 }
  0x63   :  { %v213_v18 = vmul.f32 %v1966_v13, %v1568_v9  ;;  %1284 = vst [vmem:[%s1937_s5 + $0xa0] sm:$0xff] %v1177_v2   ;;  %v1182_v5 = vpack.c.bf16 %v473_v16, %v472_v53  ;;  %v282_v23 = vadd.f32 %v1599_v17, %v212_v58  ;;  %v1970_v40 = vunpack.c.h.bf16 %v1503_v4 }
  0x64   :  { %v214_v10 = vmul.f32 %v1967_v37, %v1568_v9  ;;  %v215_v11 = vmul.f32 %v1968_v56, %v1568_v9  ;;  %v216_v32 = vmul.f32 %v1969_v44, %v1568_v9  ;;  %v1971_v24 = vunpack.c.l.bf16 %v1508_v0 }
  0x65   :  { %v283_v21 = vadd.f32 %v1599_v17, %v213_v18  ;;  %v217_v14 = vmul.f32 %v1970_v40, %v1568_v9  ;;  %1285 = vst [vmem:[%s1937_s5 + $0xa8] sm:$0xff] %v1182_v5   ;;  %vm346_vm12 = vcmp.gt.f32.partialorder %v282_v23, 0.0  ;;  %v410_v25 = vmul.f32 0.2, %v282_v23 }
  0x66   :  { %v284_v6 = vadd.f32 %v1599_v17, %v214_v10  ;;  %v285_v45 = vadd.f32 %v1599_v17, %v215_v11  ;;  %v286_v33 = vadd.f32 %v1599_v17, %v216_v32  ;;  %v218_v41 = vmul.f32 %v1971_v24, %v1568_v9 }
  0x67   :  { %vm347_vm13 = vcmp.gt.f32.partialorder %v283_v21, 0.0  ;;  %v411_v20 = vmul.f32 0.2, %v283_v21  ;;  %v474_v34 = vsel %vm346_vm12, %v282_v23, %v410_v25  ;;  %v287_v57 = vadd.f32 %v1599_v17, %v217_v14 }
  0x68   :  { %vm348_vm14 = vcmp.gt.f32.partialorder %v284_v6, 0.0  ;;  %vm349_vm15 = vcmp.gt.f32.partialorder %v285_v45, 0.0  ;;  %v412_v4 = vmul.f32 0.2, %v284_v6  ;;  %v413_v31 = vmul.f32 0.2, %v285_v45 }
  0x69   :  { %v475_v38 = vsel %vm347_vm13, %v283_v21, %v411_v20  ;;  %vm350_vm0 = vcmp.gt.f32.partialorder %v286_v33, 0.0  ;;  %v414_v36 = vmul.f32 0.2, %v286_v33  ;;  %vm351_vm1 = vcmp.gt.f32.partialorder %v287_v57, 0.0 }
  0x6a   :  { %v1187_v26 = vpack.c.bf16 %v475_v38, %v474_v34  ;;  %v476_v35 = vsel %vm348_vm14, %v284_v6, %v412_v4  ;;  %v477_v28 = vsel %vm349_vm15, %v285_v45, %v413_v31  ;;  %v415_v42 = vmul.f32 0.2, %v287_v57 }
  0x6b   :  { %v1192_v27 = vpack.c.bf16 %v477_v28, %v476_v35  ;;  %v1972_v19 = vunpack.c.h.bf16 %v1508_v0  ;;  %v478_v62 = vsel %vm350_vm0, %v286_v33, %v414_v36  ;;  %v288_v22 = vadd.f32 %v1599_v17, %v218_v41 }
  0x6c   :  { %1286 = vst [vmem:[%s1937_s5 + $0xb0] sm:$0xff] %v1187_v26   ;;  %v1973_v8 = vunpack.c.l.bf16 %v1520_v60  ;;  %v1974_v63 = vunpack.c.h.bf16 %v1520_v60  ;;  %v479_v0 = vsel %vm351_vm1, %v287_v57, %v415_v42  ;;  %v1975_v30 = vunpack.c.l.bf16 %v1529_v1 }
  0x6d   :  { %v219_v12 = vmul.f32 %v1972_v19, %v1568_v9  ;;  %1287 = vst [vmem:[%s1937_s5 + $0xb8] sm:$0xff] %v1192_v27   ;;  %v1976_v3 = vunpack.c.h.bf16 %v1529_v1  ;;  %v1197_v51 = vpack.c.bf16 %v479_v0, %v478_v62  ;;  %vm352_vm2 = vcmp.gt.f32.partialorder %v288_v22, 0.0 }
  0x6e   :  { %v220_v15 = vmul.f32 %v1973_v8, %v1568_v9  ;;  %v221_v50 = vmul.f32 %v1974_v63, %v1568_v9  ;;  %v222_v46 = vmul.f32 %v1975_v30, %v1568_v9  ;;  %v416_v2 = vmul.f32 0.2, %v288_v22 }
  0x6f   :  { %v289_v29 = vadd.f32 %v1599_v17, %v219_v12  ;;  %v223_v7 = vmul.f32 %v1976_v3, %v1568_v9  ;;  %1288 = vst [vmem:[%s1937_s5 + $0xc0] sm:$0xff] %v1197_v51   ;;  %v1977_v5 = vunpack.c.l.bf16 %v1534_v61  ;;  %v225_v21 = vmul.f32 %v1061_v52, %v1568_v9 }
  0x70   :  { %v290_v60 = vadd.f32 %v1599_v17, %v220_v15  ;;  %v291_v39 = vadd.f32 %v1599_v17, %v221_v50  ;;  %v292_v58 = vadd.f32 %v1599_v17, %v222_v46  ;;  %v480_v13 = vsel %vm352_vm2, %v288_v22, %v416_v2 }
  0x71   :  { %vm353_vm3 = vcmp.gt.f32.partialorder %v289_v29, 0.0  ;;  %v417_v53 = vmul.f32 0.2, %v289_v29  ;;  %v293_v1 = vadd.f32 %v1599_v17, %v223_v7  ;;  %v224_v23 = vmul.f32 %v1977_v5, %v1568_v9 }
  0x72   :  { %vm354_vm4 = vcmp.gt.f32.partialorder %v290_v60, 0.0  ;;  %v418_v18 = vmul.f32 0.2, %v290_v60  ;;  %vm355_vm5 = vcmp.gt.f32.partialorder %v291_v39, 0.0  ;;  %v419_v37 = vmul.f32 0.2, %v291_v39 }
  0x73   :  { %v481_v16 = vsel %vm353_vm3, %v289_v29, %v417_v53  ;;  %vm356_vm6 = vcmp.gt.f32.partialorder %v292_v58, 0.0  ;;  %vm357_vm7 = vcmp.gt.f32.partialorder %v293_v1, 0.0  ;;  %v420_v11 = vmul.f32 0.2, %v292_v58 }
  0x74   :  { %v1202_v10 = vpack.c.bf16 %v481_v16, %v480_v13  ;;  %v482_v56 = vsel %vm354_vm4, %v290_v60, %v418_v18  ;;  %v483_v44 = vsel %vm355_vm5, %v291_v39, %v419_v37  ;;  %v421_v32 = vmul.f32 0.2, %v293_v1 }
  0x75   :  { %v1207_v40 = vpack.c.bf16 %v483_v44, %v482_v56  ;;  %v484_v14 = vsel %vm356_vm6, %v292_v58, %v420_v11  ;;  %v226_v6 = vmul.f32 %v1064_v47, %v1568_v9  ;;  %v1978_v45 = vunpack.c.h.bf16 %v1543_v54 }
  0x76   :  { %1289 = vst [vmem:[%s1937_s5 + $0xc8] sm:$0xff] %v1202_v10   ;;  %v485_v24 = vsel %vm357_vm7, %v293_v1, %v421_v32  ;;  %v294_v41 = vadd.f32 %v1599_v17, %v224_v23  ;;  %v295_v61 = vadd.f32 %v1599_v17, %v225_v21  ;;  %v228_v52 = vmul.f32 %v1068_v43, %v1568_v9 }
  0x77   :  { %v227_v33 = vmul.f32 %v1978_v45, %v1568_v9  ;;  %1290 = vst [vmem:[%s1937_s5 + $0xd0] sm:$0xff] %v1207_v40   ;;  %v1212_v25 = vpack.c.bf16 %v485_v24, %v484_v14  ;;  %v296_v47 = vadd.f32 %v1599_v17, %v226_v6  ;;  %v1979_v54 = vunpack.c.h.bf16 %v1551_v59 }
  0x78   :  { %vm358_vm8 = vcmp.gt.f32.partialorder %v294_v41, 0.0  ;;  %vm359_vm9 = vcmp.gt.f32.partialorder %v295_v61, 0.0  ;;  %v422_v31 = vmul.f32 0.2, %v294_v41  ;;  %v423_v34 = vmul.f32 0.2, %v295_v61 }
  0x79   :  { %v297_v20 = vadd.f32 %v1599_v17, %v227_v33  ;;  %v229_v4 = vmul.f32 %v1979_v54, %v1568_v9  ;;  %1291 = vst [vmem:[%s1937_s5 + $0xd8] sm:$0xff] %v1212_v25   ;;  %vm360_vm10 = vcmp.gt.f32.partialorder %v296_v47, 0.0  ;;  %v424_v43 = vmul.f32 0.2, %v296_v47 }
  0x7a   :  { %v486_v57 = vsel %vm358_vm8, %v294_v41, %v422_v31  ;;  %v487_v26 = vsel %vm359_vm9, %v295_v61, %v423_v34  ;;  %v298_v35 = vadd.f32 %v1599_v17, %v228_v52  ;;  %v230_v42 = vmul.f32 %v1072_v49, %v1568_v9 }
  0x7b   :  { %vm361_vm11 = vcmp.gt.f32.partialorder %v297_v20, 0.0  ;;  %v425_v38 = vmul.f32 0.2, %v297_v20  ;;  %v299_v28 = vadd.f32 %v1599_v17, %v229_v4  ;;  %v1217_v59 = vpack.c.bf16 %v487_v26, %v486_v57 }
  0x7c   :  { %v488_v36 = vsel %vm360_vm10, %v296_v47, %v424_v43  ;;  %vm362_vm12 = vcmp.gt.f32.partialorder %v298_v35, 0.0  ;;  %v426_v12 = vmul.f32 0.2, %v298_v35  ;;  %v231_v22 = vmul.f32 %v1073_v48, %v1568_v9 }
  0x7d   :  { %v489_v27 = vsel %vm361_vm11, %v297_v20, %v425_v38  ;;  %vm363_vm13 = vcmp.gt.f32.partialorder %v299_v28, 0.0  ;;  %1292 = vst [vmem:[%s1937_s5 + $0xe0] sm:$0xff] %v1217_v59   ;;  %v427_v62 = vmul.f32 0.2, %v299_v28  ;;  %v300_v8 = vadd.f32 %v1599_v17, %v230_v42 }
  0x7e   :  { %v1222_v19 = vpack.c.bf16 %v489_v27, %v488_v36  ;;  %v490_v49 = vsel %vm362_vm12, %v298_v35, %v426_v12  ;;  %v301_v63 = vadd.f32 %v1599_v17, %v231_v22 }
  0x7f   :  { %v491_v15 = vsel %vm363_vm13, %v299_v28, %v427_v62  ;;  %vm364_vm14 = vcmp.gt.f32.partialorder %v300_v8, 0.0  ;;  %v428_v50 = vmul.f32 0.2, %v300_v8 }
  0x80   :  { %1293 = vst [vmem:[%s1937_s5 + $0xe8] sm:$0xff] %v1222_v19   ;;  %v1227_v0 = vpack.c.bf16 %v491_v15, %v490_v49  ;;  %vm365_vm15 = vcmp.gt.f32.partialorder %v301_v63, 0.0  ;;  %v429_v29 = vmul.f32 0.2, %v301_v63 }
  0x81   :  { %v492_v30 = vsel %vm364_vm14, %v300_v8, %v428_v50 }
  0x82   :  { %1294 = vst [vmem:[%s1937_s5 + $0xf0] sm:$0xff] %v1227_v0   ;;  %v493_v48 = vsel %vm365_vm15, %v301_v63, %v429_v29 }
  0x83   :  { %v1232_v55 = vpack.c.bf16 %v493_v48, %v492_v30 }
  0x85   :  { %1295 = vst [vmem:[%s1937_s5 + $0xf8] sm:$0xff] %v1232_v55  }

// kernel: discriminator_forward.11
= control target key start
LH: loop header
LB: loop body
LE: loop exit
PB: predicated region body
PF: predicated region fallthrough
CT: control target
= control target key end

     0   :  { %s981_s1 = inlined_call_operand.vmem [shape: bf16[256,128], index: 1, kind: input, shape index: {}]   ;;  %s982_s0 = inlined_call_operand.vmem [shape: bf16[128,256], index: 0, kind: input, shape index: {}]   ;;  %s983_s2 = inlined_call_operand.vmem [shape: bf16[128,128], index: 2, kind: output, shape index: {0}]   ;;  %s984_s3 = inlined_call_operand.vmem [shape: f32[8,128], index: 3, kind: output, shape index: {1}]   ;;  %s985_s4 = inlined_call_operand.vmem [shape: f32[8,128], index: 4, kind: output, shape index: {2}]  }
   0x1   :  { %v766_v0 = vld [vmem:[%s981_s1 + $0x78] sm:$0xff]   ;;  %v768_v2 = vld [vmem:[%s981_s1 + $0x70] sm:$0xff]   ;;  %v770_v4 = vld [vmem:[%s981_s1 + $0x68] sm:$0xff]  }
   0x2   :  { %v767_v1 = vld [vmem:[%s981_s1 + $0x38] sm:$0xff]   ;;  %686 = vmatprep.subr.bf16.mxu0 %v766_v0  ;;  %750 = vmatprep.subr.bf16.mxu1 %v766_v0  ;;  %v769_v3 = vld [vmem:[%s981_s1 + $0x30] sm:$0xff]   ;;  %v771_v5 = vld [vmem:[%s981_s1 + $0x28] sm:$0xff]  }
   0x3   :  { %687 = vmatpush3.bf16.msra.mxu0 %v767_v1  ;;  %758 = vmatpush3.bf16.msra.mxu1 %v767_v1  ;;  %v772_v6 = vld [vmem:[%s981_s1 + $0x60] sm:$0xff]   ;;  %v774_v8 = vld [vmem:[%s981_s1 + $0x58] sm:$0xff]   ;;  %v776_v10 = vld [vmem:[%s981_s1 + $0x50] sm:$0xff]  }
   0x4   :  { %688 = vmatprep.subr.bf16.mxu0 %v768_v2  ;;  %751 = vmatprep.subr.bf16.mxu1 %v768_v2  ;;  %v773_v7 = vld [vmem:[%s981_s1 + $0x20] sm:$0xff]   ;;  %v775_v9 = vld [vmem:[%s981_s1 + $0x18] sm:$0xff]   ;;  %v777_v12 = vld [vmem:[%s981_s1 + $0x10] sm:$0xff]  }
   0x5   :  { %v784_v11 = vld [vmem:[%s982_s0 + $0x4] ss:$8 sps:$4 sm:$0xff]   ;;  %v782_v18 = vld [vmem:[%s982_s0] ss:$8 sps:$4 sm:$0xff]   ;;  %v785_v20 = vld [vmem:[%s982_s0 + $0x14] ss:$8 sps:$4 sm:$0xff]  }
   0x6   :  { %v790_v13 = vld [vmem:[%s982_s0 + $0x44] ss:$8 sps:$4 sm:$0xff]   ;;  %307 = vmatprep.mubr.bf16.mxu0 %v784_v11  ;;  %v788_v19 = vld [vmem:[%s982_s0 + $0x40] ss:$8 sps:$4 sm:$0xff]   ;;  %v794_v21 = vld [vmem:[%s982_s0 + $0x54] ss:$8 sps:$4 sm:$0xff]  }
   0x7   :  { %689 = vmatpush3.bf16.msra.mxu0 %v769_v3  ;;  %759 = vmatpush3.bf16.msra.mxu1 %v769_v3  ;;  %v778_v14 = vld [vmem:[%s981_s1 + $0x48] sm:$0xff]   ;;  %v780_v16 = vld [vmem:[%s981_s1 + $0x40] sm:$0xff]   ;;  %v787_v22 = vld [vmem:[%s982_s0 + $0x10] ss:$8 sps:$4 sm:$0xff]  }
   0x8   :  { %690 = vmatprep.subr.bf16.mxu0 %v770_v4  ;;  %752 = vmatprep.subr.bf16.mxu1 %v770_v4  ;;  %v779_v15 = vld [vmem:[%s981_s1 + $0x8] sm:$0xff]   ;;  %v781_v17 = vld [vmem:[%s981_s1] sm:$0xff]   ;;  %v796_v23 = vld [vmem:[%s982_s0 + $0x50] ss:$8 sps:$4 sm:$0xff]  }
   0x9   :  { %339 = vmatprep.mubr.bf16.mxu1 %v790_v13  ;;  %v791_v24 = vld [vmem:[%s982_s0 + $0x24] ss:$8 sps:$4 sm:$0xff]   ;;  %v793_v26 = vld [vmem:[%s982_s0 + $0x20] ss:$8 sps:$4 sm:$0xff]   ;;  %v797_v28 = vld [vmem:[%s982_s0 + $0x34] ss:$8 sps:$4 sm:$0xff]  }
   0xa   :  { %v800_v25 = vld [vmem:[%s982_s0 + $0x64] ss:$8 sps:$4 sm:$0xff]   ;;  %v802_v27 = vld [vmem:[%s982_s0 + $0x60] ss:$8 sps:$4 sm:$0xff]   ;;  %v803_v29 = vld [vmem:[%s982_s0 + $0x74] ss:$8 sps:$4 sm:$0xff]  }
   0xb   :  { %691 = vmatpush3.bf16.msra.mxu0 %v771_v5  ;;  %760 = vmatpush3.bf16.msra.mxu1 %v771_v5  ;;  %v799_v30 = vld [vmem:[%s982_s0 + $0x30] ss:$8 sps:$4 sm:$0xff]  }
   0xc   :  { %692 = vmatprep.subr.bf16.mxu0 %v772_v6  ;;  %753 = vmatprep.subr.bf16.mxu1 %v772_v6  ;;  %v805_v31 = vld [vmem:[%s982_s0 + $0x70] ss:$8 sps:$4 sm:$0xff]  }
   0xf   :  { %693 = vmatpush3.bf16.msra.mxu0 %v773_v7  ;;  %761 = vmatpush3.bf16.msra.mxu1 %v773_v7 }
  0x10   :  { %694 = vmatprep.subr.bf16.mxu0 %v774_v8  ;;  %754 = vmatprep.subr.bf16.mxu1 %v774_v8 }
  0x13   :  { %695 = vmatpush3.bf16.msra.mxu0 %v775_v9  ;;  %762 = vmatpush3.bf16.msra.mxu1 %v775_v9 }
  0x14   :  { %696 = vmatprep.subr.bf16.mxu0 %v776_v10  ;;  %755 = vmatprep.subr.bf16.mxu1 %v776_v10 }
  0x17   :  { %697 = vmatpush3.bf16.msra.mxu0 %v777_v12  ;;  %763 = vmatpush3.bf16.msra.mxu1 %v777_v12 }
  0x18   :  { %698 = vmatprep.subr.bf16.mxu0 %v778_v14  ;;  %756 = vmatprep.subr.bf16.mxu1 %v778_v14 }
  0x1b   :  { %699 = vmatpush3.bf16.msra.mxu0 %v779_v15  ;;  %764 = vmatpush3.bf16.msra.mxu1 %v779_v15 }
  0x1c   :  { %700 = vmatprep.subr.bf16.mxu0 %v780_v16  ;;  %757 = vmatprep.subr.bf16.mxu1 %v780_v16 }
  0x1f   :  { %701 = vmatpush3.bf16.msra.mxu0 %v781_v17  ;;  %765 = vmatpush3.bf16.msra.mxu1 %v781_v17 }
  0x22   :  { %308 = vmatmul.mubr.bf16.vlgmr.msra.gmra.mxu0 %v782_v18  ;;  %340 = vmatmul.mubr.bf16.vlgmr.msra.gmra.mxu1 %v788_v19 }
  0x23   :  { %315 = vmatprep.mubr.bf16.mxu0 %v785_v20  ;;  %347 = vmatprep.mubr.bf16.mxu1 %v794_v21 }
  0x2a   :  { %316 = vmatmul.mubr.bf16.gmra.mxu0 %v787_v22  ;;  %348 = vmatmul.mubr.bf16.gmra.mxu1 %v796_v23 }
  0x2b   :  { %323 = vmatprep.mubr.bf16.mxu0 %v791_v24  ;;  %355 = vmatprep.mubr.bf16.mxu1 %v800_v25 }
  0x32   :  { %324 = vmatmul.mubr.bf16.gmra.mxu0 %v793_v26  ;;  %356 = vmatmul.mubr.bf16.gmra.mxu1 %v802_v27 }
  0x33   :  { %331 = vmatprep.mubr.bf16.mxu0 %v797_v28  ;;  %363 = vmatprep.mubr.bf16.mxu1 %v803_v29 }
  0x3a   :  { %332 = vmatmul.mubr.bf16.gmra.mxu0 %v799_v30  ;;  %364 = vmatmul.mubr.bf16.gmra.mxu1 %v805_v31 }
  0xe2   :  { %v702_v32 = vpop.f32.mrf.mxu0  ;;  %v726_v33 = vpop.f32.mrf.mxu1 }
  0xe4   :  { %v703_v34 = vpop.f32.mrf.mxu0  ;;  %v727_v35 = vpop.f32.mrf.mxu1 }
  0xe5   :  { %v927_v38 = vadd.f32 %v727_v35, %v726_v33  ;;  %v704_v41 = vadd.f32 %v703_v34, %v702_v32 }
  0xe6   :  { %v705_v36 = vpop.f32.mrf.mxu0  ;;  %v729_v37 = vpop.f32.mrf.mxu1 }
  0xe7   :  { %v524_v1 = vmul.f32 %v704_v41, %v704_v41 }
  0xe8   :  { %v706_v39 = vpop.f32.mrf.mxu0  ;;  %v730_v40 = vpop.f32.mrf.mxu1 }
  0xe9   :  { %v707_v42 = vadd.f32 %v706_v39, %v705_v36  ;;  %v929_v43 = vadd.f32 %v730_v40, %v729_v37 }
  0xea   :  { %v708_v44 = vpop.f32.mrf.mxu0  ;;  %v732_v45 = vpop.f32.mrf.mxu1 }
  0xeb   :  { %v642_v46 = vpack.c.bf16 %v707_v42, %v704_v41  ;;  %v662_v47 = vpack.c.bf16 %v929_v43, %v927_v38  ;;  %v525_v62 = vmul.f32 %v707_v42, %v707_v42  ;;  %v503_v6 = vadd.f32 %v707_v42, %v704_v41 }
  0xec   :  { %v709_v48 = vpop.f32.mrf.mxu0  ;;  %v733_v49 = vpop.f32.mrf.mxu1 }
  0xed   :  { %643 = vst [vmem:[%s983_s2] sm:$0xff] %v642_v46   ;;  %682 = vst [vmem:[%s983_s2 + $0x20] sm:$0xff] %v662_v47   ;;  %v939_v52 = vadd.f32 %v733_v49, %v732_v45  ;;  %v710_v55 = vadd.f32 %v709_v48, %v708_v44  ;;  %v540_v8 = vadd.f32 %v525_v62, %v524_v1 }
  0xee   :  { %v711_v50 = vpop.f32.mrf.mxu0  ;;  %v735_v51 = vpop.f32.mrf.mxu1  ;;  %v532_v47 = vmul.f32 %v927_v38, %v927_v38 }
  0xef   :  { %v526_v2 = vmul.f32 %v710_v55, %v710_v55  ;;  %v504_v12 = vadd.f32 %v710_v55, %v503_v6 }
  0xf0   :  { %v712_v53 = vpop.f32.mrf.mxu0  ;;  %v736_v54 = vpop.f32.mrf.mxu1 }
  0xf1   :  { %v713_v56 = vadd.f32 %v712_v53, %v711_v50  ;;  %v941_v57 = vadd.f32 %v736_v54, %v735_v51  ;;  %v541_v15 = vadd.f32 %v540_v8, %v526_v2  ;;  %v533_v50 = vmul.f32 %v929_v43, %v929_v43 }
  0xf2   :  { %v714_v58 = vpop.f32.mrf.mxu0  ;;  %v738_v59 = vpop.f32.mrf.mxu1  ;;  %v534_v54 = vmul.f32 %v939_v52, %v939_v52 }
  0xf3   :  { %v647_v60 = vpack.c.bf16 %v713_v56, %v710_v55  ;;  %v667_v61 = vpack.c.bf16 %v941_v57, %v939_v52  ;;  %v527_v9 = vmul.f32 %v713_v56, %v713_v56  ;;  %v505_v19 = vadd.f32 %v713_v56, %v504_v12 }
  0xf4   :  { %v715_v63 = vpop.f32.mrf.mxu0  ;;  %v739_v0 = vpop.f32.mrf.mxu1 }
  0xf5   :  { %679 = vst [vmem:[%s983_s2 + $0x8] sm:$0xff] %v647_v60   ;;  %683 = vst [vmem:[%s983_s2 + $0x28] sm:$0xff] %v667_v61   ;;  %v716_v3 = vadd.f32 %v715_v63, %v714_v58  ;;  %v740_v7 = vadd.f32 %v739_v0, %v738_v59  ;;  %v542_v22 = vadd.f32 %v541_v15, %v527_v9 }
  0xf6   :  { %v717_v4 = vpop.f32.mrf.mxu0  ;;  %v741_v5 = vpop.f32.mrf.mxu1 }
  0xf7   :  { %v528_v16 = vmul.f32 %v716_v3, %v716_v3  ;;  %v506_v26 = vadd.f32 %v716_v3, %v505_v19  ;;  %v536_v60 = vmul.f32 %v740_v7, %v740_v7 }
  0xf8   :  { %v718_v10 = vpop.f32.mrf.mxu0  ;;  %v742_v11 = vpop.f32.mrf.mxu1 }
  0xf9   :  { %v719_v13 = vadd.f32 %v718_v10, %v717_v4  ;;  %v743_v14 = vadd.f32 %v742_v11, %v741_v5  ;;  %v543_v28 = vadd.f32 %v542_v22, %v528_v16 }
  0xfa   :  { %v720_v17 = vpop.f32.mrf.mxu0  ;;  %v744_v18 = vpop.f32.mrf.mxu1 }
  0xfb   :  { %v652_v20 = vpack.c.bf16 %v719_v13, %v716_v3  ;;  %v672_v21 = vpack.c.bf16 %v743_v14, %v740_v7  ;;  %v529_v23 = vmul.f32 %v719_v13, %v719_v13  ;;  %v507_v31 = vadd.f32 %v719_v13, %v506_v26 }
  0xfc   :  { %v721_v24 = vpop.f32.mrf.mxu0  ;;  %v745_v25 = vpop.f32.mrf.mxu1  ;;  %v537_v0 = vmul.f32 %v743_v14, %v743_v14 }
  0xfd   :  { %680 = vst [vmem:[%s983_s2 + $0x10] sm:$0xff] %v652_v20   ;;  %v722_v27 = vadd.f32 %v721_v24, %v720_v17  ;;  %684 = vst [vmem:[%s983_s2 + $0x30] sm:$0xff] %v672_v21   ;;  %v746_v33 = vadd.f32 %v745_v25, %v744_v18  ;;  %v544_v34 = vadd.f32 %v543_v28, %v529_v23 }
  0xfe   :  { %v723_v29 = vpop.f32.mrf.mxu0  ;;  %v747_v30 = vpop.f32.mrf.mxu1 }
  0xff   :  { %v530_v32 = vmul.f32 %v722_v27, %v722_v27  ;;  %v508_v37 = vadd.f32 %v722_v27, %v507_v31  ;;  %v538_v3 = vmul.f32 %v746_v33, %v746_v33 }
 0x100   :  { %v724_v35 = vpop.f32.mrf.mxu0  ;;  %v748_v36 = vpop.f32.mrf.mxu1 }
 0x101   :  { %v725_v39 = vadd.f32 %v724_v35, %v723_v29  ;;  %v749_v40 = vadd.f32 %v748_v36, %v747_v30  ;;  %v545_v41 = vadd.f32 %v544_v34, %v530_v32 }
 0x103   :  { %v657_v42 = vpack.c.bf16 %v725_v39, %v722_v27  ;;  %v509_v44 = vadd.f32 %v725_v39, %v508_v37  ;;  %v531_v45 = vmul.f32 %v725_v39, %v725_v39  ;;  %v677_v46 = vpack.c.bf16 %v749_v40, %v746_v33 }
 0x104   :  { %v539_v6 = vmul.f32 %v749_v40, %v749_v40 }
 0x105   :  { %681 = vst [vmem:[%s983_s2 + $0x18] sm:$0xff] %v657_v42   ;;  %v510_v48 = vadd.f32 %v927_v38, %v509_v44  ;;  %v546_v49 = vadd.f32 %v545_v41, %v531_v45  ;;  %685 = vst [vmem:[%s983_s2 + $0x38] sm:$0xff] %v677_v46   ;;  %v535_v38 = vmul.f32 %v941_v57, %v941_v57 }
 0x107   :  { %v511_v51 = vadd.f32 %v929_v43, %v510_v48  ;;  %v547_v53 = vadd.f32 %v546_v49, %v532_v47 }
 0x109   :  { %v548_v55 = vadd.f32 %v547_v53, %v533_v50  ;;  %v512_v56 = vadd.f32 %v939_v52, %v511_v51 }
 0x10b   :  { %v513_v58 = vadd.f32 %v941_v57, %v512_v56  ;;  %v549_v59 = vadd.f32 %v548_v55, %v534_v54 }
 0x10d   :  { %v514_v61 = vadd.f32 %v740_v7, %v513_v58  ;;  %v550_v62 = vadd.f32 %v549_v59, %v535_v38 }
 0x10f   :  { %v515_v63 = vadd.f32 %v743_v14, %v514_v61  ;;  %v551_v1 = vadd.f32 %v550_v62, %v536_v60 }
 0x111   :  { %v552_v43 = vadd.f32 %v551_v1, %v537_v0  ;;  %v516_v2 = vadd.f32 %v746_v33, %v515_v63 }
 0x113   :  { %v553_v4 = vadd.f32 %v552_v43, %v538_v3  ;;  %v517_v5 = vadd.f32 %v749_v40, %v516_v2 }
 0x115   :  { %v518_v8 = vrot.slane %v517_v5, 4  ;;  %v554_v52 = vadd.f32 %v553_v4, %v539_v6 }
 0x117   :  { %v519_v9 = vadd.f32 %v518_v8, %v517_v5  ;;  %v555_v10 = vrot.slane %v554_v52, 4 }
 0x119   :  { %v520_v11 = vrot.slane %v519_v9, 2  ;;  %v556_v12 = vadd.f32 %v555_v10, %v554_v52 }
 0x11b   :  { %v521_v57 = vadd.f32 %v520_v11, %v519_v9  ;;  %v557_v13 = vrot.slane %v556_v12, 2 }
 0x11d   :  { %v522_v15 = vrot.slane %v521_v57, 1  ;;  %v558_v7 = vadd.f32 %v557_v13, %v556_v12 }
 0x11f   :  { %v523_v16 = vadd.f32 %v522_v15, %v521_v57  ;;  %v559_v17 = vrot.slane %v558_v7, 1 }
 0x121   :  { %v560_v14 = vadd.f32 %v559_v17, %v558_v7  ;;  %561 = vst [vmem:[%s984_s3] sm:$0xff] %v523_v16 }
 0x123   :  { %562 = vst [vmem:[%s985_s4] sm:$0xff] %v560_v14 }

// kernel: discriminator_forward.12
= control target key start
LH: loop header
LB: loop body
LE: loop exit
PB: predicated region body
PF: predicated region fallthrough
CT: control target
= control target key end

     0   :  { %v67_v8 = vlaneseq  ;;  %s496_s1 = inlined_call_operand.vmem [shape: f32[1,128], index: 1, kind: input, shape index: {}]   ;;  %s497_s2 = inlined_call_operand.vmem [shape: f32[1,128], index: 2, kind: input, shape index: {}]   ;;  %s498_s0 = inlined_call_operand.vmem [shape: bf16[128,128], index: 0, kind: input, shape index: {}]   ;;  %s499_s3 = inlined_call_operand.vmem [shape: f32[1,128], index: 3, kind: input, shape index: {}]   ;;  %s500_s4 = inlined_call_operand.vmem [shape: f32[1,128], index: 4, kind: input, shape index: {}]   ;;  %s501_s5 = inlined_call_operand.vmem [shape: bf16[128,128], index: 5, kind: output, shape index: {}]  }
   0x1   :  { %v20_v0 = vld [vmem:[%s496_s1] sm:$0x1]  ;;  %v346_v11 = vld [vmem:[%s498_s0 + $0x8] sm:$0xff]   ;;  %v347_v13 = vld [vmem:[%s498_s0 + $0x10] sm:$0xff]  }
   0x2   :  { %v22_v1 = vld [vmem:[%s497_s2] sm:$0x1]  ;;  %v21_v2 = vmul.f32 0.0078125, %v20_v0  ;;  %v68_v9 = vshrl.u32 %v67_v8, 7  ;;  %v348_v15 = vld [vmem:[%s498_s0 + $0x18] sm:$0xff]   ;;  %v280_v20 = vunpack.c.l.bf16 %v346_v11  ;;  %v350_v21 = vld [vmem:[%s498_s0 + $0x28] sm:$0xff]   ;;  %v281_v23 = vunpack.c.h.bf16 %v346_v11 }
   0x3   :  { %v23_v3 = vmul.f32 0.0078125, %v22_v1  ;;  %v275_v10 = vld [vmem:[%s498_s0] sm:$0xff]   ;;  %v284_v24 = vunpack.c.l.bf16 %v347_v13  ;;  %v285_v25 = vunpack.c.h.bf16 %v347_v13  ;;  %v351_v26 = vld [vmem:[%s498_s0 + $0x30] sm:$0xff]   ;;  %v425_v27 = vld [vmem:[%s498_s0 + $0x38] sm:$0xff]   ;;  %v288_v29 = vunpack.c.l.bf16 %v348_v15 }
   0x4   :  { %v24_v4 = vmul.f32 %v21_v2, %v21_v2  ;;  %v27_v12 = vld [vmem:[%s499_s3] sm:$0x1]  ;;  %v69_v14 = vsub.s32 0, %v68_v9  ;;  %v276_v18 = vunpack.c.l.bf16 %v275_v10  ;;  %v277_v19 = vunpack.c.h.bf16 %v275_v10 }
   0x5   :  { %v349_v16 = vld [vmem:[%s498_s0 + $0x20] sm:$0xff]   ;;  %v289_v30 = vunpack.c.h.bf16 %v348_v15  ;;  %v296_v35 = vunpack.c.l.bf16 %v350_v21  ;;  %v297_v36 = vunpack.c.h.bf16 %v350_v21  ;;  %v300_v37 = vunpack.c.l.bf16 %v351_v26 }
   0x6   :  { %v25_v5 = vsub.f32 %v23_v3, %v24_v4  ;;  %v31_v28 = vld [vmem:[%s500_s4] sm:$0x1]  ;;  %v292_v31 = vunpack.c.l.bf16 %v349_v16  ;;  %v293_v32 = vunpack.c.h.bf16 %v349_v16  ;;  %v301_v38 = vunpack.c.h.bf16 %v351_v26 }
   0x7   :  { %v304_v39 = vunpack.c.l.bf16 %v425_v27  ;;  %v305_v40 = vunpack.c.h.bf16 %v425_v27 }
   0x8   :  { %v26_v6 = vmax.f32 %v25_v5, 0.0 }
   0xa   :  { %v28_v7 = vadd.f32 1e-05, %v26_v6 }
   0xc   :  { %360 = vrsqrt.f32 %v28_v7 }
  0x19   :  { %v361_v17 = vpop.eup %360 }
  0x1a   :  { %v30_v22 = vmul.f32 %v361_v17, %v27_v12 }
  0x1c   :  { %v32_v33 = vmul.f32 %v30_v22, %v21_v2  ;;  %v430_v34 = vrot.slane %v30_v22, %v69_v14 }
  0x1e   :  { %v33_v41 = vsub.f32 %v31_v28, %v32_v33  ;;  %v72_v42 = vmul.f32 %v276_v18, %v430_v34  ;;  %v73_v43 = vmul.f32 %v277_v19, %v430_v34  ;;  %v74_v44 = vmul.f32 %v280_v20, %v430_v34 }
  0x1f   :  { %v75_v45 = vmul.f32 %v281_v23, %v430_v34  ;;  %v76_v46 = vmul.f32 %v284_v24, %v430_v34  ;;  %v77_v47 = vmul.f32 %v285_v25, %v430_v34  ;;  %v78_v48 = vmul.f32 %v288_v29, %v430_v34 }
  0x20   :  { %v441_v49 = vrot.slane %v33_v41, %v69_v14  ;;  %v79_v50 = vmul.f32 %v289_v30, %v430_v34  ;;  %v80_v51 = vmul.f32 %v292_v31, %v430_v34  ;;  %v81_v52 = vmul.f32 %v293_v32, %v430_v34 }
  0x21   :  { %v82_v53 = vmul.f32 %v296_v35, %v430_v34  ;;  %v83_v54 = vmul.f32 %v297_v36, %v430_v34  ;;  %v84_v55 = vmul.f32 %v300_v37, %v430_v34  ;;  %v85_v56 = vmul.f32 %v301_v38, %v430_v34 }
  0x22   :  { %v94_v57 = vadd.f32 %v441_v49, %v72_v42  ;;  %v95_v58 = vadd.f32 %v441_v49, %v73_v43  ;;  %v96_v59 = vadd.f32 %v441_v49, %v74_v44  ;;  %v97_v60 = vadd.f32 %v441_v49, %v75_v45 }
  0x23   :  { %v98_v61 = vadd.f32 %v441_v49, %v76_v46  ;;  %v99_v62 = vadd.f32 %v441_v49, %v77_v47  ;;  %v100_v63 = vadd.f32 %v441_v49, %v78_v48  ;;  %v101_v0 = vadd.f32 %v441_v49, %v79_v50 }
  0x24   :  { %vm110_vm0 = vcmp.gt.f32.partialorder %v94_v57, 0.0  ;;  %vm111_vm1 = vcmp.gt.f32.partialorder %v95_v58, 0.0  ;;  %v126_v1 = vmul.f32 0.2, %v94_v57  ;;  %v127_v2 = vmul.f32 0.2, %v95_v58 }
  0x25   :  { %vm112_vm2 = vcmp.gt.f32.partialorder %v96_v59, 0.0  ;;  %vm113_vm3 = vcmp.gt.f32.partialorder %v97_v60, 0.0  ;;  %v128_v3 = vmul.f32 0.2, %v96_v59  ;;  %v129_v4 = vmul.f32 0.2, %v97_v60 }
  0x26   :  { %v142_v5 = vsel %vm110_vm0, %v94_v57, %v126_v1  ;;  %v143_v6 = vsel %vm111_vm1, %v95_v58, %v127_v2  ;;  %vm114_vm4 = vcmp.gt.f32.partialorder %v98_v61, 0.0  ;;  %vm115_vm5 = vcmp.gt.f32.partialorder %v99_v62, 0.0 }
  0x27   :  { %v309_v7 = vpack.c.bf16 %v143_v6, %v142_v5  ;;  %v144_v8 = vsel %vm112_vm2, %v96_v59, %v128_v3  ;;  %v145_v9 = vsel %vm113_vm3, %v97_v60, %v129_v4  ;;  %v130_v10 = vmul.f32 0.2, %v98_v61 }
  0x28   :  { %v314_v11 = vpack.c.bf16 %v145_v9, %v144_v8  ;;  %v131_v12 = vmul.f32 0.2, %v99_v62  ;;  %vm116_vm6 = vcmp.gt.f32.partialorder %v100_v63, 0.0  ;;  %vm117_vm7 = vcmp.gt.f32.partialorder %v101_v0, 0.0 }
  0x29   :  { %310 = vst [vmem:[%s501_s5] sm:$0xff] %v309_v7   ;;  %v146_v13 = vsel %vm114_vm4, %v98_v61, %v130_v10  ;;  %v132_v14 = vmul.f32 0.2, %v100_v63  ;;  %v133_v15 = vmul.f32 0.2, %v101_v0  ;;  %v102_v16 = vadd.f32 %v441_v49, %v80_v51 }
  0x2a   :  { %353 = vst [vmem:[%s501_s5 + $0x8] sm:$0xff] %v314_v11   ;;  %v147_v17 = vsel %vm115_vm5, %v99_v62, %v131_v12  ;;  %v103_v18 = vadd.f32 %v441_v49, %v81_v52  ;;  %v104_v19 = vadd.f32 %v441_v49, %v82_v53  ;;  %v105_v20 = vadd.f32 %v441_v49, %v83_v54 }
  0x2b   :  { %v319_v21 = vpack.c.bf16 %v147_v17, %v146_v13  ;;  %v148_v22 = vsel %vm116_vm6, %v100_v63, %v132_v14  ;;  %v149_v23 = vsel %vm117_vm7, %v101_v0, %v133_v15  ;;  %vm118_vm8 = vcmp.gt.f32.partialorder %v102_v16, 0.0 }
  0x2c   :  { %v324_v24 = vpack.c.bf16 %v149_v23, %v148_v22  ;;  %vm119_vm9 = vcmp.gt.f32.partialorder %v103_v18, 0.0  ;;  %v134_v25 = vmul.f32 0.2, %v102_v16  ;;  %v135_v26 = vmul.f32 0.2, %v103_v18 }
  0x2d   :  { %354 = vst [vmem:[%s501_s5 + $0x10] sm:$0xff] %v319_v21   ;;  %vm120_vm10 = vcmp.gt.f32.partialorder %v104_v19, 0.0  ;;  %vm121_vm11 = vcmp.gt.f32.partialorder %v105_v20, 0.0  ;;  %v136_v28 = vmul.f32 0.2, %v104_v19  ;;  %v106_v32 = vadd.f32 %v441_v49, %v84_v55 }
  0x2e   :  { %v137_v29 = vmul.f32 0.2, %v105_v20  ;;  %355 = vst [vmem:[%s501_s5 + $0x18] sm:$0xff] %v324_v24   ;;  %v150_v30 = vsel %vm118_vm8, %v102_v16, %v134_v25  ;;  %v151_v31 = vsel %vm119_vm9, %v103_v18, %v135_v26  ;;  %v107_v33 = vadd.f32 %v441_v49, %v85_v56 }
  0x2f   :  { %v329_v35 = vpack.c.bf16 %v151_v31, %v150_v30  ;;  %v152_v36 = vsel %vm120_vm10, %v104_v19, %v136_v28  ;;  %v86_v38 = vmul.f32 %v304_v39, %v430_v34  ;;  %vm122_vm12 = vcmp.gt.f32.partialorder %v106_v32, 0.0 }
  0x30   :  { %v153_v37 = vsel %vm121_vm11, %v105_v20, %v137_v29  ;;  %vm123_vm13 = vcmp.gt.f32.partialorder %v107_v33, 0.0  ;;  %v138_v42 = vmul.f32 0.2, %v106_v32  ;;  %v139_v43 = vmul.f32 0.2, %v107_v33 }
  0x31   :  { %v334_v41 = vpack.c.bf16 %v153_v37, %v152_v36  ;;  %356 = vst [vmem:[%s501_s5 + $0x20] sm:$0xff] %v329_v35   ;;  %v87_v44 = vmul.f32 %v305_v40, %v430_v34  ;;  %v108_v45 = vadd.f32 %v441_v49, %v86_v38 }
  0x32   :  { %v154_v39 = vsel %vm122_vm12, %v106_v32, %v138_v42  ;;  %v155_v46 = vsel %vm123_vm13, %v107_v33, %v139_v43 }
  0x33   :  { %357 = vst [vmem:[%s501_s5 + $0x28] sm:$0xff] %v334_v41   ;;  %v109_v47 = vadd.f32 %v441_v49, %v87_v44  ;;  %vm124_vm14 = vcmp.gt.f32.partialorder %v108_v45, 0.0  ;;  %v140_v48 = vmul.f32 0.2, %v108_v45  ;;  %v339_v50 = vpack.c.bf16 %v155_v46, %v154_v39 }
  0x35   :  { %vm125_vm15 = vcmp.gt.f32.partialorder %v109_v47, 0.0  ;;  %v141_v51 = vmul.f32 0.2, %v109_v47  ;;  %v156_v52 = vsel %vm124_vm14, %v108_v45, %v140_v48  ;;  %358 = vst [vmem:[%s501_s5 + $0x30] sm:$0xff] %v339_v50  }
  0x37   :  { %v157_v27 = vsel %vm125_vm15, %v109_v47, %v141_v51 }
  0x38   :  { %v344_v34 = vpack.c.bf16 %v157_v27, %v156_v52 }
  0x3a   :  { %359 = vst [vmem:[%s501_s5 + $0x38] sm:$0xff] %v344_v34  }

// kernel: discriminator_forward.13
= control target key start
LH: loop header
LB: loop body
LE: loop exit
PB: predicated region body
PF: predicated region fallthrough
CT: control target
= control target key end

     0   :  { %s816_s1 = inlined_call_operand.vmem [shape: bf16[512,128], index: 1, kind: input, shape index: {}]   ;;  %s817_s0 = inlined_call_operand.vmem [shape: bf16[32,512], index: 0, kind: input, shape index: {}]   ;;  %s818_s2 = inlined_call_operand.vmem [shape: bf16[32,128], index: 2, kind: output, shape index: {0}]   ;;  %s819_s3 = inlined_call_operand.vmem [shape: f32[8,128], index: 3, kind: output, shape index: {1}]   ;;  %s820_s4 = inlined_call_operand.vmem [shape: f32[8,128], index: 4, kind: output, shape index: {2}]  }
   0x1   :  { %v615_v0 = vld [vmem:[%s816_s1 + $0x78] sm:$0xff]   ;;  %v619_v4 = vld [vmem:[%s816_s1 + $0x70] sm:$0xff]   ;;  %v623_v8 = vld [vmem:[%s816_s1 + $0x68] sm:$0xff]  }
   0x2   :  { %v616_v1 = vld [vmem:[%s816_s1 + $0xf8] sm:$0xff]   ;;  %559 = vmatprep.subr.bf16.mxu0 %v615_v0  ;;  %v620_v5 = vld [vmem:[%s816_s1 + $0xf0] sm:$0xff]   ;;  %v624_v9 = vld [vmem:[%s816_s1 + $0xe8] sm:$0xff]  }
   0x3   :  { %v617_v2 = vld [vmem:[%s816_s1 + $0x38] sm:$0xff]   ;;  %587 = vmatprep.subr.bf16.mxu1 %v616_v1  ;;  %v621_v6 = vld [vmem:[%s816_s1 + $0x30] sm:$0xff]   ;;  %v625_v10 = vld [vmem:[%s816_s1 + $0x28] sm:$0xff]  }
   0x4   :  { %v618_v3 = vld [vmem:[%s816_s1 + $0xb8] sm:$0xff]   ;;  %560 = vmatpush3.bf16.msra.mxu0 %v617_v2  ;;  %v622_v7 = vld [vmem:[%s816_s1 + $0xb0] sm:$0xff]   ;;  %v626_v11 = vld [vmem:[%s816_s1 + $0xa8] sm:$0xff]  }
   0x5   :  { %588 = vmatpush3.bf16.msra.mxu1 %v618_v3  ;;  %561 = vmatprep.subr.bf16.mxu0 %v619_v4  ;;  %v627_v12 = vld [vmem:[%s816_s1 + $0x60] sm:$0xff]   ;;  %v631_v16 = vld [vmem:[%s816_s1 + $0x58] sm:$0xff]   ;;  %v635_v20 = vld [vmem:[%s816_s1 + $0x50] sm:$0xff]  }
   0x6   :  { %589 = vmatprep.subr.bf16.mxu1 %v620_v5  ;;  %v628_v13 = vld [vmem:[%s816_s1 + $0xe0] sm:$0xff]   ;;  %v632_v17 = vld [vmem:[%s816_s1 + $0xd8] sm:$0xff]   ;;  %v636_v21 = vld [vmem:[%s816_s1 + $0xd0] sm:$0xff]  }
   0x7   :  { %v629_v14 = vld [vmem:[%s816_s1 + $0x20] sm:$0xff]   ;;  %v633_v18 = vld [vmem:[%s816_s1 + $0x18] sm:$0xff]   ;;  %v637_v22 = vld [vmem:[%s816_s1 + $0x10] sm:$0xff]  }
   0x8   :  { %562 = vmatpush3.bf16.msra.mxu0 %v621_v6  ;;  %v630_v15 = vld [vmem:[%s816_s1 + $0xa0] sm:$0xff]   ;;  %v634_v19 = vld [vmem:[%s816_s1 + $0x98] sm:$0xff]   ;;  %v638_v23 = vld [vmem:[%s816_s1 + $0x90] sm:$0xff]  }
   0x9   :  { %590 = vmatpush3.bf16.msra.mxu1 %v622_v7  ;;  %563 = vmatprep.subr.bf16.mxu0 %v623_v8  ;;  %v639_v24 = vld [vmem:[%s816_s1 + $0x48] sm:$0xff]   ;;  %v643_v28 = vld [vmem:[%s816_s1 + $0x40] sm:$0xff]  }
   0xa   :  { %591 = vmatprep.subr.bf16.mxu1 %v624_v9  ;;  %v640_v25 = vld [vmem:[%s816_s1 + $0xc8] sm:$0xff]   ;;  %v644_v29 = vld [vmem:[%s816_s1 + $0xc0] sm:$0xff]  }
   0xb   :  { %v641_v26 = vld [vmem:[%s816_s1 + $0x8] sm:$0xff]   ;;  %v645_v30 = vld [vmem:[%s816_s1] sm:$0xff]  }
   0xc   :  { %564 = vmatpush3.bf16.msra.mxu0 %v625_v10  ;;  %v642_v27 = vld [vmem:[%s816_s1 + $0x88] sm:$0xff]   ;;  %v646_v31 = vld [vmem:[%s816_s1 + $0x80] sm:$0xff]  }
   0xd   :  { %592 = vmatpush3.bf16.msra.mxu1 %v626_v11  ;;  %565 = vmatprep.subr.bf16.mxu0 %v627_v12  ;;  %v647_v32 = vld [vmem:[%s817_s0] ss:$16 sps:$4 sm:$0xff]   ;;  %v649_v33 = vld [vmem:[%s817_s0 + $0x4] ss:$16 sps:$4 sm:$0xff]   ;;  %v650_v34 = vld [vmem:[%s817_s0 + $0x8] ss:$16 sps:$4 sm:$0xff]  }
   0xe   :  { %593 = vmatprep.subr.bf16.mxu1 %v628_v13  ;;  %v652_v35 = vld [vmem:[%s817_s0 + $0xc] ss:$16 sps:$4 sm:$0xff]   ;;  %363 = vmatprep.mubr.bf16.mxu0 %v649_v33  ;;  %v653_v36 = vld [vmem:[%s817_s0 + $0x24] ss:$16 sps:$4 sm:$0xff]   ;;  %v657_v38 = vld [vmem:[%s817_s0 + $0x20] ss:$16 sps:$4 sm:$0xff]  }
   0xf   :  { %412 = vmatprep.mubr.bf16.mxu1 %v652_v35  ;;  %v655_v37 = vld [vmem:[%s817_s0 + $0x2c] ss:$16 sps:$4 sm:$0xff]   ;;  %v658_v39 = vld [vmem:[%s817_s0 + $0x28] ss:$16 sps:$4 sm:$0xff]  }
  0x10   :  { %566 = vmatpush3.bf16.msra.mxu0 %v629_v14 }
  0x11   :  { %594 = vmatpush3.bf16.msra.mxu1 %v630_v15  ;;  %567 = vmatprep.subr.bf16.mxu0 %v631_v16 }
  0x12   :  { %595 = vmatprep.subr.bf16.mxu1 %v632_v17 }
  0x14   :  { %568 = vmatpush3.bf16.msra.mxu0 %v633_v18 }
  0x15   :  { %596 = vmatpush3.bf16.msra.mxu1 %v634_v19  ;;  %569 = vmatprep.subr.bf16.mxu0 %v635_v20 }
  0x16   :  { %597 = vmatprep.subr.bf16.mxu1 %v636_v21 }
  0x18   :  { %570 = vmatpush3.bf16.msra.mxu0 %v637_v22 }
  0x19   :  { %598 = vmatpush3.bf16.msra.mxu1 %v638_v23  ;;  %571 = vmatprep.subr.bf16.mxu0 %v639_v24 }
  0x1a   :  { %599 = vmatprep.subr.bf16.mxu1 %v640_v25 }
  0x1c   :  { %572 = vmatpush3.bf16.msra.mxu0 %v641_v26 }
  0x1d   :  { %600 = vmatpush3.bf16.msra.mxu1 %v642_v27  ;;  %573 = vmatprep.subr.bf16.mxu0 %v643_v28 }
  0x1e   :  { %601 = vmatprep.subr.bf16.mxu1 %v644_v29 }
  0x20   :  { %574 = vmatpush3.bf16.msra.mxu0 %v645_v30 }
  0x21   :  { %602 = vmatpush3.bf16.msra.mxu1 %v646_v31 }
  0x23   :  { %364 = vmatmul.mubr.bf16.vlgmr.msra.gmra.mxu0 %v647_v32 }
  0x24   :  { %413 = vmatmul.mubr.bf16.vlgmr.msra.gmra.mxu1 %v650_v34  ;;  %371 = vmatprep.mubr.bf16.mxu0 %v653_v36 }
  0x25   :  { %420 = vmatprep.mubr.bf16.mxu1 %v655_v37 }
  0x2b   :  { %372 = vmatmul.mubr.bf16.gmra.mxu0 %v657_v38 }
  0x2c   :  { %421 = vmatmul.mubr.bf16.gmra.mxu1 %v658_v39 }
  0xe3   :  { %v575_v40 = vpop.f32.mrf.mxu0 }
  0xe4   :  { %v603_v41 = vpop.f32.mrf.mxu1 }
  0xe5   :  { %v576_v42 = vpop.f32.mrf.mxu0 }
  0xe6   :  { %v604_v43 = vpop.f32.mrf.mxu1  ;;  %v577_v46 = vadd.f32 %v576_v42, %v575_v40 }
  0xe7   :  { %v578_v44 = vpop.f32.mrf.mxu0  ;;  %v605_v47 = vadd.f32 %v604_v43, %v603_v41 }
  0xe8   :  { %v606_v45 = vpop.f32.mrf.mxu1 }
  0xe9   :  { %v579_v48 = vpop.f32.mrf.mxu0  ;;  %v415_v54 = vadd.f32 %v605_v47, %v577_v46 }
  0xea   :  { %v580_v49 = vadd.f32 %v579_v48, %v578_v44  ;;  %v607_v50 = vpop.f32.mrf.mxu1 }
  0xeb   :  { %v608_v51 = vadd.f32 %v607_v50, %v606_v45  ;;  %v581_v52 = vpop.f32.mrf.mxu0  ;;  %v473_v4 = vmul.f32 %v415_v54, %v415_v54 }
  0xec   :  { %v609_v53 = vpop.f32.mrf.mxu1 }
  0xed   :  { %v418_v55 = vadd.f32 %v608_v51, %v580_v49  ;;  %v582_v56 = vpop.f32.mrf.mxu0 }
  0xee   :  { %v583_v57 = vadd.f32 %v582_v56, %v581_v52  ;;  %v610_v58 = vpop.f32.mrf.mxu1 }
  0xef   :  { %v551_v59 = vpack.c.bf16 %v418_v55, %v415_v54  ;;  %v611_v60 = vadd.f32 %v610_v58, %v609_v53  ;;  %v584_v61 = vpop.f32.mrf.mxu0  ;;  %v474_v63 = vmul.f32 %v418_v55, %v418_v55  ;;  %v464_v5 = vadd.f32 %v418_v55, %v415_v54 }
  0xf0   :  { %v612_v62 = vpop.f32.mrf.mxu1 }
  0xf1   :  { %552 = vst [vmem:[%s818_s2] sm:$0xff] %v551_v59   ;;  %v423_v0 = vadd.f32 %v611_v60, %v583_v57  ;;  %v585_v1 = vpop.f32.mrf.mxu0  ;;  %v477_v8 = vadd.f32 %v474_v63, %v473_v4 }
  0xf2   :  { %v586_v2 = vadd.f32 %v585_v1, %v584_v61  ;;  %v613_v3 = vpop.f32.mrf.mxu1 }
  0xf3   :  { %v475_v6 = vmul.f32 %v423_v0, %v423_v0  ;;  %v614_v7 = vadd.f32 %v613_v3, %v612_v62  ;;  %v465_v9 = vadd.f32 %v464_v5, %v423_v0 }
  0xf5   :  { %v426_v10 = vadd.f32 %v614_v7, %v586_v2  ;;  %v478_v11 = vadd.f32 %v477_v8, %v475_v6 }
  0xf7   :  { %v556_v12 = vpack.c.bf16 %v426_v10, %v423_v0  ;;  %v466_v13 = vadd.f32 %v465_v9, %v426_v10  ;;  %v476_v14 = vmul.f32 %v426_v10, %v426_v10 }
  0xf9   :  { %558 = vst [vmem:[%s818_s2 + $0x8] sm:$0xff] %v556_v12   ;;  %v467_v15 = vrot.slane %v466_v13, 4  ;;  %v479_v16 = vadd.f32 %v478_v11, %v476_v14 }
  0xfb   :  { %v468_v17 = vadd.f32 %v467_v15, %v466_v13  ;;  %v480_v18 = vrot.slane %v479_v16, 4 }
  0xfd   :  { %v469_v19 = vrot.slane %v468_v17, 2  ;;  %v481_v20 = vadd.f32 %v480_v18, %v479_v16 }
  0xff   :  { %v470_v21 = vadd.f32 %v469_v19, %v468_v17  ;;  %v482_v22 = vrot.slane %v481_v20, 2 }
 0x101   :  { %v471_v23 = vrot.slane %v470_v21, 1  ;;  %v483_v24 = vadd.f32 %v482_v22, %v481_v20 }
 0x103   :  { %v472_v25 = vadd.f32 %v471_v23, %v470_v21  ;;  %v484_v26 = vrot.slane %v483_v24, 1 }
 0x105   :  { %v485_v27 = vadd.f32 %v484_v26, %v483_v24  ;;  %486 = vst [vmem:[%s819_s3] sm:$0xff] %v472_v25 }
 0x107   :  { %487 = vst [vmem:[%s820_s4] sm:$0xff] %v485_v27 }

// kernel: discriminator_forward.14
= control target key start
LH: loop header
LB: loop body
LE: loop exit
PB: predicated region body
PF: predicated region fallthrough
CT: control target
= control target key end

     0   :  { %v43_v8 = vlaneseq  ;;  %s182_s1 = inlined_call_operand.vmem [shape: f32[1,128], index: 1, kind: input, shape index: {}]   ;;  %s183_s2 = inlined_call_operand.vmem [shape: f32[1,128], index: 2, kind: input, shape index: {}]   ;;  %s184_s0 = inlined_call_operand.vmem [shape: bf16[32,128], index: 0, kind: input, shape index: {}]   ;;  %s185_s3 = inlined_call_operand.vmem [shape: f32[1,128], index: 3, kind: input, shape index: {}]   ;;  %s186_s4 = inlined_call_operand.vmem [shape: f32[1,128], index: 4, kind: input, shape index: {}]   ;;  %s187_s5 = inlined_call_operand.vmem [shape: bf16[32,128], index: 5, kind: output, shape index: {}]  }
   0x1   :  { %v20_v0 = vld [vmem:[%s182_s1] sm:$0x1]  ;;  %v124_v12 = vld [vmem:[%s184_s0 + $0x8] sm:$0xff]  }
   0x2   :  { %v22_v1 = vld [vmem:[%s183_s2] sm:$0x1]  ;;  %v21_v2 = vmul.f32 0.03125, %v20_v0  ;;  %v44_v9 = vshrl.u32 %v43_v8, 7  ;;  %v112_v18 = vunpack.c.l.bf16 %v124_v12  ;;  %v113_v20 = vunpack.c.h.bf16 %v124_v12 }
   0x3   :  { %v23_v3 = vmul.f32 0.03125, %v22_v1  ;;  %v27_v10 = vld [vmem:[%s185_s3] sm:$0x1] }
   0x4   :  { %v24_v4 = vmul.f32 %v21_v2, %v21_v2  ;;  %v107_v11 = vld [vmem:[%s184_s0] sm:$0xff]   ;;  %v45_v13 = vsub.s32 0, %v44_v9 }
   0x5   :  { %v108_v16 = vunpack.c.l.bf16 %v107_v11  ;;  %v109_v17 = vunpack.c.h.bf16 %v107_v11  ;;  %v31_v19 = vld [vmem:[%s186_s4] sm:$0x1] }
   0x6   :  { %v25_v5 = vsub.f32 %v23_v3, %v24_v4 }
   0x8   :  { %v26_v6 = vmax.f32 %v25_v5, 0.0 }
   0xa   :  { %v28_v7 = vadd.f32 1e-05, %v26_v6 }
   0xc   :  { %126 = vrsqrt.f32 %v28_v7 }
  0x19   :  { %v127_v14 = vpop.eup %126 }
  0x1a   :  { %v30_v15 = vmul.f32 %v127_v14, %v27_v10 }
  0x1c   :  { %v32_v21 = vmul.f32 %v30_v15, %v21_v2  ;;  %v46_v22 = vrot.slane %v30_v15, %v45_v13 }
  0x1e   :  { %v33_v23 = vsub.f32 %v31_v19, %v32_v21  ;;  %v48_v24 = vmul.f32 %v108_v16, %v46_v22  ;;  %v49_v25 = vmul.f32 %v109_v17, %v46_v22  ;;  %v50_v26 = vmul.f32 %v112_v18, %v46_v22 }
  0x1f   :  { %v51_v27 = vmul.f32 %v113_v20, %v46_v22 }
  0x20   :  { %v56_v28 = vrot.slane %v33_v23, %v45_v13 }
  0x22   :  { %v58_v29 = vadd.f32 %v56_v28, %v48_v24  ;;  %v59_v30 = vadd.f32 %v56_v28, %v49_v25  ;;  %v60_v31 = vadd.f32 %v56_v28, %v50_v26  ;;  %v61_v32 = vadd.f32 %v56_v28, %v51_v27 }
  0x24   :  { %vm62_vm0 = vcmp.gt.f32.partialorder %v58_v29, 0.0  ;;  %vm63_vm1 = vcmp.gt.f32.partialorder %v59_v30, 0.0  ;;  %v66_v33 = vmul.f32 0.2, %v58_v29  ;;  %v67_v34 = vmul.f32 0.2, %v59_v30 }
  0x25   :  { %vm64_vm2 = vcmp.gt.f32.partialorder %v60_v31, 0.0  ;;  %vm65_vm3 = vcmp.gt.f32.partialorder %v61_v32, 0.0  ;;  %v68_v35 = vmul.f32 0.2, %v60_v31  ;;  %v69_v36 = vmul.f32 0.2, %v61_v32 }
  0x26   :  { %v70_v37 = vsel %vm62_vm0, %v58_v29, %v66_v33  ;;  %v71_v38 = vsel %vm63_vm1, %v59_v30, %v67_v34 }
  0x27   :  { %v117_v39 = vpack.c.bf16 %v71_v38, %v70_v37  ;;  %v72_v40 = vsel %vm64_vm2, %v60_v31, %v68_v35  ;;  %v73_v41 = vsel %vm65_vm3, %v61_v32, %v69_v36 }
  0x28   :  { %v122_v42 = vpack.c.bf16 %v73_v41, %v72_v40 }
  0x29   :  { %118 = vst [vmem:[%s187_s5] sm:$0xff] %v117_v39  }
  0x2a   :  { %125 = vst [vmem:[%s187_s5 + $0x8] sm:$0xff] %v122_v42  }

// kernel: discriminator_forward.15
= control target key start
LH: loop header
LB: loop body
LE: loop exit
PB: predicated region body
PF: predicated region fallthrough
CT: control target
= control target key end

     0   :  { %s883_s9 = smov 0   ;;  %s885_s10 = smov 0   ;;  %s963_s0 = inlined_call_operand.vmem [shape: bf16[8,1024], index: 0, kind: input, shape index: {}]   ;;  %s964_s1 = inlined_call_operand.vmem [shape: bf16[1024,128], index: 1, kind: input, shape index: {}]   ;;  %s965_s2 = inlined_call_operand.vmem [shape: f32[8,128], index: 2, kind: output, shape index: {}]  }
   0x1   :  { %s887_s11 = smov 0  }
   0x2 LB: > { %s24_s12 = sadd.s32 1, %s861_s10  ;;  %p687_p0 = scmp.ge.s32.totalorder %s865_s11, 1  ;;  %s865_s11 = sphi %s887_s11, %s12_s11   ;;  %s861_s10 = sphi %s885_s10, %s967_s10   ;;  %s857_s9 = sphi %s883_s9, %s966_s9  }
   0x3   : > { %p25_p1 = scmp.ge.s32.totalorder %s24_s12, 2  ;;  %p156_p2 = scmp.lt.s32.totalorder %s865_s11, 3 }
   0x5   : > { %s969_s12 = smov (%p25_p1, %s24_s12), 0  ;;  %p157_p3 = pnand %p687_p0, %p156_p2 }
   0x6   : > { %s688_s13 = sshll.u32 (!%p157_p3), %s857_s9, 2  ;;  %s690_s14 = sshll.u32 (!%p157_p3), %s857_s9, 6 }
   0x7   : > { %160 = sbr.rel (%p157_p3) target bundleno = 299 (0x12b), region = 28  ;;  %p195_p4 = scmp.lt.s32.totalorder (!%p157_p3), %s688_s13, 7 }
   0x8   : > { %p203_p5 = scmp.lt.s32.totalorder (!%p157_p3), %s690_s14, 127  ;;  %p692_p6 = scmp.ne.s32.totalorder (!%p157_p3), %s857_s9, 0 }
   0xc   : > { %s971_s13 = smov (!%p195_p4, %s688_s13), 7  ;;  %s973_s14 = smov (!%p203_p5, %s690_s14), 127 }
   0xd   : > { %s689_s15 = sshll.u32 %s971_s13, 2  ;;  %s691_s19 = sshll.u32 %s973_s14, 2 }
   0xe   : > { %s908_s18 = scalar_lea.vmem %s963_s0, %s689_s15  ;;  %s913_s22 = scalar_lea.vmem %s964_s1, %s691_s19 }
   0xf   : > { %222 = sbr.rel (%p692_p6) target bundleno = 22 (0x16), region = 32 }
  0x14   : > { %v867_v0 = vmov 0.0  }
  0x15   : > { %223 = vst [vmem:[#allocation2] sm:$0xff] %v867_v0 }
  0x16 PF: > { %v803_v1 = vld [vmem:[%s913_s22 + $0x78] sm:$0xff]   ;;  %v807_v5 = vld [vmem:[%s913_s22 + $0x70] sm:$0xff]   ;;  %v811_v9 = vld [vmem:[%s913_s22 + $0x68] sm:$0xff]   ;;  %p729_p7 = scmp.ne.s32.totalorder %s857_s9, 1 }
  0x17   : > { %v804_v2 = vld [vmem:[%s913_s22 + $0xf8] sm:$0xff]   ;;  %734 = vmatprep.subr.bf16.mxu0 %v803_v1  ;;  %v808_v6 = vld [vmem:[%s913_s22 + $0xf0] sm:$0xff]   ;;  %v812_v10 = vld [vmem:[%s913_s22 + $0xe8] sm:$0xff]  }
  0x18   : > { %v805_v3 = vld [vmem:[%s913_s22 + $0x38] sm:$0xff]   ;;  %756 = vmatprep.subr.bf16.mxu1 %v804_v2  ;;  %v809_v7 = vld [vmem:[%s913_s22 + $0x30] sm:$0xff]   ;;  %v813_v11 = vld [vmem:[%s913_s22 + $0x28] sm:$0xff]  }
  0x19   : > { %v806_v4 = vld [vmem:[%s913_s22 + $0xb8] sm:$0xff]   ;;  %735 = vmatpush3.bf16.msra.mxu0 %v805_v3  ;;  %v810_v8 = vld [vmem:[%s913_s22 + $0xb0] sm:$0xff]   ;;  %v814_v12 = vld [vmem:[%s913_s22 + $0xa8] sm:$0xff]  }
  0x1a   : > { %757 = vmatpush3.bf16.msra.mxu1 %v806_v4  ;;  %736 = vmatprep.subr.bf16.mxu0 %v807_v5  ;;  %v815_v13 = vld [vmem:[%s913_s22 + $0x60] sm:$0xff]   ;;  %v819_v17 = vld [vmem:[%s913_s22 + $0x58] sm:$0xff]   ;;  %v823_v21 = vld [vmem:[%s913_s22 + $0x50] sm:$0xff]  }
  0x1b   : > { %758 = vmatprep.subr.bf16.mxu1 %v808_v6  ;;  %v816_v14 = vld [vmem:[%s913_s22 + $0xe0] sm:$0xff]   ;;  %v820_v18 = vld [vmem:[%s913_s22 + $0xd8] sm:$0xff]   ;;  %v824_v22 = vld [vmem:[%s913_s22 + $0xd0] sm:$0xff]  }
  0x1c   : > { %v817_v15 = vld [vmem:[%s913_s22 + $0x20] sm:$0xff]   ;;  %v821_v19 = vld [vmem:[%s913_s22 + $0x18] sm:$0xff]   ;;  %v825_v23 = vld [vmem:[%s913_s22 + $0x10] sm:$0xff]  }
  0x1d   : > { %737 = vmatpush3.bf16.msra.mxu0 %v809_v7  ;;  %v818_v16 = vld [vmem:[%s913_s22 + $0xa0] sm:$0xff]   ;;  %v822_v20 = vld [vmem:[%s913_s22 + $0x98] sm:$0xff]   ;;  %v826_v24 = vld [vmem:[%s913_s22 + $0x90] sm:$0xff]  }
  0x1e   : > { %759 = vmatpush3.bf16.msra.mxu1 %v810_v8  ;;  %738 = vmatprep.subr.bf16.mxu0 %v811_v9  ;;  %v827_v25 = vld [vmem:[%s913_s22 + $0x48] sm:$0xff]   ;;  %v831_v29 = vld [vmem:[%s913_s22 + $0x40] sm:$0xff]  }
  0x1f   : > { %760 = vmatprep.subr.bf16.mxu1 %v812_v10  ;;  %v828_v26 = vld [vmem:[%s913_s22 + $0xc8] sm:$0xff]   ;;  %v832_v30 = vld [vmem:[%s913_s22 + $0xc0] sm:$0xff]  }
  0x20   : > { %v829_v27 = vld [vmem:[%s913_s22 + $0x8] sm:$0xff]   ;;  %v833_v31 = vld [vmem:[%s913_s22] sm:$0xff]  }
  0x21   : > { %739 = vmatpush3.bf16.msra.mxu0 %v813_v11  ;;  %v830_v28 = vld [vmem:[%s913_s22 + $0x88] sm:$0xff]   ;;  %v834_v32 = vld [vmem:[%s913_s22 + $0x80] sm:$0xff]  }
  0x22   : > { %761 = vmatpush3.bf16.msra.mxu1 %v814_v12  ;;  %740 = vmatprep.subr.bf16.mxu0 %v815_v13  ;;  %v225_v33 = vld [vmem:[%s908_s18] sm:$0xff]  ;;  %v226_v34 = vld [vmem:[%s908_s18 + $0x8] sm:$0xff] }
  0x23   : > { %762 = vmatprep.subr.bf16.mxu1 %v816_v14  ;;  %v693_v35 = vcombine.low %v225_v33, %v225_v33  ;;  %v694_v36 = vcombine.high %v225_v33, %v225_v33  ;;  %v695_v37 = vcombine.low %v226_v34, %v226_v34  ;;  %v696_v38 = vcombine.high %v226_v34, %v226_v34  ;;  %v224_v45 = vld [vmem:[#allocation2] sm:$0xff] }
  0x25   : > { %741 = vmatpush3.bf16.msra.mxu0 %v817_v15  ;;  %529 = vmatprep.mubr.bf16.mxu0 %v694_v36 }
  0x26   : > { %763 = vmatpush3.bf16.msra.mxu1 %v818_v16  ;;  %742 = vmatprep.subr.bf16.mxu0 %v819_v17 }
  0x27   : > { %764 = vmatprep.subr.bf16.mxu1 %v820_v18  ;;  %569 = vmatprep.mubr.bf16.mxu1 %v696_v38 }
  0x29   : > { %743 = vmatpush3.bf16.msra.mxu0 %v821_v19 }
  0x2a   : > { %765 = vmatpush3.bf16.msra.mxu1 %v822_v20  ;;  %744 = vmatprep.subr.bf16.mxu0 %v823_v21 }
  0x2b   : > { %766 = vmatprep.subr.bf16.mxu1 %v824_v22 }
  0x2d   : > { %745 = vmatpush3.bf16.msra.mxu0 %v825_v23 }
  0x2e   : > { %767 = vmatpush3.bf16.msra.mxu1 %v826_v24  ;;  %746 = vmatprep.subr.bf16.mxu0 %v827_v25 }
  0x2f   : > { %768 = vmatprep.subr.bf16.mxu1 %v828_v26 }
  0x31   : > { %747 = vmatpush3.bf16.msra.mxu0 %v829_v27 }
  0x32   : > { %769 = vmatpush3.bf16.msra.mxu1 %v830_v28  ;;  %748 = vmatprep.subr.bf16.mxu0 %v831_v29 }
  0x33   : > { %770 = vmatprep.subr.bf16.mxu1 %v832_v30 }
  0x35   : > { %749 = vmatpush3.bf16.msra.mxu0 %v833_v31 }
  0x36   : > { %771 = vmatpush3.bf16.msra.mxu1 %v834_v32 }
  0x38   : > { %530 = vmatmul.mubr.bf16.vlgmr.msra.gmra.mxu0 %v693_v35 }
  0x39   : > { %570 = vmatmul.mubr.bf16.vlgmr.msra.gmra.mxu1 %v695_v37 }
  0xf8   : > { %v750_v39 = vpop.f32.mrf.mxu0 }
  0xf9   : > { %v772_v40 = vpop.f32.mrf.mxu1 }
  0xfa   : > { %v751_v41 = vpop.f32.mrf.mxu0 }
  0xfb   : > { %v773_v42 = vpop.f32.mrf.mxu1  ;;  %v752_v43 = vadd.f32 %v751_v41, %v750_v39 }
  0xfc   : > { %v774_v44 = vadd.f32 %v773_v42, %v772_v40  ;;  %v753_v46 = vpop.f32.mrf.mxu0 }
  0xfd   : > { %v775_v47 = vpop.f32.mrf.mxu1 }
  0xfe   : > { %v572_v48 = vadd.f32 %v774_v44, %v752_v43  ;;  %v754_v49 = vpop.f32.mrf.mxu0  ;;  %582 = sbr.rel (%p729_p7) target bundleno = 299 (0x12b), region = 36 }
  0xff   : > { %v776_v50 = vpop.f32.mrf.mxu1 }
 0x100   : > { %v577_v51 = vadd.f32 %v572_v48, %v224_v45 }
 0x102   : > { %578 = vst [vmem:[#allocation2] sm:$0xff] %v577_v51 }
 0x109   : > { %v583_v52 = vld [vmem:[#allocation2] sm:$0xff] }
 0x10a   : > { %v730_v53 = vmul.f32 -1.442695, %v583_v52 }
 0x10c   : > { %839 = vpow2.f32 %v730_v53 }
 0x119   : > { %v840_v54 = vpop.eup %839 }
 0x11a   : > { %v587_v55 = vadd.f32 1.0, %v840_v54 }
 0x11c   : > { %841 = vrcp.f32 %v587_v55 }
 0x129   : > { %v842_v56 = vpop.eup %841 }
 0x12a   : > { %590 = vst [vmem:[%s965_s2] sm:$0xff] %v842_v56 }
 0x12b PF: > { %s12_s11 = sadd.s32 1, %s865_s11   ;;  %s966_s9 = smov %s861_s10 }
 0x12c   : > { %p9_p8 = scmp.ge.s32.totalorder %s12_s11, 4   ;;  %s967_s10 = smov %s969_s12 }
 0x12e   :  { %11 = sbr.rel (!%p9_p8) target bundleno = 2 (0x2), region = 69 }

</bundles_post_ra>
